<compile_context>
chip_gen: v7x
topology: tpu7x:2x2x1
jax: 0.10.0
libtpu: 0.0.40
codegen_flags: <defaults>
</compile_context>

<pallas_src>
import jax
import jax.numpy as jnp
from jax import lax
from jax.experimental import pallas as pl
from jax.experimental.pallas import tpu as pltpu

EPS = 1e-5


# ----------------------------------------------------------------------------
# Fused kernel: Conv(3->C1,3x3,s2,p0)+BN+ReLU -> DSConv(C1->C2,s2) -> DSConv(C2->C3,s2)
# Activation layout: rows = B_tile*H (stacked batch), lanes = W*C.
# ----------------------------------------------------------------------------
def _ltd_kernel(x_ref, rs1_ref, m1_ref, b1_ref,
                rs2_ref, cw2_ref, db2_ref, pw2_ref, pb2_ref,
                rs3_ref, cw3_ref, db3_ref, pw3_ref, pb3_ref,
                o_ref):
    f32, bf16 = jnp.float32, jnp.bfloat16

    def gathered_conv(a_b, rs_ref, w_ref, b_ref):
        """relu(bias + sum_kh (RS[kh] @ a) @ W[kh]), f32 MXU accumulation.

        RS[kh]: exact 0/1 stride-2 row-phase gather, block-diagonal over the
        stacked batch (halo rows fold to all-zero rows = free zero padding).
        W[kh]: kw taps + stride-2 column subsample + folded BN scale.
        a_b must be bf16; RS @ a_b is then exact, so the bf16 recast before the
        second dot is lossless -- no partial sum is ever rounded to bf16.
        """
        m = rs_ref.shape[1]
        n = w_ref.shape[2]
        acc = jnp.zeros((m, n), f32)
        for kh in range(3):                         # accumulating dots, no concat
            rk = jnp.dot(rs_ref[kh], a_b, preferred_element_type=f32)
            acc = acc + jnp.dot(rk.astype(bf16), w_ref[kh],
                                preferred_element_type=f32)
        return jnp.maximum(acc + b_ref[...], 0.0)

    # Stage 1: Conv(3->C1, 3x3, stride 2, pad 0) + BN + ReLU (BN folded into M1).
    act = gathered_conv(x_ref[...], rs1_ref, m1_ref, b1_ref)

    # Stages 2/3: DSConv = depthwise(3x3, s2, p1)+BN+ReLU then pointwise+BN+ReLU.
    for rs, cw, db, pw, pb in ((rs2_ref, cw2_ref, db2_ref, pw2_ref, pb2_ref),
                               (rs3_ref, cw3_ref, db3_ref, pw3_ref, pb3_ref)):
        d = gathered_conv(act.astype(bf16), rs, cw, db)         # depthwise, f32
        y = jnp.dot(d.astype(bf16), pw[...], preferred_element_type=f32)
        act = jnp.maximum(y + pb[...], 0.0)                     # pointwise+BN+ReLU

    o_ref[...] = act.astype(o_ref.dtype)


# ----------------------------------------------------------------------------
# Constant operands (selection/gather matrices, BN-folded weights), trace time.
# ----------------------------------------------------------------------------
def _build_operands(p, H, W, b_tile, lane_in):
    bf16, f32 = jnp.bfloat16, jnp.float32
    C1 = p["w1"].shape[-1]
    C2 = p["pw1"].shape[-1]
    H1, W1 = (H - 3) // 2 + 1, (W - 3) // 2 + 1
    H2, W2 = (H1 - 1) // 2 + 1, (W1 - 1) // 2 + 1
    H3, W3 = (H2 - 1) // 2 + 1, (W2 - 1) // 2 + 1

    def row_sel(hout, hin, offset):
        # (3, b_tile*hout, b_tile*hin), block-diag over batch:
        # [kh, b*hout+oh, b*hin+h] = 1  iff  h == 2*oh + kh + offset  (exact in bf16;
        # out-of-range rows are all-zero -> free zero padding).
        oh = jnp.arange(hout)
        h = jnp.arange(hin)
        kh = jnp.arange(3)
        sel = (h[None, None, :] ==
               2 * oh[None, :, None] + kh[:, None, None] + offset).astype(f32)
        eye_b = jnp.eye(b_tile, dtype=f32)
        rs = jnp.einsum("bc,koh->kboch", eye_b, sel)
        return rs.reshape(3, b_tile * hout, b_tile * hin).astype(bf16)

    def stage1_weights():
        # Per-kh im2col weights with column gather + BN scale folded:
        # (3, lane_in, W1*C1); rows [W*3, lane_in) are the zero lane padding.
        w1s = p["w1"] * p["s1"][None, None, None, :]            # (3,3,3,C1) HWIO
        w = jnp.arange(W)
        ow = jnp.arange(W1)
        kw = jnp.arange(3)
        match = (w[:, None, None] ==
                 2 * ow[None, :, None] + kw[None, None, :]).astype(f32)   # (W,W1,3)
        m = jnp.einsum("wvk,hkio->hwivo", match, w1s)            # (3,W,3,W1,C1)
        m = m.reshape(3, W * 3, W1 * C1)
        m = jnp.pad(m, ((0, 0), (0, lane_in - W * 3), (0, 0)))
        return m.astype(bf16)

    def dw_weights(dwk, scale, win, wout, cin):
        # Depthwise kw taps + stride-2 column subsample + BN scale, per kh:
        # (3, win*cin, wout*cin); [kh, w*cin+c, ow*cin+c] = dwk[kh, w-2*ow+1, c]*scale[c].
        d = dwk * scale[None, None, :]                           # (3,3,cin)
        w = jnp.arange(win)
        ow = jnp.arange(wout)
        kw = jnp.arange(3)
        match = (w[:, None, None] ==
                 2 * ow[None, :, None] + kw[None, None, :] - 1).astype(f32)
        eye_c = jnp.eye(cin, dtype=f32)
        m = jnp.einsum("wvk,hkc,cd->hwcvd", match, d, eye_c)     # (3,win,cin,wout,cin)
        return m.reshape(3, win * cin, wout * cin).astype(bf16)

    def pw_block(pw, scale, wout):
        # Block-diagonal 1x1-conv weights (BN scale folded): (wout*cin, wout*cout).
        pws = pw * scale[None, :]
        eye_w = jnp.eye(wout, dtype=f32)
        blk = jnp.einsum("wv,io->wivo", eye_w, pws)
        return blk.reshape(wout * pws.shape[0], wout * pws.shape[1]).astype(bf16)

    def tile_bias(b, wout):
        return jnp.tile(b, wout)[None, :].astype(f32)

    return (
        row_sel(H1, H, 0),                               # RS1  (pad 0)
        stage1_weights(),                                # M1
        tile_bias(p["b1"], W1),                          # B1
        row_sel(H2, H1, -1),                             # RS2  (pad 1 folded in)
        dw_weights(p["dwk1"], p["ds1"], W1, W2, C1),     # CW2
        tile_bias(p["db1"], W2),                         # DB2
        pw_block(p["pw1"], p["ps1"], W2),                # PW2
        tile_bias(p["pb1"], W2),                         # PB2
        row_sel(H3, H2, -1),                             # RS3
        dw_weights(p["dwk2"], p["ds2"], W2, W3, C2),     # CW3
        tile_bias(p["db2"], W3),                         # DB3
        pw_block(p["pw2"], p["ps2"], W3),                # PW3
        tile_bias(p["pb2"], W3),                         # PB3
    )


def _const_spec(c):
    # Grid-invariant operand: block == full array, constant index_map, so the
    # pipeline DMAs it once and never re-fetches it across grid steps.
    nd = c.ndim
    return pl.BlockSpec(c.shape, lambda n, _nd=nd: (0,) * _nd)


def _pick_b_tile(n, h, h3):
    """Largest batch stack (<=8) with >=2 grid steps and 8-row-aligned blocks."""
    best = None
    for bt in range(1, min(n, 8) + 1):
        if n % bt:
            continue
        if (bt * h) % 8 or (bt * h3) % 8:
            continue
        if n // bt >= 2 or n == 1:
            best = bt
    # Fallback: one grid step with blocks == full arrays (always legal).
    return best if best is not None else n


@jax.jit
def learning_to_downsample(x_nchw, p):
    N, Cin, H, W = x_nchw.shape
    assert Cin == 3
    C3 = p["pw2"].shape[-1]
    H1, W1 = (H - 3) // 2 + 1, (W - 3) // 2 + 1
    H2, W2 = (H1 - 1) // 2 + 1, (W1 - 1) // 2 + 1
    H3, W3 = (H2 - 1) // 2 + 1, (W2 - 1) // 2 + 1

    lane_in = (W * 3 + 127) // 128 * 128          # pad 96 -> 128 lanes (full vregs)
    b_tile = _pick_b_tile(N, H, H3)
    steps = N // b_tile

    # NCHW -> NHWC -> (N*H, lane_in) lane-padded bf16 MXU operand.
    x = jnp.transpose(x_nchw, (0, 2, 3, 1)).reshape(N, H, W * 3)
    x = jnp.pad(x, ((0, 0), (0, 0), (0, lane_in - W * 3)))
    x = x.reshape(N * H, lane_in).astype(jnp.bfloat16)

    consts = _build_operands(p, H, W, b_tile, lane_in)

    out = pl.pallas_call(
        _ltd_kernel,
        out_shape=jax.ShapeDtypeStruct((N * H3, W3 * C3), x_nchw.dtype),
        grid=(steps,),
        in_specs=[pl.BlockSpec((b_tile * H, lane_in), lambda n: (n, 0))]
                 + [_const_spec(c) for c in consts],
        out_specs=pl.BlockSpec((b_tile * H3, W3 * C3), lambda n: (n, 0)),
        compiler_params=pltpu.CompilerParams(
            dimension_semantics=("parallel",),
            vmem_limit_bytes=32 * 1024 * 1024),
    )(x, *consts)

    # (N*H3, W3*C3) -> NHWC -> NCHW (free reshape + one boundary transpose).
    return jnp.transpose(out.reshape(N, H3, W3, C3), (0, 3, 1, 2))


# ----------------------------------------------------------------------------
# Parameter construction (deterministic, synthetic; BN folded to scale/bias)
# ----------------------------------------------------------------------------
def _fold_bn(key, c):
    k1, k2, k3, k4 = jax.random.split(key, 4)
    gamma = jax.random.uniform(k1, (c,), jnp.float32, 0.5, 1.5)
    beta = jax.random.normal(k2, (c,), jnp.float32) * 0.1
    mean = jax.random.normal(k3, (c,), jnp.float32) * 0.1
    var = jax.random.uniform(k4, (c,), jnp.float32, 0.5, 1.5)
    scale = gamma / jnp.sqrt(var + EPS)
    bias = beta - mean * scale
    return scale, bias


def make_params(key, dw1=32, dw2=48, out_c=64):
    ks = jax.random.split(key, 9)
    p = {}
    p["w1"] = jax.random.normal(ks[0], (3, 3, 3, dw1), jnp.float32) * 0.1    # HWIO
    p["s1"], p["b1"] = _fold_bn(ks[1], dw1)
    p["dwk1"] = jax.random.normal(ks[2], (3, 3, dw1), jnp.float32) * 0.1     # HWC depthwise
    p["ds1"], p["db1"] = _fold_bn(ks[3], dw1)
    p["pw1"] = jax.random.normal(ks[4], (dw1, dw2), jnp.float32) * 0.1       # Cin x Cout
    p["ps1"], p["pb1"] = _fold_bn(ks[5], dw2)
    p["dwk2"] = jax.random.normal(ks[6], (3, 3, dw2), jnp.float32) * 0.1
    p["ds2"], p["db2"] = _fold_bn(ks[7], dw2)
    p["pw2"] = jax.random.normal(ks[8], (dw2, out_c), jnp.float32) * 0.1
    p["ps2"], p["pb2"] = _fold_bn(jax.random.fold_in(key, 99), out_c)
    return p


# ----------------------------------------------------------------------------
# Pure-JAX reference (for correctness check)
# ----------------------------------------------------------------------------
def _ref_forward(x_nchw, p):
    x = jnp.transpose(x_nchw, (0, 2, 3, 1))
    dn = ("NHWC", "HWIO", "NHWC")

    def cbr(x, w, s, b, stride, pad, groups=1):
        y = lax.conv_general_dilated(x, w, (stride, stride), pad,
                                     dimension_numbers=dn,
                                     feature_group_count=groups)
        return jnp.maximum(y * s + b, 0.0)

    c1 = p["w1"].shape[-1]
    c2 = p["pw1"].shape[-1]
    x = cbr(x, p["w1"], p["s1"], p["b1"], 2, [(0, 0), (0, 0)])
    x = cbr(x, p["dwk1"].reshape(3, 3, 1, c1), p["ds1"], p["db1"], 2,
            [(1, 1), (1, 1)], groups=c1)
    x = cbr(x, p["pw1"][None, None], p["ps1"], p["pb1"], 1, [(0, 0), (0, 0)])
    x = cbr(x, p["dwk2"].reshape(3, 3, 1, c2), p["ds2"], p["db2"], 2,
            [(1, 1), (1, 1)], groups=c2)
    x = cbr(x, p["pw2"][None, None], p["ps2"], p["pb2"], 1, [(0, 0), (0, 0)])
    return jnp.transpose(x, (0, 3, 1, 2))


# ----------------------------------------------------------------------------
if __name__ == "__main__":
    key = jax.random.PRNGKey(0)
    kx, kp = jax.random.split(key)

    # batch=8 exercises batch stacking (B_tile=4) with 2 parallel grid steps.
    x = jax.random.normal(kx, (8, 3, 32, 32), jnp.float32)
    params = make_params(kp)

    out = jax.block_until_ready(learning_to_downsample(x, params))
    assert out.shape == (8, 64, 4, 4), out.shape

    ref = _ref_forward(x, params)
    err = float(jnp.max(jnp.abs(out - ref)))
    scale = float(jnp.max(jnp.abs(ref))) + 1e-6
    assert err / scale < 3e-2, (err, scale)   # bf16 MXU operands, f32 accumulation

    print("KERNEL_OK")
</pallas_src>

<mosaic_0001>
module attributes {stable_mosaic.version = 11 : i64} {
  func.func @_ltd_kernel(%arg0: i32, %arg1: memref<128x128xbf16, #tpu.memory_space<vmem>>, %arg2: memref<3x60x128xbf16, #tpu.memory_space<vmem>>, %arg3: memref<3x128x480xbf16, #tpu.memory_space<vmem>>, %arg4: memref<1x480xf32, #tpu.memory_space<vmem>>, %arg5: memref<3x32x60xbf16, #tpu.memory_space<vmem>>, %arg6: memref<3x480x256xbf16, #tpu.memory_space<vmem>>, %arg7: memref<1x256xf32, #tpu.memory_space<vmem>>, %arg8: memref<256x384xbf16, #tpu.memory_space<vmem>>, %arg9: memref<1x384xf32, #tpu.memory_space<vmem>>, %arg10: memref<3x16x32xbf16, #tpu.memory_space<vmem>>, %arg11: memref<3x384x192xbf16, #tpu.memory_space<vmem>>, %arg12: memref<1x192xf32, #tpu.memory_space<vmem>>, %arg13: memref<192x256xbf16, #tpu.memory_space<vmem>>, %arg14: memref<1x256xf32, #tpu.memory_space<vmem>>, %arg15: memref<16x256xf32, #tpu.memory_space<vmem>>) attributes {dimension_semantics = [#tpu.dimension_semantics<parallel>], iteration_bounds = array<i64: 2>, scalar_prefetch = 0 : i64, scratch_operands = 0 : i64, tpu.core_type = #tpu.core_type<tc>, window_params = [{transform_indices = @transform_0, window_bounds = array<i64: 128, 128>}, {pipeline_mode = #tpu.pipeline_mode<synchronous>, transform_indices = @transform_1, window_bounds = array<i64: 3, 60, 128>}, {pipeline_mode = #tpu.pipeline_mode<synchronous>, transform_indices = @transform_2, window_bounds = array<i64: 3, 128, 480>}, {pipeline_mode = #tpu.pipeline_mode<synchronous>, transform_indices = @transform_3, window_bounds = array<i64: 1, 480>}, {pipeline_mode = #tpu.pipeline_mode<synchronous>, transform_indices = @transform_4, window_bounds = array<i64: 3, 32, 60>}, {pipeline_mode = #tpu.pipeline_mode<synchronous>, transform_indices = @transform_5, window_bounds = array<i64: 3, 480, 256>}, {pipeline_mode = #tpu.pipeline_mode<synchronous>, transform_indices = @transform_6, window_bounds = array<i64: 1, 256>}, {pipeline_mode = #tpu.pipeline_mode<synchronous>, transform_indices = @transform_7, window_bounds = array<i64: 256, 384>}, {pipeline_mode = #tpu.pipeline_mode<synchronous>, transform_indices = @transform_8, window_bounds = array<i64: 1, 384>}, {pipeline_mode = #tpu.pipeline_mode<synchronous>, transform_indices = @transform_9, window_bounds = array<i64: 3, 16, 32>}, {pipeline_mode = #tpu.pipeline_mode<synchronous>, transform_indices = @transform_10, window_bounds = array<i64: 3, 384, 192>}, {pipeline_mode = #tpu.pipeline_mode<synchronous>, transform_indices = @transform_11, window_bounds = array<i64: 1, 192>}, {pipeline_mode = #tpu.pipeline_mode<synchronous>, transform_indices = @transform_12, window_bounds = array<i64: 192, 256>}, {pipeline_mode = #tpu.pipeline_mode<synchronous>, transform_indices = @transform_13, window_bounds = array<i64: 1, 256>}, {transform_indices = @transform_14, window_bounds = array<i64: 16, 256>}]} {
    %c0 = arith.constant 0 : index
    %c0_0 = arith.constant 0 : index
    %0 = vector.load %arg1[%c0, %c0_0] : memref<128x128xbf16, #tpu.memory_space<vmem>>, vector<128x128xbf16>
    %cst = arith.constant 0.000000e+00 : f32
    %1 = vector.broadcast %cst : f32 to vector<60x480xf32>
    %c0_1 = arith.constant 0 : index
    %c0_2 = arith.constant 0 : index
    %c0_3 = arith.constant 0 : index
    %2 = vector.load %arg2[%c0_1, %c0_2, %c0_3] : memref<3x60x128xbf16, #tpu.memory_space<vmem>>, vector<1x60x128xbf16>
    %3 = vector.shape_cast %2 : vector<1x60x128xbf16> to vector<60x128xbf16>
    %cst_4 = arith.constant dense<0.000000e+00> : vector<60x128xf32>
    %4 = tpu.matmul %3, %0, %cst_4 {dimension_numbers = #tpu.dot_dimension_numbers<[1], [0], [0], [1], [0, 0, 1, 1], [], []>} : vector<60x128xbf16>, vector<128x128xbf16>, vector<60x128xf32> -> vector<60x128xf32>
    %5 = arith.truncf %4 : vector<60x128xf32> to vector<60x128xbf16>
    %c0_5 = arith.constant 0 : index
    %c0_6 = arith.constant 0 : index
    %c0_7 = arith.constant 0 : index
    %6 = vector.load %arg3[%c0_5, %c0_6, %c0_7] : memref<3x128x480xbf16, #tpu.memory_space<vmem>>, vector<1x128x480xbf16>
    %7 = vector.shape_cast %6 : vector<1x128x480xbf16> to vector<128x480xbf16>
    %cst_8 = arith.constant dense<0.000000e+00> : vector<60x480xf32>
    %8 = tpu.matmul %5, %7, %cst_8 {dimension_numbers = #tpu.dot_dimension_numbers<[1], [0], [0], [1], [0, 0, 1, 1], [], []>} : vector<60x128xbf16>, vector<128x480xbf16>, vector<60x480xf32> -> vector<60x480xf32>
    %9 = arith.addf %1, %8 : vector<60x480xf32>
    %c1 = arith.constant 1 : index
    %c0_9 = arith.constant 0 : index
    %c0_10 = arith.constant 0 : index
    %10 = vector.load %arg2[%c1, %c0_9, %c0_10] : memref<3x60x128xbf16, #tpu.memory_space<vmem>>, vector<1x60x128xbf16>
    %11 = vector.shape_cast %10 : vector<1x60x128xbf16> to vector<60x128xbf16>
    %cst_11 = arith.constant dense<0.000000e+00> : vector<60x128xf32>
    %12 = tpu.matmul %11, %0, %cst_11 {dimension_numbers = #tpu.dot_dimension_numbers<[1], [0], [0], [1], [0, 0, 1, 1], [], []>} : vector<60x128xbf16>, vector<128x128xbf16>, vector<60x128xf32> -> vector<60x128xf32>
    %13 = arith.truncf %12 : vector<60x128xf32> to vector<60x128xbf16>
    %c1_12 = arith.constant 1 : index
    %c0_13 = arith.constant 0 : index
    %c0_14 = arith.constant 0 : index
    %14 = vector.load %arg3[%c1_12, %c0_13, %c0_14] : memref<3x128x480xbf16, #tpu.memory_space<vmem>>, vector<1x128x480xbf16>
    %15 = vector.shape_cast %14 : vector<1x128x480xbf16> to vector<128x480xbf16>
    %cst_15 = arith.constant dense<0.000000e+00> : vector<60x480xf32>
    %16 = tpu.matmul %13, %15, %cst_15 {dimension_numbers = #tpu.dot_dimension_numbers<[1], [0], [0], [1], [0, 0, 1, 1], [], []>} : vector<60x128xbf16>, vector<128x480xbf16>, vector<60x480xf32> -> vector<60x480xf32>
    %17 = arith.addf %9, %16 : vector<60x480xf32>
    %c2 = arith.constant 2 : index
    %c0_16 = arith.constant 0 : index
    %c0_17 = arith.constant 0 : index
    %18 = vector.load %arg2[%c2, %c0_16, %c0_17] : memref<3x60x128xbf16, #tpu.memory_space<vmem>>, vector<1x60x128xbf16>
    %19 = vector.shape_cast %18 : vector<1x60x128xbf16> to vector<60x128xbf16>
    %cst_18 = arith.constant dense<0.000000e+00> : vector<60x128xf32>
    %20 = tpu.matmul %19, %0, %cst_18 {dimension_numbers = #tpu.dot_dimension_numbers<[1], [0], [0], [1], [0, 0, 1, 1], [], []>} : vector<60x128xbf16>, vector<128x128xbf16>, vector<60x128xf32> -> vector<60x128xf32>
    %21 = arith.truncf %20 : vector<60x128xf32> to vector<60x128xbf16>
    %c2_19 = arith.constant 2 : index
    %c0_20 = arith.constant 0 : index
    %c0_21 = arith.constant 0 : index
    %22 = vector.load %arg3[%c2_19, %c0_20, %c0_21] : memref<3x128x480xbf16, #tpu.memory_space<vmem>>, vector<1x128x480xbf16>
    %23 = vector.shape_cast %22 : vector<1x128x480xbf16> to vector<128x480xbf16>
    %cst_22 = arith.constant dense<0.000000e+00> : vector<60x480xf32>
    %24 = tpu.matmul %21, %23, %cst_22 {dimension_numbers = #tpu.dot_dimension_numbers<[1], [0], [0], [1], [0, 0, 1, 1], [], []>} : vector<60x128xbf16>, vector<128x480xbf16>, vector<60x480xf32> -> vector<60x480xf32>
    %25 = arith.addf %17, %24 : vector<60x480xf32>
    %c0_23 = arith.constant 0 : index
    %c0_24 = arith.constant 0 : index
    %26 = vector.load %arg4[%c0_23, %c0_24] : memref<1x480xf32, #tpu.memory_space<vmem>>, vector<1x480xf32>
    %27 = vector.broadcast %26 : vector<1x480xf32> to vector<60x480xf32>
    %28 = arith.addf %25, %27 : vector<60x480xf32>
    %cst_25 = arith.constant 0.000000e+00 : f32
    %29 = vector.broadcast %cst_25 : f32 to vector<60x480xf32>
    %30 = arith.maximumf %28, %29 : vector<60x480xf32>
    %31 = arith.truncf %30 : vector<60x480xf32> to vector<60x480xbf16>
    %cst_26 = arith.constant 0.000000e+00 : f32
    %32 = vector.broadcast %cst_26 : f32 to vector<32x256xf32>
    %c0_27 = arith.constant 0 : index
    %c0_28 = arith.constant 0 : index
    %c0_29 = arith.constant 0 : index
    %33 = vector.load %arg5[%c0_27, %c0_28, %c0_29] : memref<3x32x60xbf16, #tpu.memory_space<vmem>>, vector<1x32x60xbf16>
    %34 = vector.shape_cast %33 : vector<1x32x60xbf16> to vector<32x60xbf16>
    %cst_30 = arith.constant dense<0.000000e+00> : vector<32x480xf32>
    %35 = tpu.matmul %34, %31, %cst_30 {dimension_numbers = #tpu.dot_dimension_numbers<[1], [0], [0], [1], [0, 0, 1, 1], [], []>} : vector<32x60xbf16>, vector<60x480xbf16>, vector<32x480xf32> -> vector<32x480xf32>
    %36 = arith.truncf %35 : vector<32x480xf32> to vector<32x480xbf16>
    %c0_31 = arith.constant 0 : index
    %c0_32 = arith.constant 0 : index
    %c0_33 = arith.constant 0 : index
    %37 = vector.load %arg6[%c0_31, %c0_32, %c0_33] : memref<3x480x256xbf16, #tpu.memory_space<vmem>>, vector<1x480x256xbf16>
    %38 = vector.shape_cast %37 : vector<1x480x256xbf16> to vector<480x256xbf16>
    %cst_34 = arith.constant dense<0.000000e+00> : vector<32x256xf32>
    %39 = tpu.matmul %36, %38, %cst_34 {dimension_numbers = #tpu.dot_dimension_numbers<[1], [0], [0], [1], [0, 0, 1, 1], [], []>} : vector<32x480xbf16>, vector<480x256xbf16>, vector<32x256xf32> -> vector<32x256xf32>
    %40 = arith.addf %32, %39 : vector<32x256xf32>
    %c1_35 = arith.constant 1 : index
    %c0_36 = arith.constant 0 : index
    %c0_37 = arith.constant 0 : index
    %41 = vector.load %arg5[%c1_35, %c0_36, %c0_37] : memref<3x32x60xbf16, #tpu.memory_space<vmem>>, vector<1x32x60xbf16>
    %42 = vector.shape_cast %41 : vector<1x32x60xbf16> to vector<32x60xbf16>
    %cst_38 = arith.constant dense<0.000000e+00> : vector<32x480xf32>
    %43 = tpu.matmul %42, %31, %cst_38 {dimension_numbers = #tpu.dot_dimension_numbers<[1], [0], [0], [1], [0, 0, 1, 1], [], []>} : vector<32x60xbf16>, vector<60x480xbf16>, vector<32x480xf32> -> vector<32x480xf32>
    %44 = arith.truncf %43 : vector<32x480xf32> to vector<32x480xbf16>
    %c1_39 = arith.constant 1 : index
    %c0_40 = arith.constant 0 : index
    %c0_41 = arith.constant 0 : index
    %45 = vector.load %arg6[%c1_39, %c0_40, %c0_41] : memref<3x480x256xbf16, #tpu.memory_space<vmem>>, vector<1x480x256xbf16>
    %46 = vector.shape_cast %45 : vector<1x480x256xbf16> to vector<480x256xbf16>
    %cst_42 = arith.constant dense<0.000000e+00> : vector<32x256xf32>
    %47 = tpu.matmul %44, %46, %cst_42 {dimension_numbers = #tpu.dot_dimension_numbers<[1], [0], [0], [1], [0, 0, 1, 1], [], []>} : vector<32x480xbf16>, vector<480x256xbf16>, vector<32x256xf32> -> vector<32x256xf32>
    %48 = arith.addf %40, %47 : vector<32x256xf32>
    %c2_43 = arith.constant 2 : index
    %c0_44 = arith.constant 0 : index
    %c0_45 = arith.constant 0 : index
    %49 = vector.load %arg5[%c2_43, %c0_44, %c0_45] : memref<3x32x60xbf16, #tpu.memory_space<vmem>>, vector<1x32x60xbf16>
    %50 = vector.shape_cast %49 : vector<1x32x60xbf16> to vector<32x60xbf16>
    %cst_46 = arith.constant dense<0.000000e+00> : vector<32x480xf32>
    %51 = tpu.matmul %50, %31, %cst_46 {dimension_numbers = #tpu.dot_dimension_numbers<[1], [0], [0], [1], [0, 0, 1, 1], [], []>} : vector<32x60xbf16>, vector<60x480xbf16>, vector<32x480xf32> -> vector<32x480xf32>
    %52 = arith.truncf %51 : vector<32x480xf32> to vector<32x480xbf16>
    %c2_47 = arith.constant 2 : index
    %c0_48 = arith.constant 0 : index
    %c0_49 = arith.constant 0 : index
    %53 = vector.load %arg6[%c2_47, %c0_48, %c0_49] : memref<3x480x256xbf16, #tpu.memory_space<vmem>>, vector<1x480x256xbf16>
    %54 = vector.shape_cast %53 : vector<1x480x256xbf16> to vector<480x256xbf16>
    %cst_50 = arith.constant dense<0.000000e+00> : vector<32x256xf32>
    %55 = tpu.matmul %52, %54, %cst_50 {dimension_numbers = #tpu.dot_dimension_numbers<[1], [0], [0], [1], [0, 0, 1, 1], [], []>} : vector<32x480xbf16>, vector<480x256xbf16>, vector<32x256xf32> -> vector<32x256xf32>
    %56 = arith.addf %48, %55 : vector<32x256xf32>
    %c0_51 = arith.constant 0 : index
    %c0_52 = arith.constant 0 : index
    %57 = vector.load %arg7[%c0_51, %c0_52] : memref<1x256xf32, #tpu.memory_space<vmem>>, vector<1x256xf32>
    %58 = vector.broadcast %57 : vector<1x256xf32> to vector<32x256xf32>
    %59 = arith.addf %56, %58 : vector<32x256xf32>
    %cst_53 = arith.constant 0.000000e+00 : f32
    %60 = vector.broadcast %cst_53 : f32 to vector<32x256xf32>
    %61 = arith.maximumf %59, %60 : vector<32x256xf32>
    %62 = arith.truncf %61 : vector<32x256xf32> to vector<32x256xbf16>
    %c0_54 = arith.constant 0 : index
    %c0_55 = arith.constant 0 : index
    %63 = vector.load %arg8[%c0_54, %c0_55] : memref<256x384xbf16, #tpu.memory_space<vmem>>, vector<256x384xbf16>
    %cst_56 = arith.constant dense<0.000000e+00> : vector<32x384xf32>
    %64 = tpu.matmul %62, %63, %cst_56 {dimension_numbers = #tpu.dot_dimension_numbers<[1], [0], [0], [1], [0, 0, 1, 1], [], []>} : vector<32x256xbf16>, vector<256x384xbf16>, vector<32x384xf32> -> vector<32x384xf32>
    %c0_57 = arith.constant 0 : index
    %c0_58 = arith.constant 0 : index
    %65 = vector.load %arg9[%c0_57, %c0_58] : memref<1x384xf32, #tpu.memory_space<vmem>>, vector<1x384xf32>
    %66 = vector.broadcast %65 : vector<1x384xf32> to vector<32x384xf32>
    %67 = arith.addf %64, %66 : vector<32x384xf32>
    %cst_59 = arith.constant 0.000000e+00 : f32
    %68 = vector.broadcast %cst_59 : f32 to vector<32x384xf32>
    %69 = arith.maximumf %67, %68 : vector<32x384xf32>
    %70 = arith.truncf %69 : vector<32x384xf32> to vector<32x384xbf16>
    %cst_60 = arith.constant 0.000000e+00 : f32
    %71 = vector.broadcast %cst_60 : f32 to vector<16x192xf32>
    %c0_61 = arith.constant 0 : index
    %c0_62 = arith.constant 0 : index
    %c0_63 = arith.constant 0 : index
    %72 = vector.load %arg10[%c0_61, %c0_62, %c0_63] : memref<3x16x32xbf16, #tpu.memory_space<vmem>>, vector<1x16x32xbf16>
    %73 = vector.shape_cast %72 : vector<1x16x32xbf16> to vector<16x32xbf16>
    %cst_64 = arith.constant dense<0.000000e+00> : vector<16x384xf32>
    %74 = tpu.matmul %73, %70, %cst_64 {dimension_numbers = #tpu.dot_dimension_numbers<[1], [0], [0], [1], [0, 0, 1, 1], [], []>} : vector<16x32xbf16>, vector<32x384xbf16>, vector<16x384xf32> -> vector<16x384xf32>
    %75 = arith.truncf %74 : vector<16x384xf32> to vector<16x384xbf16>
    %c0_65 = arith.constant 0 : index
    %c0_66 = arith.constant 0 : index
    %c0_67 = arith.constant 0 : index
    %76 = vector.load %arg11[%c0_65, %c0_66, %c0_67] : memref<3x384x192xbf16, #tpu.memory_space<vmem>>, vector<1x384x192xbf16>
    %77 = vector.shape_cast %76 : vector<1x384x192xbf16> to vector<384x192xbf16>
    %cst_68 = arith.constant dense<0.000000e+00> : vector<16x192xf32>
    %78 = tpu.matmul %75, %77, %cst_68 {dimension_numbers = #tpu.dot_dimension_numbers<[1], [0], [0], [1], [0, 0, 1, 1], [], []>} : vector<16x384xbf16>, vector<384x192xbf16>, vector<16x192xf32> -> vector<16x192xf32>
    %79 = arith.addf %71, %78 : vector<16x192xf32>
    %c1_69 = arith.constant 1 : index
    %c0_70 = arith.constant 0 : index
    %c0_71 = arith.constant 0 : index
    %80 = vector.load %arg10[%c1_69, %c0_70, %c0_71] : memref<3x16x32xbf16, #tpu.memory_space<vmem>>, vector<1x16x32xbf16>
    %81 = vector.shape_cast %80 : vector<1x16x32xbf16> to vector<16x32xbf16>
    %cst_72 = arith.constant dense<0.000000e+00> : vector<16x384xf32>
    %82 = tpu.matmul %81, %70, %cst_72 {dimension_numbers = #tpu.dot_dimension_numbers<[1], [0], [0], [1], [0, 0, 1, 1], [], []>} : vector<16x32xbf16>, vector<32x384xbf16>, vector<16x384xf32> -> vector<16x384xf32>
    %83 = arith.truncf %82 : vector<16x384xf32> to vector<16x384xbf16>
    %c1_73 = arith.constant 1 : index
    %c0_74 = arith.constant 0 : index
    %c0_75 = arith.constant 0 : index
    %84 = vector.load %arg11[%c1_73, %c0_74, %c0_75] : memref<3x384x192xbf16, #tpu.memory_space<vmem>>, vector<1x384x192xbf16>
    %85 = vector.shape_cast %84 : vector<1x384x192xbf16> to vector<384x192xbf16>
    %cst_76 = arith.constant dense<0.000000e+00> : vector<16x192xf32>
    %86 = tpu.matmul %83, %85, %cst_76 {dimension_numbers = #tpu.dot_dimension_numbers<[1], [0], [0], [1], [0, 0, 1, 1], [], []>} : vector<16x384xbf16>, vector<384x192xbf16>, vector<16x192xf32> -> vector<16x192xf32>
    %87 = arith.addf %79, %86 : vector<16x192xf32>
    %c2_77 = arith.constant 2 : index
    %c0_78 = arith.constant 0 : index
    %c0_79 = arith.constant 0 : index
    %88 = vector.load %arg10[%c2_77, %c0_78, %c0_79] : memref<3x16x32xbf16, #tpu.memory_space<vmem>>, vector<1x16x32xbf16>
    %89 = vector.shape_cast %88 : vector<1x16x32xbf16> to vector<16x32xbf16>
    %cst_80 = arith.constant dense<0.000000e+00> : vector<16x384xf32>
    %90 = tpu.matmul %89, %70, %cst_80 {dimension_numbers = #tpu.dot_dimension_numbers<[1], [0], [0], [1], [0, 0, 1, 1], [], []>} : vector<16x32xbf16>, vector<32x384xbf16>, vector<16x384xf32> -> vector<16x384xf32>
    %91 = arith.truncf %90 : vector<16x384xf32> to vector<16x384xbf16>
    %c2_81 = arith.constant 2 : index
    %c0_82 = arith.constant 0 : index
    %c0_83 = arith.constant 0 : index
    %92 = vector.load %arg11[%c2_81, %c0_82, %c0_83] : memref<3x384x192xbf16, #tpu.memory_space<vmem>>, vector<1x384x192xbf16>
    %93 = vector.shape_cast %92 : vector<1x384x192xbf16> to vector<384x192xbf16>
    %cst_84 = arith.constant dense<0.000000e+00> : vector<16x192xf32>
    %94 = tpu.matmul %91, %93, %cst_84 {dimension_numbers = #tpu.dot_dimension_numbers<[1], [0], [0], [1], [0, 0, 1, 1], [], []>} : vector<16x384xbf16>, vector<384x192xbf16>, vector<16x192xf32> -> vector<16x192xf32>
    %95 = arith.addf %87, %94 : vector<16x192xf32>
    %c0_85 = arith.constant 0 : index
    %c0_86 = arith.constant 0 : index
    %96 = vector.load %arg12[%c0_85, %c0_86] : memref<1x192xf32, #tpu.memory_space<vmem>>, vector<1x192xf32>
    %97 = vector.broadcast %96 : vector<1x192xf32> to vector<16x192xf32>
    %98 = arith.addf %95, %97 : vector<16x192xf32>
    %cst_87 = arith.constant 0.000000e+00 : f32
    %99 = vector.broadcast %cst_87 : f32 to vector<16x192xf32>
    %100 = arith.maximumf %98, %99 : vector<16x192xf32>
    %101 = arith.truncf %100 : vector<16x192xf32> to vector<16x192xbf16>
    %c0_88 = arith.constant 0 : index
    %c0_89 = arith.constant 0 : index
    %102 = vector.load %arg13[%c0_88, %c0_89] : memref<192x256xbf16, #tpu.memory_space<vmem>>, vector<192x256xbf16>
    %cst_90 = arith.constant dense<0.000000e+00> : vector<16x256xf32>
    %103 = tpu.matmul %101, %102, %cst_90 {dimension_numbers = #tpu.dot_dimension_numbers<[1], [0], [0], [1], [0, 0, 1, 1], [], []>} : vector<16x192xbf16>, vector<192x256xbf16>, vector<16x256xf32> -> vector<16x256xf32>
    %c0_91 = arith.constant 0 : index
    %c0_92 = arith.constant 0 : index
    %104 = vector.load %arg14[%c0_91, %c0_92] : memref<1x256xf32, #tpu.memory_space<vmem>>, vector<1x256xf32>
    %105 = vector.broadcast %104 : vector<1x256xf32> to vector<16x256xf32>
    %106 = arith.addf %103, %105 : vector<16x256xf32>
    %cst_93 = arith.constant 0.000000e+00 : f32
    %107 = vector.broadcast %cst_93 : f32 to vector<16x256xf32>
    %108 = arith.maximumf %106, %107 : vector<16x256xf32>
    %c0_94 = arith.constant 0 : index
    %c0_95 = arith.constant 0 : index
    %109 = vector.load %arg15[%c0_94, %c0_95] : memref<16x256xf32, #tpu.memory_space<vmem>>, vector<16x256xf32>
    tpu.vector_store %arg15[%c0_94, %c0_95], %108 {strides = array<i32>} : memref<16x256xf32, #tpu.memory_space<vmem>>, vector<16x256xf32>,
    return
  }
  func.func @transform_0(%arg0: i32) -> (i32, i32) {
    %c0_i32 = arith.constant 0 : i32
    %c0_i32_0 = arith.constant 0 : i32
    return %arg0, %c0_i32 : i32, i32
  }
  func.func @transform_1(%arg0: i32) -> (i32, i32, i32) {
    %c0_i32 = arith.constant 0 : i32
    %c0_i32_0 = arith.constant 0 : i32
    %c0_i32_1 = arith.constant 0 : i32
    %c0_i32_2 = arith.constant 0 : i32
    return %c0_i32, %c0_i32_0, %c0_i32_1 : i32, i32, i32
  }
  func.func @transform_2(%arg0: i32) -> (i32, i32, i32) {
    %c0_i32 = arith.constant 0 : i32
    %c0_i32_0 = arith.constant 0 : i32
    %c0_i32_1 = arith.constant 0 : i32
    %c0_i32_2 = arith.constant 0 : i32
    return %c0_i32, %c0_i32_0, %c0_i32_1 : i32, i32, i32
  }
  func.func @transform_3(%arg0: i32) -> (i32, i32) {
    %c0_i32 = arith.constant 0 : i32
    %c0_i32_0 = arith.constant 0 : i32
    %c0_i32_1 = arith.constant 0 : i32
    return %c0_i32, %c0_i32_0 : i32, i32
  }
  func.func @transform_4(%arg0: i32) -> (i32, i32, i32) {
    %c0_i32 = arith.constant 0 : i32
    %c0_i32_0 = arith.constant 0 : i32
    %c0_i32_1 = arith.constant 0 : i32
    %c0_i32_2 = arith.constant 0 : i32
    return %c0_i32, %c0_i32_0, %c0_i32_1 : i32, i32, i32
  }
  func.func @transform_5(%arg0: i32) -> (i32, i32, i32) {
    %c0_i32 = arith.constant 0 : i32
    %c0_i32_0 = arith.constant 0 : i32
    %c0_i32_1 = arith.constant 0 : i32
    %c0_i32_2 = arith.constant 0 : i32
    return %c0_i32, %c0_i32_0, %c0_i32_1 : i32, i32, i32
  }
  func.func @transform_6(%arg0: i32) -> (i32, i32) {
    %c0_i32 = arith.constant 0 : i32
    %c0_i32_0 = arith.constant 0 : i32
    %c0_i32_1 = arith.constant 0 : i32
    return %c0_i32, %c0_i32_0 : i32, i32
  }
  func.func @transform_7(%arg0: i32) -> (i32, i32) {
    %c0_i32 = arith.constant 0 : i32
    %c0_i32_0 = arith.constant 0 : i32
    %c0_i32_1 = arith.constant 0 : i32
    return %c0_i32, %c0_i32_0 : i32, i32
  }
  func.func @transform_8(%arg0: i32) -> (i32, i32) {
    %c0_i32 = arith.constant 0 : i32
    %c0_i32_0 = arith.constant 0 : i32
    %c0_i32_1 = arith.constant 0 : i32
    return %c0_i32, %c0_i32_0 : i32, i32
  }
  func.func @transform_9(%arg0: i32) -> (i32, i32, i32) {
    %c0_i32 = arith.constant 0 : i32
    %c0_i32_0 = arith.constant 0 : i32
    %c0_i32_1 = arith.constant 0 : i32
    %c0_i32_2 = arith.constant 0 : i32
    return %c0_i32, %c0_i32_0, %c0_i32_1 : i32, i32, i32
  }
  func.func @transform_10(%arg0: i32) -> (i32, i32, i32) {
    %c0_i32 = arith.constant 0 : i32
    %c0_i32_0 = arith.constant 0 : i32
    %c0_i32_1 = arith.constant 0 : i32
    %c0_i32_2 = arith.constant 0 : i32
    return %c0_i32, %c0_i32_0, %c0_i32_1 : i32, i32, i32
  }
  func.func @transform_11(%arg0: i32) -> (i32, i32) {
    %c0_i32 = arith.constant 0 : i32
    %c0_i32_0 = arith.constant 0 : i32
    %c0_i32_1 = arith.constant 0 : i32
    return %c0_i32, %c0_i32_0 : i32, i32
  }
  func.func @transform_12(%arg0: i32) -> (i32, i32) {
    %c0_i32 = arith.constant 0 : i32
    %c0_i32_0 = arith.constant 0 : i32
    %c0_i32_1 = arith.constant 0 : i32
    return %c0_i32, %c0_i32_0 : i32, i32
  }
  func.func @transform_13(%arg0: i32) -> (i32, i32) {
    %c0_i32 = arith.constant 0 : i32
    %c0_i32_0 = arith.constant 0 : i32
    %c0_i32_1 = arith.constant 0 : i32
    return %c0_i32, %c0_i32_0 : i32, i32
  }
  func.func @transform_14(%arg0: i32) -> (i32, i32) {
    %c0_i32 = arith.constant 0 : i32
    %c0_i32_0 = arith.constant 0 : i32
    return %arg0, %c0_i32 : i32, i32
  }
}

</mosaic_0001>

<bundles_post_ra>
// kernel: tile.28
= control target key start
LH: loop header
LB: loop body
LE: loop exit
PB: predicated region body
PF: predicated region fallthrough
CT: control target
= control target key end

     0   :  { %s28_s0 = inlined_call_operand.vmem [shape: f32[32], index: 0, kind: input, shape index: {}]   ;;  %s29_s1 = inlined_call_operand.vmem [shape: f32[15,32], index: 1, kind: output, shape index: {}]  }
   0x1   :  { %v4_v0 = vld [vmem:[%s28_s0] ss:$0 sm:$0xff] }
   0x2   :  { %5 = vst [vmem:[%s29_s1] sm:$0xff] %v4_v0  ;;  %8 = vst [vmem:[%s29_s1 + $0x8] sm:$0xff] %v4_v0 }

// kernel: tile.29
= control target key start
LH: loop header
LB: loop body
LE: loop exit
PB: predicated region body
PF: predicated region fallthrough
CT: control target
= control target key end

     0   :  { %s57_s8 = smov 96   ;;  %vm3_vm0 = vcmask 261120   ;;  %s59_s15 = smov 64   ;;  %vm9_vm1 = vcmask 1048320   ;;  %vm15_vm2 = vcmask 785920   ;;  %vm21_vm3 = vcmask 523520   ;;  %s94_s0 = inlined_call_operand.vmem [shape: f32[15,32], index: 0, kind: input, shape index: {}]   ;;  %s95_s1 = inlined_call_operand.vmem [shape: f32[1,480], index: 1, kind: output, shape index: {}]  }
   0x1   :  { %v48_v0 = vld [vmem:[%s94_s0 + $0x3] ss:$4 sm:$0x7]   ;;  %v49_v1 = vld [vmem:[%s94_s0 + $0x2] ss:$4 sm:$0xf]  }
   0x2   :  { %7 = vrot.lane.b32.xlu0 %v48_v0, %s57_s8  ;;  %v50_v2 = vld [vmem:[%s94_s0 + $0x1] ss:$4 sm:$0xf]   ;;  %v2_v3 = vld [vmem:[%s94_s0] ss:$4 sm:$0xf]  }
   0x3   :  { %s58_s0 = smov 32   ;;  %4 = vst.msk [vmem:[#allocation0] ss:$8 sm:$0xf] %vm3_vm0, %v2_v3  }
   0x4   :  { %19 = vrot.lane.b32.xlu1 %v50_v2, %s58_s0 }
   0x6   :  { %13 = vrot.lane.b32.xlu0 %v49_v1, %s59_s15 }
  0x74   :  { %v8_v4 = vpop.permute.xlu0 %7  }
  0x75   :  { %10 = vst.msk [vmem:[#allocation0] ss:$8 sm:$0x7] %vm9_vm1, %v8_v4  }
  0x76   :  { %v20_v5 = vpop.permute.xlu1 %19  }
  0x78   :  { %v14_v6 = vpop.permute.xlu0 %13  }
  0x79   :  { %16 = vst.msk [vmem:[#allocation0] ss:$8 sm:$0xf] %vm15_vm2, %v14_v6  }
  0x7a   :  { %22 = vst.msk [vmem:[#allocation0] ss:$8 sm:$0xf] %vm21_vm3, %v20_v5  }
  0x81   :  { %v26_v7 = vld [vmem:[#allocation0] sm:$0x1]  ;;  %v30_v8 = vld [vmem:[#allocation0 + $0x8] sm:$0x1]  ;;  %v35_v9 = vld [vmem:[#allocation0 + $0x10] sm:$0x1] }
  0x82   :  { %28 = vst [vmem:[%s95_s1] sm:$0x1] %v26_v7  ;;  %51 = vst [vmem:[%s95_s1 + $0x1] sm:$0x1] %v30_v8  ;;  %v41_v10 = vld [vmem:[#allocation0 + $0x18] sm:$0x1] }
  0x83   :  { %52 = vst [vmem:[%s95_s1 + $0x2] sm:$0x1] %v35_v9  ;;  %53 = vst [vmem:[%s95_s1 + $0x3] sm:$0x1] %v41_v10 }

// kernel: tile.38
= control target key start
LH: loop header
LB: loop body
LE: loop exit
PB: predicated region body
PF: predicated region fallthrough
CT: control target
= control target key end

     0   :  { %s22_s0 = inlined_call_operand.vmem [shape: f32[48], index: 0, kind: input, shape index: {}]   ;;  %s23_s1 = inlined_call_operand.vmem [shape: f32[8,48], index: 1, kind: output, shape index: {}]  }
   0x1   :  { %v4_v0 = vld [vmem:[%s22_s0] ss:$0 sm:$0xff] }
   0x2   :  { %5 = vst [vmem:[%s23_s1] sm:$0xff] %v4_v0 }

// kernel: tile.39
= control target key start
LH: loop header
LB: loop body
LE: loop exit
PB: predicated region body
PF: predicated region fallthrough
CT: control target
= control target key end

     0   :  { %vm9_vm0 = vcmask 130048   ;;  %vm13_vm1 = vcmask 261120   ;;  %s102_s14 = smov 112   ;;  %s103_s15 = smov 80   ;;  %vm3_vm2 = vcmask 392192   ;;  %vm16_vm3 = vcmask 1048448   ;;  %s162_s0 = inlined_call_operand.vmem [shape: f32[8,48], index: 0, kind: input, shape index: {}]   ;;  %s163_s1 = inlined_call_operand.vmem [shape: f32[1,384], index: 1, kind: output, shape index: {}]  }
   0x1   :  { %v84_v0 = vld [vmem:[%s162_s0 + $0x5] sm:$0x1]   ;;  %v88_v3 = vld [vmem:[%s162_s0 + $0x7] sm:$0x1]   ;;  %v86_v4 = vld [vmem:[%s162_s0 + $0x2] sm:$0x1]  }
   0x2   :  { %v85_v1 = vld [vmem:[%s162_s0 + $0x5] sm:$0x1]   ;;  %34 = vrot.lane.b32.xlu1 %v88_v3, %s103_s15  ;;  %v87_v5 = vld [vmem:[%s162_s0 + $0x2] sm:$0x1]   ;;  %v89_v7 = vld [vmem:[%s162_s0 + $0x4] sm:$0x1]  }
   0x3   :  { %v10_v2 = vsel %vm9_vm0, %v85_v1, %v84_v0  ;;  %v24_v6 = vsel %vm13_vm1, %v87_v5, %v86_v4  ;;  %v2_v8 = vld [vmem:[%s162_s0] sm:$0x1]   ;;  %s104_s22 = smov 96   ;;  %s105_s23 = smov 64   ;;  %v90_v9 = vld [vmem:[%s162_s0 + $0x1] sm:$0x1]  }
   0x4   :  { %11 = vrot.lane.b32.xlu0 %v10_v2, %s102_s14  ;;  %4 = vst.msk [vmem:[#allocation0] sm:$0x1] %vm3_vm2, %v2_v8   ;;  %v91_v10 = vld [vmem:[%s162_s0 + $0x6] sm:$0x1]   ;;  %s106_s28 = smov 48   ;;  %s107_s29 = smov 32  }
   0x5   :  { %v92_v11 = vld [vmem:[%s162_s0 + $0x3] sm:$0x1]   ;;  %s108_s0 = smov 16   ;;  %vm36_vm4 = vcmask 1048192   ;;  %vm30_vm5 = vcmask 1048320   ;;  %vm43_vm6 = vcmask 916992  }
   0x6   :  { %41 = vrot.lane.b32.xlu1 %v89_v7, %s105_s23  ;;  %vm50_vm7 = vcmask 785792   ;;  %vm56_vm8 = vcmask 654592   ;;  %vm63_vm9 = vcmask 523392  }
   0x8   :  { %25 = vrot.lane.b32.xlu0 %v24_v6, %s104_s22 }
   0xa   :  { %54 = vrot.lane.b32.xlu1 %v91_v10, %s107_s29 }
   0xc   :  { %48 = vrot.lane.b32.xlu0 %v90_v9, %s106_s28 }
  0x10   :  { %61 = vrot.lane.b32.xlu0 %v92_v11, %s108_s0 }
  0x74   :  { %v35_v13 = vpop.permute.xlu1 %34  }
  0x76   :  { %v12_v12 = vpop.permute.xlu0 %11  }
  0x77   :  { %15 = vst.msk [vmem:[#allocation0 + $0x10] sm:$0x1] %vm13_vm1, %v12_v12  }
  0x78   :  { %18 = vst.msk [vmem:[#allocation0 + $0x8] sm:$0x1] %vm16_vm3, %v12_v12   ;;  %v42_v15 = vpop.permute.xlu1 %41  }
  0x79   :  { %38 = vst.msk [vmem:[#allocation0 + $0x10] sm:$0x1] %vm36_vm4, %v35_v13  }
  0x7a   :  { %v26_v14 = vpop.permute.xlu0 %25  }
  0x7b   :  { %29 = vst.msk [vmem:[#allocation0 + $0x8] sm:$0x1] %vm9_vm0, %v26_v14  }
  0x7c   :  { %31 = vst.msk [vmem:[#allocation0] sm:$0x1] %vm30_vm5, %v26_v14   ;;  %v55_v17 = vpop.permute.xlu1 %54  }
  0x7d   :  { %45 = vst.msk [vmem:[#allocation0 + $0x8] sm:$0x1] %vm43_vm6, %v42_v15  }
  0x7e   :  { %v49_v16 = vpop.permute.xlu0 %48   ;;  %58 = vst.msk [vmem:[#allocation0 + $0x10] sm:$0x1] %vm56_vm8, %v55_v17  }
  0x7f   :  { %51 = vst.msk [vmem:[#allocation0] sm:$0x1] %vm50_vm7, %v49_v16  }
  0x82   :  { %v62_v18 = vpop.permute.xlu0 %61  }
  0x83   :  { %65 = vst.msk [vmem:[#allocation0 + $0x8] sm:$0x1] %vm63_vm9, %v62_v18  }
  0x85   :  { %v78_v20 = vld [vmem:[#allocation0 + $0x10] sm:$0x1] }
  0x86   :  { %v69_v19 = vld [vmem:[#allocation0] sm:$0x1]  ;;  %94 = vst [vmem:[%s163_s1 + $0x2] sm:$0x1] %v78_v20 }
  0x87   :  { %71 = vst [vmem:[%s163_s1] sm:$0x1] %v69_v19 }
  0x8a   :  { %v73_v21 = vld [vmem:[#allocation0 + $0x8] sm:$0x1] }
  0x8b   :  { %93 = vst [vmem:[%s163_s1 + $0x1] sm:$0x1] %v73_v21 }

// kernel: tile.33
= control target key start
LH: loop header
LB: loop body
LE: loop exit
PB: predicated region body
PF: predicated region fallthrough
CT: control target
= control target key end

     0   :  { %s22_s0 = inlined_call_operand.vmem [shape: f32[32], index: 0, kind: input, shape index: {}]   ;;  %s23_s1 = inlined_call_operand.vmem [shape: f32[8,32], index: 1, kind: output, shape index: {}]  }
   0x1   :  { %v4_v0 = vld [vmem:[%s22_s0] ss:$0 sm:$0xff] }
   0x2   :  { %5 = vst [vmem:[%s23_s1] sm:$0xff] %v4_v0 }

// kernel: tile.34
= control target key start
LH: loop header
LB: loop body
LE: loop exit
PB: predicated region body
PF: predicated region fallthrough
CT: control target
= control target key end

     0   :  { %s7_s6 = smov 3  ;;  %s14_s9 = smov 3  ;;  %vm4_vm0 = vcmask 261120   ;;  %vm11_vm1 = vcmask 1048320   ;;  %vm18_vm2 = vcmask 785920   ;;  %vm25_vm3 = vcmask 523520   ;;  %s76_s0 = inlined_call_operand.vmem [shape: f32[8,32], index: 0, kind: input, shape index: {}]   ;;  %s77_s1 = inlined_call_operand.vmem [shape: f32[1,256], index: 1, kind: output, shape index: {}]  }
   0x1   :  { %v38_v0 = vld [vmem:[%s76_s0 + $0x3] ss:$4 sm:%s7_s6]   ;;  %s45_s10 = smov 96   ;;  %s21_s11 = smov 3  ;;  %v39_v1 = vld [vmem:[%s76_s0 + $0x2] ss:$4 sm:%s14_s9]  }
   0x2   :  { %9 = vrot.lane.b32.xlu0 %v38_v0, %s45_s10  ;;  %v40_v2 = vld [vmem:[%s76_s0 + $0x1] ss:$4 sm:%s21_s11]   ;;  %s2_s16 = smov 3  ;;  %s46_s17 = smov 32  }
   0x3   :  { %23 = vrot.lane.b32.xlu1 %v40_v2, %s46_s17  ;;  %v3_v3 = vld [vmem:[%s76_s0] ss:$4 sm:%s2_s16]   ;;  %s47_s0 = smov 64  }
   0x4   :  { %5 = vst.msk [vmem:[#allocation0] ss:$8 sm:$0x3] %vm4_vm0, %v3_v3  }
   0x6   :  { %16 = vrot.lane.b32.xlu0 %v39_v1, %s47_s0 }
  0x74   :  { %v10_v4 = vpop.permute.xlu0 %9  }
  0x75   :  { %12 = vst.msk [vmem:[#allocation0] ss:$8 sm:$0x3] %vm11_vm1, %v10_v4   ;;  %v24_v5 = vpop.permute.xlu1 %23  }
  0x78   :  { %v17_v6 = vpop.permute.xlu0 %16  }
  0x79   :  { %19 = vst.msk [vmem:[#allocation0] ss:$8 sm:$0x3] %vm18_vm2, %v17_v6  }
  0x7a   :  { %26 = vst.msk [vmem:[#allocation0] ss:$8 sm:$0x3] %vm25_vm3, %v24_v5  }
  0x81   :  { %v30_v7 = vld [vmem:[#allocation0] sm:$0x1]  ;;  %v34_v8 = vld [vmem:[#allocation0 + $0x8] sm:$0x1] }
  0x82   :  { %32 = vst [vmem:[%s77_s1] sm:$0x1] %v30_v7  ;;  %41 = vst [vmem:[%s77_s1 + $0x1] sm:$0x1] %v34_v8 }

// kernel: tile.43
= control target key start
LH: loop header
LB: loop body
LE: loop exit
PB: predicated region body
PF: predicated region fallthrough
CT: control target
= control target key end

     0   :  { %s22_s0 = inlined_call_operand.vmem [shape: f32[48], index: 0, kind: input, shape index: {}]   ;;  %s23_s1 = inlined_call_operand.vmem [shape: f32[4,48], index: 1, kind: output, shape index: {}]  }
   0x1   :  { %v4_v0 = vld [vmem:[%s22_s0] ss:$0 sm:$0xff] }
   0x2   :  { %5 = vst [vmem:[%s23_s1] sm:$0xf] %v4_v0 }

// kernel: tile.44
= control target key start
LH: loop header
LB: loop body
LE: loop exit
PB: predicated region body
PF: predicated region fallthrough
CT: control target
= control target key end

     0   :  { %vm13_vm0 = vcmask 261120   ;;  %vm7_vm1 = vcmask 392192   ;;  %s51_s8 = smov 96   ;;  %s52_s9 = smov 48   ;;  %vm17_vm2 = vcmask 130048   ;;  %vm20_vm3 = vcmask 1048320   ;;  %s72_s0 = inlined_call_operand.vmem [shape: f32[4,48], index: 0, kind: input, shape index: {}]   ;;  %s73_s1 = inlined_call_operand.vmem [shape: f32[1,192], index: 1, kind: output, shape index: {}]  }
   0x1   :  { %v4_v0 = vld [vmem:[%s72_s0] sm:$0xf]  ;;  %s50_s0 = smov 16   ;;  %vm32_vm4 = vcmask 523392   ;;  %vm26_vm5 = vcmask 785792  }
   0x2   :  { %5 = vst [vmem:[#allocation1] sm:$0xf] %v4_v0 }
   0x9   :  { %v10_v1 = vld [vmem:[#allocation1 + $0x2] sm:$0x1]   ;;  %v29_v3 = vld [vmem:[#allocation1 + $0x3] sm:$0x1]   ;;  %v6_v5 = vld [vmem:[#allocation1] sm:$0x1]  }
   0xa   :  { %v12_v2 = vld [vmem:[#allocation1 + $0x2] sm:$0x1]   ;;  %30 = vrot.lane.b32.xlu1 %v29_v3, %s50_s0  ;;  %8 = vst.msk [vmem:[#allocation0] sm:$0x1] %vm7_vm1, %v6_v5   ;;  %v23_v6 = vld [vmem:[#allocation1 + $0x1] sm:$0x1]  }
   0xb   :  { %v14_v4 = vsel %vm13_vm0, %v12_v2, %v10_v1 }
   0xc   :  { %15 = vrot.lane.b32.xlu0 %v14_v4, %s51_s8 }
  0x10   :  { %24 = vrot.lane.b32.xlu0 %v23_v6, %s52_s9 }
  0x7c   :  { %v31_v7 = vpop.permute.xlu1 %30  }
  0x7e   :  { %v16_v8 = vpop.permute.xlu0 %15  }
  0x7f   :  { %19 = vst.msk [vmem:[#allocation0 + $0x8] sm:$0x1] %vm17_vm2, %v16_v8  }
  0x80   :  { %21 = vst.msk [vmem:[#allocation0] sm:$0x1] %vm20_vm3, %v16_v8  }
  0x81   :  { %34 = vst.msk [vmem:[#allocation0 + $0x8] sm:$0x1] %vm32_vm4, %v31_v7  }
  0x82   :  { %v25_v9 = vpop.permute.xlu0 %24  }
  0x83   :  { %27 = vst.msk [vmem:[#allocation0] sm:$0x1] %vm26_vm5, %v25_v9  }
  0x88   :  { %v42_v10 = vld [vmem:[#allocation0 + $0x8] sm:$0x1] }
  0x89   :  { %46 = vst [vmem:[%s73_s1 + $0x1] sm:$0x1] %v42_v10 }
  0x8a   :  { %v38_v11 = vld [vmem:[#allocation0] sm:$0x1] }
  0x8b   :  { %40 = vst [vmem:[%s73_s1] sm:$0x1] %v38_v11 }

// kernel: tile.48
= control target key start
LH: loop header
LB: loop body
LE: loop exit
PB: predicated region body
PF: predicated region fallthrough
CT: control target
= control target key end

     0   :  { %s22_s0 = inlined_call_operand.vmem [shape: f32[64], index: 0, kind: input, shape index: {}]   ;;  %s23_s1 = inlined_call_operand.vmem [shape: f32[4,64], index: 1, kind: output, shape index: {}]  }
   0x1   :  { %v4_v0 = vld [vmem:[%s22_s0] ss:$0 sm:$0xff] }
   0x2   :  { %5 = vst [vmem:[%s23_s1] sm:$0xf] %v4_v0 }

// kernel: tile.49
= control target key start
LH: loop header
LB: loop body
LE: loop exit
PB: predicated region body
PF: predicated region fallthrough
CT: control target
= control target key end

     0   :  { %s6_s8 = smov 3  ;;  %vm8_vm0 = vcmask 523264   ;;  %s30_s9 = smov 64   ;;  %vm15_vm1 = vcmask 1048064   ;;  %s50_s0 = inlined_call_operand.vmem [shape: f32[4,64], index: 0, kind: input, shape index: {}]   ;;  %s51_s1 = inlined_call_operand.vmem [shape: f32[1,256], index: 1, kind: output, shape index: {}]  }
   0x1   :  { %v4_v0 = vld [vmem:[%s50_s0] sm:$0xf]  ;;  %s11_s0 = smov 3 }
   0x2   :  { %5 = vst [vmem:[#allocation1] sm:$0xf] %v4_v0 }
   0x9   :  { %v12_v1 = vld [vmem:[#allocation1 + $0x1] ss:$2 sm:%s11_s0]   ;;  %v7_v2 = vld [vmem:[#allocation1] ss:$2 sm:%s6_s8]  }
   0xa   :  { %13 = vrot.lane.b32.xlu0 %v12_v1, %s30_s9  ;;  %9 = vst.msk [vmem:[#allocation0] ss:$8 sm:$0x3] %vm8_vm0, %v7_v2  }
  0x7c   :  { %v14_v3 = vpop.permute.xlu0 %13  }
  0x7d   :  { %16 = vst.msk [vmem:[#allocation0] ss:$8 sm:$0x3] %vm15_vm1, %v14_v3  }
  0x84   :  { %v20_v4 = vld [vmem:[#allocation0] sm:$0x1]  ;;  %v24_v5 = vld [vmem:[#allocation0 + $0x8] sm:$0x1] }
  0x85   :  { %22 = vst [vmem:[%s51_s1] sm:$0x1] %v20_v4  ;;  %28 = vst [vmem:[%s51_s1 + $0x1] sm:$0x1] %v24_v5 }

// kernel: learning_to_downsample.1
= control target key start
LH: loop header
LB: loop body
LE: loop exit
PB: predicated region body
PF: predicated region fallthrough
CT: control target
= control target key end

     0   :  { %s8086_s29 = smov 0   ;;  %s10183_s0 = inlined_call_operand.vmem [shape: bf16[256,128], index: 0, kind: input, shape index: {}]   ;;  %s10184_s1 = inlined_call_operand.vmem [shape: bf16[3,60,128], index: 1, kind: input, shape index: {}]   ;;  %s10185_s2 = inlined_call_operand.vmem [shape: bf16[3,128,480], index: 2, kind: input, shape index: {}]   ;;  %s10186_s3 = inlined_call_operand.vmem [shape: f32[1,480], index: 3, kind: input, shape index: {}]   ;;  %s10187_s4 = inlined_call_operand.vmem [shape: bf16[3,32,60], index: 4, kind: input, shape index: {}]   ;;  %s10188_s5 = inlined_call_operand.vmem [shape: bf16[3,480,256], index: 5, kind: input, shape index: {}]   ;;  %s10189_s6 = inlined_call_operand.vmem [shape: f32[1,256], index: 6, kind: input, shape index: {}]   ;;  %s10190_s7 = inlined_call_operand.vmem [shape: bf16[256,384], index: 7, kind: input, shape index: {}]   ;;  %s10191_s8 = inlined_call_operand.vmem [shape: f32[1,384], index: 8, kind: input, shape index: {}]   ;;  %s10192_s9 = inlined_call_operand.vmem [shape: bf16[3,16,32], index: 9, kind: input, shape index: {}]   ;;  %s10193_s10 = inlined_call_operand.vmem [shape: bf16[3,384,192], index: 10, kind: input, shape index: {}]   ;;  %s10194_s11 = inlined_call_operand.vmem [shape: f32[1,192], index: 11, kind: input, shape index: {}]   ;;  %s10195_s12 = inlined_call_operand.vmem [shape: bf16[192,256], index: 12, kind: input, shape index: {}]   ;;  %s10196_s13 = inlined_call_operand.vmem [shape: f32[1,256], index: 13, kind: input, shape index: {}]   ;;  %s10197_s14 = inlined_call_operand.vmem [shape: f32[32,256], index: 14, kind: output, shape index: {}]  }
   0x1 LB: > { %s6040_s30 = sadd.s32 4294967295, %s8006_s29   ;;  %p6044_p0 = scmp.ge.s32.totalorder %s8006_s29, 1  ;;  %s8006_s29 = sphi %s8086_s29, %s24_s29  }
   0x2   : > { %p413_p1 = scmp.lt.s32.totalorder %s8006_s29, 3 }
   0x4   : > { %p414_p2 = pnand %p6044_p0, %p413_p1 }
   0x5   : > { %s6045_s15 = sshll.u32 (!%p414_p2), %s6040_s30, 4  ;;  %v7241_v0 = vld [vmem:[%s10184_s1 + $0x20] sm:$0xff] (!%p414_p2)   ;;  %v7254_v11 = vld [vmem:[%s10185_s2 + $0x10c] ss:$16 sps:$4 sm:$0xff] (!%p414_p2)   ;;  %v7243_v14 = vld [vmem:[%s10184_s1 + $0x30] sm:$0xff] (!%p414_p2)   ;;  %v8008_v50 = vmov (!%p414_p2), 0  }
   0x6   : > { %417 = sbr.rel (%p414_p2) target bundleno = 2852 (0xb24), region = 76  ;;  %p461_p3 = scmp.lt.s32.totalorder (!%p414_p2), %s6045_s15, 31  ;;  %7026 = vmatprep.mubr.bf16.mxu1 (!%p414_p2), %v7241_v0  ;;  %v7245_v1 = vld [vmem:[%s10184_s1] sm:$0xff] (!%p414_p2)   ;;  %v7242_v12 = vld [vmem:[%s10184_s1 + $0x28] sm:$0xff] (!%p414_p2)   ;;  %v7247_v15 = vld [vmem:[%s10184_s1 + $0x10] sm:$0xff] (!%p414_p2)   ;;  %vm2014_vm0 = vcmask (!%p414_p2), 1045504  }
   0x7   : > { %7002 = vmatprep.mubr.bf16.mxu0 (!%p414_p2), %v7245_v1  ;;  %v7251_v10 = vld [vmem:[%s10185_s2 + $0x104] ss:$16 sps:$4 sm:$0xff] (!%p414_p2)   ;;  %v7246_v13 = vld [vmem:[%s10184_s1 + $0x8] sm:$0xff] (!%p414_p2)   ;;  %v7249_v16 = vld [vmem:[%s10185_s2 + $0x100] ss:$16 sps:$4 sm:$0xff] (!%p414_p2)   ;;  %vm2007_vm1 = vcmask (!%p414_p2), 490496  }
   0x8   : > { %v7252_v17 = vld [vmem:[%s10185_s2 + $0x108] ss:$16 sps:$4 sm:$0xff] (!%p414_p2)   ;;  %v7257_v18 = vld [vmem:[%s10185_s2 + $0x124] ss:$16 sps:$4 sm:$0xff] (!%p414_p2)   ;;  %v7260_v19 = vld [vmem:[%s10185_s2 + $0x12c] ss:$16 sps:$4 sm:$0xff] (!%p414_p2)  }
   0x9   : > { %v7255_v20 = vld [vmem:[%s10185_s2 + $0x120] ss:$16 sps:$4 sm:$0xff] (!%p414_p2)   ;;  %v7258_v21 = vld [vmem:[%s10185_s2 + $0x128] ss:$16 sps:$4 sm:$0xff] (!%p414_p2)   ;;  %v7263_v22 = vld [vmem:[%s10185_s2 + $0x144] ss:$16 sps:$4 sm:$0xff] (!%p414_p2)  }
   0xa   : > { %v7266_v23 = vld [vmem:[%s10185_s2 + $0x14c] ss:$16 sps:$4 sm:$0xff] (!%p414_p2)   ;;  %v7261_v26 = vld [vmem:[%s10185_s2 + $0x140] ss:$16 sps:$4 sm:$0xff] (!%p414_p2)   ;;  %v7264_v27 = vld [vmem:[%s10185_s2 + $0x148] ss:$16 sps:$4 sm:$0xff] (!%p414_p2)  }
   0xb   : > { %v7244_v24 = vld [vmem:[%s10184_s1 + $0x38] sm:$0x3f] (!%p414_p2)   ;;  %v7269_v28 = vld [vmem:[%s10185_s2 + $0x164] ss:$16 sps:$4 sm:$0xff] (!%p414_p2)   ;;  %v7267_v30 = vld [vmem:[%s10185_s2 + $0x160] ss:$16 sps:$4 sm:$0xff] (!%p414_p2)  }
   0xc   : > { %v7248_v25 = vld [vmem:[%s10184_s1 + $0x18] sm:$0x3f] (!%p414_p2)   ;;  %v7275_v32 = vld [vmem:[%s10185_s2 + $0x184] ss:$16 sps:$4 sm:$0xff] (!%p414_p2)   ;;  %v7273_v34 = vld [vmem:[%s10185_s2 + $0x180] ss:$16 sps:$4 sm:$0xff] (!%p414_p2)  }
   0xd   : > { %s10199_s15 = smov (!%p461_p3, %s6045_s15), 31  ;;  %v7272_v29 = vld [vmem:[%s10185_s2 + $0x16c] ss:$16 sps:$4 sm:$0xff]   ;;  %v7270_v31 = vld [vmem:[%s10185_s2 + $0x168] ss:$16 sps:$4 sm:$0xff]   ;;  %vm2697_vm2 = vcmask 785408  }
   0xe   : > { %s6046_s20 = sshll.u32 %s10199_s15, 2  ;;  %v7278_v33 = vld [vmem:[%s10185_s2 + $0x18c] ss:$16 sps:$4 sm:$0xff]   ;;  %v7276_v35 = vld [vmem:[%s10185_s2 + $0x188] ss:$16 sps:$4 sm:$0xff]   ;;  %vm8010_vm3 = vmmov 0  }
   0xf   : > { %s8105_s23 = scalar_lea.vmem %s10183_s0, %s6046_s20  ;;  %v7281_v36 = vld [vmem:[%s10185_s2 + $0x1a4] ss:$16 sps:$4 sm:$0xff]   ;;  %v7284_v37 = vld [vmem:[%s10185_s2 + $0x1ac] ss:$16 sps:$4 sm:$0xff]   ;;  %v7279_v38 = vld [vmem:[%s10185_s2 + $0x1a0] ss:$16 sps:$4 sm:$0xff]  }
  0x10   : > { %v7233_v2 = vld [vmem:[%s8105_s23] sm:$0xff]   ;;  %v7234_v3 = vld [vmem:[%s8105_s23 + $0x8] sm:$0xff]   ;;  %v7235_v4 = vld [vmem:[%s8105_s23 + $0x10] sm:$0xff]   ;;  %vm4334_vm4 = vcmask 261120   ;;  %vm5927_vm5 = vcmask 523264  }
  0x11   : > { %7010 = vmatprep.subr.bf16.mxu1 %v7233_v2  ;;  %6986 = vmatprep.subr.bf16.mxu0 %v7233_v2  ;;  %v7236_v5 = vld [vmem:[%s8105_s23 + $0x18] sm:$0xff]   ;;  %v7237_v6 = vld [vmem:[%s8105_s23 + $0x20] sm:$0xff]   ;;  %v7238_v7 = vld [vmem:[%s8105_s23 + $0x28] sm:$0xff]  }
  0x12   : > { %7011 = vmatpush3.bf16.msra.mxu1 %v7233_v2  ;;  %6987 = vmatpush3.bf16.msra.mxu0 %v7233_v2  ;;  %v7239_v8 = vld [vmem:[%s8105_s23 + $0x30] sm:$0xff]   ;;  %v7240_v9 = vld [vmem:[%s8105_s23 + $0x38] sm:$0xff]  }
  0x13   : > { %7012 = vmatprep.subr.bf16.mxu1 %v7234_v3  ;;  %6988 = vmatprep.subr.bf16.mxu0 %v7234_v3  ;;  %v7282_v39 = vld [vmem:[%s10185_s2 + $0x1a8] ss:$16 sps:$4 sm:$0xff]   ;;  %v7287_v40 = vld [vmem:[%s10185_s2 + $0x1c4] ss:$16 sps:$4 sm:$0xff]   ;;  %v7290_v41 = vld [vmem:[%s10185_s2 + $0x1cc] ss:$16 sps:$4 sm:$0xff]  }
  0x14   : > { %v7285_v42 = vld [vmem:[%s10185_s2 + $0x1c0] ss:$16 sps:$4 sm:$0xff]   ;;  %v7288_v43 = vld [vmem:[%s10185_s2 + $0x1c8] ss:$16 sps:$4 sm:$0xff]   ;;  %v7293_v44 = vld [vmem:[%s10185_s2 + $0x1e4] ss:$16 sps:$4 sm:$0xff]  }
  0x15   : > { %v7296_v45 = vld [vmem:[%s10185_s2 + $0x1ec] ss:$16 sps:$4 sm:$0xff]   ;;  %v7291_v46 = vld [vmem:[%s10185_s2 + $0x1e0] ss:$16 sps:$4 sm:$0xff]   ;;  %v7294_v47 = vld [vmem:[%s10185_s2 + $0x1e8] ss:$16 sps:$4 sm:$0xff]  }
  0x16   : > { %7013 = vmatpush3.bf16.msra.mxu1 %v7234_v3  ;;  %6989 = vmatpush3.bf16.msra.mxu0 %v7234_v3  ;;  %v7299_v48 = vld [vmem:[%s10185_s2 + $0x4] ss:$16 sps:$4 sm:$0xff]   ;;  %v7302_v49 = vld [vmem:[%s10185_s2 + $0xc] ss:$16 sps:$4 sm:$0xff]   ;;  %v7297_v59 = vld [vmem:[%s10185_s2] ss:$16 sps:$4 sm:$0xff]  }
  0x17   : > { %7014 = vmatprep.subr.bf16.mxu1 %v7235_v4  ;;  %6990 = vmatprep.subr.bf16.mxu0 %v7235_v4  ;;  %v7300_v60 = vld [vmem:[%s10185_s2 + $0x8] ss:$16 sps:$4 sm:$0xff]   ;;  %v7305_v0 = vld [vmem:[%s10185_s2 + $0x24] ss:$16 sps:$4 sm:$0xff]   ;;  %v7308_v1 = vld [vmem:[%s10185_s2 + $0x2c] ss:$16 sps:$4 sm:$0xff]  }
  0x18   : > { %v7303_v3 = vld [vmem:[%s10185_s2 + $0x20] ss:$16 sps:$4 sm:$0xff]  }
  0x1a   : > { %7015 = vmatpush3.bf16.msra.mxu1 %v7235_v4  ;;  %6991 = vmatpush3.bf16.msra.mxu0 %v7235_v4  ;;  %v7306_v4 = vld [vmem:[%s10185_s2 + $0x28] ss:$16 sps:$4 sm:$0xff]  }
  0x1b   : > { %7016 = vmatprep.subr.bf16.mxu1 %v7236_v5  ;;  %6992 = vmatprep.subr.bf16.mxu0 %v7236_v5 }
  0x1e   : > { %7017 = vmatpush3.bf16.msra.mxu1 %v7236_v5  ;;  %6993 = vmatpush3.bf16.msra.mxu0 %v7236_v5 }
  0x1f   : > { %7018 = vmatprep.subr.bf16.mxu1 %v7237_v6  ;;  %6994 = vmatprep.subr.bf16.mxu0 %v7237_v6 }
  0x22   : > { %7019 = vmatpush3.bf16.msra.mxu1 %v7237_v6  ;;  %6995 = vmatpush3.bf16.msra.mxu0 %v7237_v6  ;;  %v7311_v6 = vld [vmem:[%s10185_s2 + $0x44] ss:$16 sps:$4 sm:$0xff]  }
  0x23   : > { %7020 = vmatprep.subr.bf16.mxu1 %v7238_v7  ;;  %6996 = vmatprep.subr.bf16.mxu0 %v7238_v7 }
  0x26   : > { %7021 = vmatpush3.bf16.msra.mxu1 %v7238_v7  ;;  %6997 = vmatpush3.bf16.msra.mxu0 %v7238_v7  ;;  %v7314_v7 = vld [vmem:[%s10185_s2 + $0x4c] ss:$16 sps:$4 sm:$0xff]  }
  0x27   : > { %7022 = vmatprep.subr.bf16.mxu1 %v7239_v8  ;;  %6998 = vmatprep.subr.bf16.mxu0 %v7239_v8 }
  0x2a   : > { %7023 = vmatpush3.bf16.msra.mxu1 %v7239_v8  ;;  %6999 = vmatpush3.bf16.msra.mxu0 %v7239_v8 }
  0x2b   : > { %7024 = vmatprep.subr.bf16.mxu1 %v7240_v9  ;;  %7000 = vmatprep.subr.bf16.mxu0 %v7240_v9 }
  0x2e   : > { %7025 = vmatpush3.bf16.msra.mxu1 %v7240_v9  ;;  %7001 = vmatpush3.bf16.msra.mxu0 %v7240_v9 }
  0x2f   : > { %966 = vmatprep.subr.bf16.mxu0 %v7251_v10  ;;  %1039 = vmatprep.subr.bf16.mxu1 %v7254_v11 }
  0x31   : > { %7027 = vmatmul.mubr.bf16.vlgmr.msra.gmra.mrb[0].mxu1 %v7242_v12  ;;  %7003 = vmatmul.mubr.bf16.vlgmr.msra.gmra.mrb[0].mxu0 %v7246_v13  ;;  %v7309_v13 = vld [vmem:[%s10185_s2 + $0x40] ss:$16 sps:$4 sm:$0xff]  }
  0x32   : > { %7030 = vmatprep.mubr.bf16.mxu1 %v7243_v14  ;;  %7006 = vmatprep.mubr.bf16.mxu0 %v7247_v15  ;;  %v7312_v14 = vld [vmem:[%s10185_s2 + $0x48] ss:$16 sps:$4 sm:$0xff]  }
  0x33   : > { %967 = vmatpush1.bf16.msra.mxu0 %v7249_v16  ;;  %1040 = vmatpush1.bf16.msra.mxu1 %v7252_v17 }
  0x34   : > { %968 = vmatprep.subr.bf16.mxu0 %v7257_v18  ;;  %1041 = vmatprep.subr.bf16.mxu1 %v7260_v19 }
  0x37   : > { %969 = vmatpush1.bf16.msra.mxu0 %v7255_v20  ;;  %1042 = vmatpush1.bf16.msra.mxu1 %v7258_v21  ;;  %v7317_v20 = vld [vmem:[%s10185_s2 + $0x64] ss:$16 sps:$4 sm:$0xff]   ;;  %v7320_v21 = vld [vmem:[%s10185_s2 + $0x6c] ss:$16 sps:$4 sm:$0xff]  }
  0x38   : > { %970 = vmatprep.subr.bf16.mxu0 %v7263_v22  ;;  %1043 = vmatprep.subr.bf16.mxu1 %v7266_v23  ;;  %v7315_v23 = vld [vmem:[%s10185_s2 + $0x60] ss:$16 sps:$4 sm:$0xff]  }
  0x39   : > { %7031 = vmatmul.mubr.bf16.gmra.mrb[4].mxu1 %v7244_v24  ;;  %7007 = vmatmul.mubr.bf16.gmra.mrb[4].mxu0 %v7248_v25  ;;  %v7318_v24 = vld [vmem:[%s10185_s2 + $0x68] ss:$16 sps:$4 sm:$0xff]   ;;  %v7323_v25 = vld [vmem:[%s10185_s2 + $0x84] ss:$16 sps:$4 sm:$0xff]  }
  0x3a   : > { %998 = vmatprep.mubr.bf16.mxu0 %v8008_v50  ;;  %1071 = vmatprep.mubr.bf16.mxu1 %v8008_v50 }
  0x3b   : > { %971 = vmatpush1.bf16.msra.mxu0 %v7261_v26  ;;  %1044 = vmatpush1.bf16.msra.mxu1 %v7264_v27  ;;  %v7326_v26 = vld [vmem:[%s10185_s2 + $0x8c] ss:$16 sps:$4 sm:$0xff]   ;;  %v7321_v27 = vld [vmem:[%s10185_s2 + $0x80] ss:$16 sps:$4 sm:$0xff]  }
  0x3c   : > { %972 = vmatprep.subr.bf16.mxu0 %v7269_v28  ;;  %1045 = vmatprep.subr.bf16.mxu1 %v7272_v29  ;;  %v7324_v28 = vld [vmem:[%s10185_s2 + $0x88] ss:$16 sps:$4 sm:$0xff]   ;;  %v7329_v29 = vld [vmem:[%s10185_s2 + $0xa4] ss:$16 sps:$4 sm:$0xff]  }
  0x3f   : > { %973 = vmatpush1.bf16.msra.mxu0 %v7267_v30  ;;  %1046 = vmatpush1.bf16.msra.mxu1 %v7270_v31  ;;  %v7332_v30 = vld [vmem:[%s10185_s2 + $0xac] ss:$16 sps:$4 sm:$0xff]   ;;  %v7327_v31 = vld [vmem:[%s10185_s2 + $0xa0] ss:$16 sps:$4 sm:$0xff]  }
  0x40   : > { %974 = vmatprep.subr.bf16.mxu0 %v7275_v32  ;;  %1047 = vmatprep.subr.bf16.mxu1 %v7278_v33  ;;  %v7330_v32 = vld [vmem:[%s10185_s2 + $0xa8] ss:$16 sps:$4 sm:$0xff]   ;;  %v7335_v33 = vld [vmem:[%s10185_s2 + $0xc4] ss:$16 sps:$4 sm:$0xff]  }
  0x43   : > { %975 = vmatpush1.bf16.msra.mxu0 %v7273_v34  ;;  %1048 = vmatpush1.bf16.msra.mxu1 %v7276_v35  ;;  %v7338_v34 = vld [vmem:[%s10185_s2 + $0xcc] ss:$16 sps:$4 sm:$0xff]   ;;  %v7333_v35 = vld [vmem:[%s10185_s2 + $0xc0] ss:$16 sps:$4 sm:$0xff]  }
  0x44   : > { %976 = vmatprep.subr.bf16.mxu0 %v7281_v36  ;;  %1049 = vmatprep.subr.bf16.mxu1 %v7284_v37  ;;  %v7336_v36 = vld [vmem:[%s10185_s2 + $0xc8] ss:$16 sps:$4 sm:$0xff]   ;;  %v7341_v37 = vld [vmem:[%s10185_s2 + $0xe4] ss:$16 sps:$4 sm:$0xff]  }
  0x47   : > { %977 = vmatpush1.bf16.msra.mxu0 %v7279_v38  ;;  %1050 = vmatpush1.bf16.msra.mxu1 %v7282_v39  ;;  %v7344_v38 = vld [vmem:[%s10185_s2 + $0xec] ss:$16 sps:$4 sm:$0xff]   ;;  %v7339_v39 = vld [vmem:[%s10185_s2 + $0xe0] ss:$16 sps:$4 sm:$0xff]  }
  0x48   : > { %978 = vmatprep.subr.bf16.mxu0 %v7287_v40  ;;  %1051 = vmatprep.subr.bf16.mxu1 %v7290_v41  ;;  %v7342_v40 = vld [vmem:[%s10185_s2 + $0xe8] ss:$16 sps:$4 sm:$0xff]   ;;  %v7992_v41 = vld [vmem:[%s8105_s23] sm:$0xff]  }
  0x4b   : > { %979 = vmatpush1.bf16.msra.mxu0 %v7285_v42  ;;  %1052 = vmatpush1.bf16.msra.mxu1 %v7288_v43  ;;  %v7993_v42 = vld [vmem:[%s8105_s23 + $0x8] sm:$0xff]   ;;  %v7994_v43 = vld [vmem:[%s8105_s23 + $0x10] sm:$0xff]  }
  0x4c   : > { %980 = vmatprep.subr.bf16.mxu0 %v7293_v44  ;;  %1053 = vmatprep.subr.bf16.mxu1 %v7296_v45  ;;  %v7995_v44 = vld [vmem:[%s8105_s23 + $0x18] sm:$0xff]   ;;  %v7996_v45 = vld [vmem:[%s8105_s23 + $0x20] sm:$0xff]  }
  0x4f   : > { %981 = vmatpush1.bf16.msra.mxu0 %v7291_v46  ;;  %1054 = vmatpush1.bf16.msra.mxu1 %v7294_v47  ;;  %v7997_v46 = vld [vmem:[%s8105_s23 + $0x28] sm:$0xff]   ;;  %v7345_v47 = vld [vmem:[%s10184_s1 + $0x40] sm:$0xff]  }
  0x50   : > { %1272 = vmatprep.subr.bf16.mxu0 %v7299_v48  ;;  %1345 = vmatprep.subr.bf16.mxu1 %v7302_v49  ;;  %v7998_v48 = vld [vmem:[%s8105_s23 + $0x30] sm:$0xff]   ;;  %v7999_v49 = vld [vmem:[%s8105_s23 + $0x38] sm:$0xff]   ;;  %s6047_s23 = sshll.u32 %s6040_s30, 1 }
  0x51   : > { %p467_p4 = scmp.lt.s32.totalorder %s6047_s23, 3 }
  0x53   : > { %s10201_s23 = smov (!%p467_p4, %s6047_s23), 3 }
  0x54   : > { %s6912_s17 = sshll.u32 %s10201_s23, 4 }
  0x55   : > { %s471_s20 = scalar_lea.vmem %s10197_s14, %s6912_s17 }
 0x104   : > { %v7028_v51 = vpop.f32.mrb[0].mxu1  ;;  %v7004_v52 = vpop.f32.mrb[0].mxu0 }
 0x105   : > { %v738_v53 = vpop.f32.mrb[1].mxu1  ;;  %v604_v54 = vpop.f32.mrb[1].mxu0 }
 0x106   : > { %v7029_v55 = vpop.f32.mrb[2].mxu1  ;;  %v7005_v56 = vpop.f32.mrb[2].mxu0 }
 0x107   : > { %v770_v57 = vpack.c.bf16 %v7029_v55, %v7028_v51  ;;  %v741_v58 = vpop.f32.mrb[3].mxu1  ;;  %v8243_v61 = vpack.c.bf16 %v7005_v56, %v7004_v52  ;;  %v607_v62 = vpop.f32.mrb[3].mxu0  ;;  %v7346_v51 = vld [vmem:[%s10184_s1 + $0x48] sm:$0xff]   ;;  %v7347_v52 = vld [vmem:[%s10184_s1 + $0x50] sm:$0xff]  }
 0x108   : > { %v769_v63 = vpack.c.bf16 %v741_v58, %v738_v53  ;;  %v8251_v2 = vpack.c.bf16 %v607_v62, %v604_v54  ;;  %v7348_v53 = vld [vmem:[%s10184_s1 + $0x58] sm:$0x3f]   ;;  %v7349_v54 = vld [vmem:[%s10185_s2 + $0x200] ss:$16 sps:$4 sm:$0xff]   ;;  %v7351_v55 = vld [vmem:[%s10185_s2 + $0x204] ss:$16 sps:$4 sm:$0xff]  }
 0x109   : > { %v7354_v56 = vld [vmem:[%s10185_s2 + $0x224] ss:$16 sps:$4 sm:$0xff]   ;;  %v7355_v58 = vld [vmem:[%s10185_s2 + $0x240] ss:$16 sps:$4 sm:$0xff]  }
 0x10a   : > { %999 = vmatmul.mubr.bf16.vlgmr.msra.gmra.mrb[8].mxu0 %v769_v63  ;;  %1072 = vmatmul.mubr.bf16.vlgmr.msra.gmra.mrb[8].mxu1 %v769_v63  ;;  %v7363_v62 = vld [vmem:[%s10185_s2 + $0x264] ss:$16 sps:$4 sm:$0xff]   ;;  %v8411_v63 = vld [vmem:[%s10185_s2 + $0x22c] ss:$16 sps:$4 sm:$0xff]  }
 0x10b   : > { %1273 = vmatpush1.bf16.msra.mxu0 %v7297_v59  ;;  %1346 = vmatpush1.bf16.msra.mxu1 %v7300_v60  ;;  %v7357_v59 = vld [vmem:[%s10185_s2 + $0x244] ss:$16 sps:$4 sm:$0xff]   ;;  %v8400_v60 = vld [vmem:[%s10185_s2 + $0x208] ss:$16 sps:$4 sm:$0xff]  }
 0x10c   : > { %1274 = vmatprep.subr.bf16.mxu0 %v7305_v0  ;;  %1347 = vmatprep.subr.bf16.mxu1 %v7308_v1  ;;  %v7032_v5 = vpop.f32.mrb[4].mxu1  ;;  %v7008_v8 = vpop.f32.mrb[4].mxu0  ;;  %v7361_v0 = vld [vmem:[%s10185_s2 + $0x260] ss:$16 sps:$4 sm:$0xff]   ;;  %v8420_v1 = vld [vmem:[%s10185_s2 + $0x228] ss:$16 sps:$4 sm:$0xff]  }
 0x10d   : > { %1008 = vmatprep.mubr.bf16.mxu0 %v8008_v50  ;;  %1081 = vmatprep.mubr.bf16.mxu1 %v8008_v50  ;;  %v754_v9 = vpop.f32.mrb[5].mxu1  ;;  %v620_v10 = vpop.f32.mrb[5].mxu0 }
 0x10e   : > { %v7033_v11 = vpop.f32.mrb[6].mxu1  ;;  %v7009_v12 = vpop.f32.mrb[6].mxu0 }
 0x10f   : > { %1275 = vmatpush1.bf16.msra.mxu0 %v7303_v3  ;;  %1348 = vmatpush1.bf16.msra.mxu1 %v7306_v4  ;;  %v772_v15 = vpack.c.bf16 %v7033_v11, %v7032_v5  ;;  %v757_v16 = vpop.f32.mrb[7].mxu1  ;;  %v8273_v17 = vpack.c.bf16 %v7009_v12, %v7008_v8  ;;  %v623_v18 = vpop.f32.mrb[7].mxu0  ;;  %v8429_v3 = vld [vmem:[%s10185_s2 + $0x24c] ss:$16 sps:$4 sm:$0xff]   ;;  %v7367_v4 = vld [vmem:[%s10185_s2 + $0x280] ss:$16 sps:$4 sm:$0xff]  }
 0x110   : > { %1276 = vmatprep.subr.bf16.mxu0 %v7311_v6  ;;  %1349 = vmatprep.subr.bf16.mxu1 %v7314_v7  ;;  %v771_v19 = vpack.c.bf16 %v757_v16, %v754_v9  ;;  %v8281_v22 = vpack.c.bf16 %v623_v18, %v620_v10  ;;  %v8438_v5 = vld [vmem:[%s10185_s2 + $0x248] ss:$16 sps:$4 sm:$0xff]   ;;  %v7375_v6 = vld [vmem:[%s10185_s2 + $0x2a4] ss:$16 sps:$4 sm:$0xff]   ;;  %v8447_v7 = vld [vmem:[%s10185_s2 + $0x26c] ss:$16 sps:$4 sm:$0xff]  }
 0x111   : > { %v7373_v8 = vld [vmem:[%s10185_s2 + $0x2a0] ss:$16 sps:$4 sm:$0xff]   ;;  %v7376_v9 = vld [vmem:[%s10185_s2 + $0x268] ss:$16 sps:$4 sm:$0xff]   ;;  %v7381_v10 = vld [vmem:[%s10185_s2 + $0x2c4] ss:$16 sps:$4 sm:$0xff]  }
 0x112   : > { %1009 = vmatmul.mubr.bf16.gmra.mrb[12].mxu0 %v770_v57  ;;  %1082 = vmatmul.mubr.bf16.gmra.mrb[12].mxu1 %v770_v57  ;;  %v7352_v57 = vld [vmem:[%s10185_s2 + $0x220] ss:$16 sps:$4 sm:$0xff]   ;;  %v7384_v11 = vld [vmem:[%s10185_s2 + $0x28c] ss:$16 sps:$4 sm:$0xff]  }
 0x113   : > { %1277 = vmatpush1.bf16.msra.mxu0 %v7309_v13  ;;  %1350 = vmatpush1.bf16.msra.mxu1 %v7312_v14  ;;  %v7379_v12 = vld [vmem:[%s10185_s2 + $0x2c0] ss:$16 sps:$4 sm:$0xff]   ;;  %v7382_v13 = vld [vmem:[%s10185_s2 + $0x288] ss:$16 sps:$4 sm:$0xff]   ;;  %v7387_v14 = vld [vmem:[%s10185_s2 + $0x2e4] ss:$16 sps:$4 sm:$0xff]  }
 0x114   : > { %1278 = vmatprep.subr.bf16.mxu0 %v7317_v20  ;;  %1351 = vmatprep.subr.bf16.mxu1 %v7320_v21  ;;  %v7385_v16 = vld [vmem:[%s10185_s2 + $0x2e0] ss:$16 sps:$4 sm:$0xff]   ;;  %v7393_v18 = vld [vmem:[%s10185_s2 + $0x2cc] ss:$16 sps:$4 sm:$0xff]   ;;  %v7394_v21 = vld [vmem:[%s10185_s2 + $0x2e8] ss:$16 sps:$4 sm:$0xff]  }
 0x115   : > { %1018 = vmatprep.mubr.bf16.mxu0 %v8008_v50  ;;  %1091 = vmatprep.mubr.bf16.mxu1 %v8008_v50  ;;  %v7396_v20 = vld [vmem:[%s10185_s2 + $0x2ec] ss:$16 sps:$4 sm:$0xff]  }
 0x117   : > { %1279 = vmatpush1.bf16.msra.mxu0 %v7315_v23  ;;  %1352 = vmatpush1.bf16.msra.mxu1 %v7318_v24 }
 0x118   : > { %1280 = vmatprep.subr.bf16.mxu0 %v7323_v25  ;;  %1353 = vmatprep.subr.bf16.mxu1 %v7326_v26 }
 0x11a   : > { %1019 = vmatmul.mubr.bf16.gmra.mrb[16].mxu0 %v771_v19  ;;  %1092 = vmatmul.mubr.bf16.gmra.mrb[16].mxu1 %v771_v19  ;;  %v7391_v19 = vld [vmem:[%s10185_s2 + $0x2c8] ss:$16 sps:$4 sm:$0xff]  }
 0x11b   : > { %1281 = vmatpush1.bf16.msra.mxu0 %v7321_v27  ;;  %1354 = vmatpush1.bf16.msra.mxu1 %v7324_v28 }
 0x11c   : > { %1282 = vmatprep.subr.bf16.mxu0 %v7329_v29  ;;  %1355 = vmatprep.subr.bf16.mxu1 %v7332_v30 }
 0x11d   : > { %1028 = vmatprep.mubr.bf16.mxu0 %v8008_v50  ;;  %1101 = vmatprep.mubr.bf16.mxu1 %v8008_v50 }
 0x11f   : > { %1283 = vmatpush1.bf16.msra.mxu0 %v7327_v31  ;;  %1356 = vmatpush1.bf16.msra.mxu1 %v7330_v32 }
 0x120   : > { %1284 = vmatprep.subr.bf16.mxu0 %v7335_v33  ;;  %1357 = vmatprep.subr.bf16.mxu1 %v7338_v34 }
 0x122   : > { %1029 = vmatmul.mubr.bf16.gmra.mrb[20].mxu0 %v772_v15  ;;  %1102 = vmatmul.mubr.bf16.gmra.mrb[20].mxu1 %v772_v15  ;;  %v7390_v15 = vld [vmem:[%s10185_s2 + $0x2ac] ss:$16 sps:$4 sm:$0xff]  }
 0x123   : > { %1285 = vmatpush1.bf16.msra.mxu0 %v7333_v35  ;;  %1358 = vmatpush1.bf16.msra.mxu1 %v7336_v36 }
 0x124   : > { %1286 = vmatprep.subr.bf16.mxu0 %v7341_v37  ;;  %1359 = vmatprep.subr.bf16.mxu1 %v7344_v38 }
 0x125   : > { %1304 = vmatprep.mubr.bf16.mxu0 %v8008_v50  ;;  %1377 = vmatprep.mubr.bf16.mxu1 %v8008_v50 }
 0x127   : > { %1287 = vmatpush1.bf16.msra.mxu0 %v7339_v39  ;;  %1360 = vmatpush1.bf16.msra.mxu1 %v7342_v40 }
 0x128   : > { %7034 = vmatprep.subr.bf16.mxu0 %v7992_v41 }
 0x12a   : > { %1305 = vmatmul.mubr.bf16.vlgmr.msra.gmra.mrb[8].mxu0 %v8251_v2  ;;  %1378 = vmatmul.mubr.bf16.vlgmr.msra.gmra.mrb[8].mxu1 %v8251_v2  ;;  %v7369_v2 = vld [vmem:[%s10185_s2 + $0x284] ss:$16 sps:$4 sm:$0xff]  }
 0x12b   : > { %7035 = vmatpush3.bf16.msra.mxu0 %v7992_v41  ;;  %1314 = vmatprep.mubr.bf16.mxu0 %v8008_v50 }
 0x12c   : > { %7036 = vmatprep.subr.bf16.mxu0 %v7993_v42  ;;  %1387 = vmatprep.mubr.bf16.mxu1 %v8008_v50 }
 0x12f   : > { %7037 = vmatpush3.bf16.msra.mxu0 %v7993_v42  ;;  %v1893_v42 = vlaneseq }
 0x130   : > { %7038 = vmatprep.subr.bf16.mxu0 %v7994_v43 }
 0x132   : > { %1315 = vmatmul.mubr.bf16.gmra.mrb[12].mxu0 %v8243_v61  ;;  %1388 = vmatmul.mubr.bf16.gmra.mrb[12].mxu1 %v8243_v61  ;;  %v7360_v61 = vld [vmem:[%s10185_s2 + $0x20c] ss:$16 sps:$4 sm:$0xff]  }
 0x133   : > { %7039 = vmatpush3.bf16.msra.mxu0 %v7994_v43  ;;  %1324 = vmatprep.mubr.bf16.mxu0 %v8008_v50  ;;  %v8523_v43 = vshrl.u32 %v1893_v42, 7 }
 0x134   : > { %7040 = vmatprep.subr.bf16.mxu0 %v7995_v44  ;;  %1397 = vmatprep.mubr.bf16.mxu1 %v8008_v50 }
 0x135   : > { %7082 = vmatprep.subr.bf16.mxu1 %v7360_v61 }
 0x136   : > { %7090 = vmatpush1.bf16.msra.mxu1 %v8400_v60 }
 0x137   : > { %7041 = vmatpush3.bf16.msra.mxu0 %v7995_v44  ;;  %7083 = vmatprep.subr.bf16.mxu1 %v8411_v63  ;;  %v8526_v44 = vsub.s32 0, %v8523_v43 }
 0x138   : > { %7042 = vmatprep.subr.bf16.mxu0 %v7996_v45 }
 0x13a   : > { %1325 = vmatmul.mubr.bf16.gmra.mrb[16].mxu0 %v8281_v22  ;;  %1398 = vmatmul.mubr.bf16.gmra.mrb[16].mxu1 %v8281_v22 }
 0x13b   : > { %7043 = vmatpush3.bf16.msra.mxu0 %v7996_v45  ;;  %1334 = vmatprep.mubr.bf16.mxu0 %v8008_v50  ;;  %v1891_v45 = vld [vmem:[%s10186_s3] sm:$0xf] }
 0x13c   : > { %7044 = vmatprep.subr.bf16.mxu0 %v7997_v46  ;;  %1407 = vmatprep.mubr.bf16.mxu1 %v8008_v50 }
 0x13d   : > { %7091 = vmatpush1.bf16.msra.mxu1 %v8420_v1 }
 0x13e   : > { %7084 = vmatprep.subr.bf16.mxu1 %v8429_v3 }
 0x13f   : > { %7045 = vmatpush3.bf16.msra.mxu0 %v7997_v46  ;;  %v8532_v46 = vsub.s32 1, %v8523_v43 }
 0x140   : > { %7046 = vmatprep.subr.bf16.mxu0 %v7998_v48 }
 0x141   : > { %7092 = vmatpush1.bf16.msra.mxu1 %v8438_v5 }
 0x142   : > { %1335 = vmatmul.mubr.bf16.gmra.mrb[20].mxu0 %v8273_v17  ;;  %1408 = vmatmul.mubr.bf16.gmra.mrb[20].mxu1 %v8273_v17  ;;  %v7388_v17 = vld [vmem:[%s10185_s2 + $0x2a8] ss:$16 sps:$4 sm:$0xff]  }
 0x143   : > { %7047 = vmatpush3.bf16.msra.mxu0 %v7998_v48  ;;  %7050 = vmatprep.mubr.bf16.mxu0 %v7345_v47  ;;  %v8535_v47 = vrot.slane %v1891_v45, %v8526_v44  ;;  %v8538_v48 = vrot.slane %v1891_v45, %v8532_v46 }
 0x144   : > { %7048 = vmatprep.subr.bf16.mxu0 %v7999_v49  ;;  %1838 = vmatprep.mubr.bf16.mxu1 %v8008_v50 }
 0x145   : > { %7085 = vmatprep.subr.bf16.mxu1 %v8447_v7 }
 0x146   : > { %7093 = vmatpush1.bf16.msra.mxu1 %v7376_v9 }
 0x147   : > { %7049 = vmatpush3.bf16.msra.mxu0 %v7999_v49  ;;  %7086 = vmatprep.subr.bf16.mxu1 %v7384_v11 }
 0x148   : > { %1713 = vmatprep.subr.bf16.mxu0 %v7351_v55 }
 0x14a   : > { %7051 = vmatmul.mubr.bf16.vlgmr.msra.gmra.mrb[24].mxu0 %v7346_v51  ;;  %7094 = vmatpush1.bf16.msra.mxu1 %v7382_v13 }
 0x14b   : > { %7054 = vmatprep.mubr.bf16.mxu0 %v7347_v52  ;;  %1714 = vmatpush1.bf16.msra.mxu0 %v7349_v54 }
 0x14c   : > { %1715 = vmatprep.subr.bf16.mxu0 %v7354_v56  ;;  %7087 = vmatprep.subr.bf16.mxu1 %v7390_v15  ;;  %v1907_v56 = vsub.s32 3, %v8523_v43 }
 0x14e   : > { %7095 = vmatpush1.bf16.msra.mxu1 %v7388_v17 }
 0x14f   : > { %1716 = vmatpush1.bf16.msra.mxu0 %v7352_v57  ;;  %7088 = vmatprep.subr.bf16.mxu1 %v7393_v18 }
 0x150   : > { %1717 = vmatprep.subr.bf16.mxu0 %v7357_v59 }
 0x152   : > { %7055 = vmatmul.mubr.bf16.gmra.mrb[28].mxu0 %v7348_v53  ;;  %7096 = vmatpush1.bf16.msra.mxu1 %v7391_v19  ;;  %v1903_v53 = vsub.s32 2, %v8523_v43 }
 0x153   : > { %1745 = vmatprep.mubr.bf16.mxu0 %v8008_v50  ;;  %1718 = vmatpush1.bf16.msra.mxu0 %v7355_v58 }
 0x154   : > { %1719 = vmatprep.subr.bf16.mxu0 %v7363_v62  ;;  %7089 = vmatprep.subr.bf16.mxu1 %v7396_v20  ;;  %v8548_v62 = vrot.slane %v1891_v45, %v1903_v53 }
 0x156   : > { %7097 = vmatpush1.bf16.msra.mxu1 %v7394_v21 }
 0x157   : > { %1720 = vmatpush1.bf16.msra.mxu0 %v7361_v0 }
 0x158   : > { %1721 = vmatprep.subr.bf16.mxu0 %v7369_v2 }
 0x15b   : > { %1722 = vmatpush1.bf16.msra.mxu0 %v7367_v4 }
 0x15c   : > { %1723 = vmatprep.subr.bf16.mxu0 %v7375_v6 }
 0x15f   : > { %1724 = vmatpush1.bf16.msra.mxu0 %v7373_v8 }
 0x160   : > { %1725 = vmatprep.subr.bf16.mxu0 %v7381_v10 }
 0x163   : > { %1726 = vmatpush1.bf16.msra.mxu0 %v7379_v12 }
 0x164   : > { %1727 = vmatprep.subr.bf16.mxu0 %v7387_v14 }
 0x167   : > { %1728 = vmatpush1.bf16.msra.mxu0 %v7385_v16 }
 0x168   : > { %1786 = vmatprep.subr.bf16.mxu0 %v7360_v61 }
 0x1fd   : > { %v8493_v22 = vpop.f32.mrb[8].mxu1 }
 0x1fe   : > { %v8495_v23 = vpop.f32.mrb[9].mxu1 }
 0x1ff   : > { %v8497_v24 = vpop.f32.mrb[10].mxu1 }
 0x200   : > { %v8499_v25 = vpop.f32.mrb[11].mxu1 }
 0x205   : > { %v8501_v26 = vpop.f32.mrb[12].mxu1 }
 0x206   : > { %v8503_v27 = vpop.f32.mrb[13].mxu1 }
 0x207   : > { %v8505_v28 = vpop.f32.mrb[14].mxu1 }
 0x208   : > { %v8507_v29 = vpop.f32.mrb[15].mxu1 }
 0x21d   : > { %v7052_v30 = vpop.f32.mrb[24].mxu0 }
 0x21e   : > { %v1485_v31 = vpop.f32.mrb[25].mxu0 }
 0x21f   : > { %v7053_v32 = vpop.f32.mrb[26].mxu0 }
 0x220   : > { %v1517_v33 = vpack.c.bf16 %v7053_v32, %v7052_v30  ;;  %v1488_v34 = vpop.f32.mrb[27].mxu0 }
 0x221   : > { %v1516_v35 = vpack.c.bf16 %v1488_v34, %v1485_v31 }
 0x223   : > { %1746 = vmatmul.mubr.bf16.vlgmr.msra.gmra.mrb[8].mxu0 %v1516_v35 }
 0x224   : > { %1787 = vmatpush1.bf16.msra.mxu0 %v8400_v60  ;;  %1755 = vmatprep.mubr.bf16.mxu0 %v8008_v50 }
 0x225   : > { %v7056_v36 = vpop.f32.mrb[28].mxu0  ;;  %1788 = vmatprep.subr.bf16.mxu0 %v8411_v63 }
 0x226   : > { %v1501_v37 = vpop.f32.mrb[29].mxu0 }
 0x227   : > { %v7057_v38 = vpop.f32.mrb[30].mxu0 }
 0x228   : > { %v1519_v39 = vpack.c.bf16 %v7057_v38, %v7056_v36  ;;  %v1504_v40 = vpop.f32.mrb[31].mxu0  ;;  %1789 = vmatpush1.bf16.msra.mxu0 %v8420_v1  ;;  %v8550_v1 = vrot.slane %v1891_v45, %v1907_v56 }
 0x229   : > { %v1518_v41 = vpack.c.bf16 %v1504_v40, %v1501_v37  ;;  %1790 = vmatprep.subr.bf16.mxu0 %v8429_v3 }
 0x22b   : > { %1756 = vmatmul.mubr.bf16.gmra.mrb[12].mxu0 %v1517_v33  ;;  %1839 = vmatmul.mubr.bf16.vlgmr.msra.gmra.mrb[16].mxu1 %v1518_v41 }
 0x22c   : > { %1791 = vmatpush1.bf16.msra.mxu0 %v8438_v5  ;;  %1765 = vmatprep.mubr.bf16.mxu0 %v8008_v50 }
 0x22d   : > { %1792 = vmatprep.subr.bf16.mxu0 %v8447_v7  ;;  %1848 = vmatprep.mubr.bf16.mxu1 %v8008_v50 }
 0x230   : > { %1793 = vmatpush1.bf16.msra.mxu0 %v7376_v9 }
 0x231   : > { %1794 = vmatprep.subr.bf16.mxu0 %v7384_v11 }
 0x233   : > { %1766 = vmatmul.mubr.bf16.gmra.mrb[16].mxu0 %v1518_v41  ;;  %1849 = vmatmul.mubr.bf16.gmra.mrb[20].mxu1 %v1519_v39 }
 0x234   : > { %1795 = vmatpush1.bf16.msra.mxu0 %v7382_v13  ;;  %1775 = vmatprep.mubr.bf16.mxu0 %v8008_v50 }
 0x235   : > { %1796 = vmatprep.subr.bf16.mxu0 %v7390_v15  ;;  %2059 = vmatprep.mubr.bf16.mxu1 %v8008_v50 }
 0x238   : > { %1797 = vmatpush1.bf16.msra.mxu0 %v7388_v17 }
 0x239   : > { %1798 = vmatprep.subr.bf16.mxu0 %v7393_v18 }
 0x23b   : > { %1776 = vmatmul.mubr.bf16.gmra.mrb[20].mxu0 %v1519_v39 }
 0x23c   : > { %1799 = vmatpush1.bf16.msra.mxu0 %v7391_v19  ;;  %1818 = vmatprep.mubr.bf16.mxu0 %v8008_v50 }
 0x23d   : > { %1800 = vmatprep.subr.bf16.mxu0 %v7396_v20 }
 0x240   : > { %1801 = vmatpush1.bf16.msra.mxu0 %v7394_v21 }
 0x243   : > { %1819 = vmatmul.mubr.bf16.vlgmr.msra.gmra.mrb[32].mxu0 %v1516_v35 }
 0x244   : > { %1828 = vmatprep.mubr.bf16.mxu0 %v8008_v50 }
 0x24b   : > { %1829 = vmatmul.mubr.bf16.gmra.mrb[36].mxu0 %v1517_v33 }
 0x24c   : > { %2254 = vmatprep.mubr.bf16.mxu0 %v8008_v50 }
 0x2f6   : > { %v1747_v49 = vpop.f32.mrb[8].mxu0 }
 0x2f7   : > { %v1913_v51 = vadd.f32 %v8535_v47, %v1747_v49  ;;  %v1749_v52 = vpop.f32.mrb[9].mxu0 }
 0x2f8   : > { %v1914_v54 = vadd.f32 %v8538_v48, %v1749_v52  ;;  %v1751_v55 = vpop.f32.mrb[10].mxu0 }
 0x2f9   : > { %v1917_v57 = vadd.f32 %v8535_v47, %v1751_v55  ;;  %v1753_v58 = vpop.f32.mrb[11].mxu0  ;;  %v1945_v60 = vmax.f32 %v1913_v51, 0.0 }
 0x2fa   : > { %v1918_v59 = vadd.f32 %v8538_v48, %v1753_v58  ;;  %v1946_v63 = vmax.f32 %v1914_v54, 0.0 }
 0x2fb   : > { %v1949_v61 = vmax.f32 %v1917_v57, 0.0 }
 0x2fc   : > { %v1950_v0 = vmax.f32 %v1918_v59, 0.0 }
 0x2fd   : > { %v8552_v2 = vpack.c.bf16 %v1949_v61, %v1945_v60 }
 0x2fe   : > { %v8554_v3 = vpack.c.bf16 %v1950_v0, %v1946_v63  ;;  %v1757_v4 = vpop.f32.mrb[12].mxu0  ;;  %v1840_v5 = vpop.f32.mrb[16].mxu1 }
 0x2ff   : > { %v1921_v6 = vadd.f32 %v8535_v47, %v1757_v4  ;;  %v1931_v7 = vadd.f32 %v8548_v62, %v1840_v5  ;;  %v1759_v8 = vpop.f32.mrb[13].mxu0  ;;  %v1842_v9 = vpop.f32.mrb[17].mxu1 }
 0x300   : > { %v1922_v10 = vadd.f32 %v8538_v48, %v1759_v8  ;;  %v1932_v11 = vadd.f32 %v8550_v1, %v1842_v9  ;;  %v1761_v12 = vpop.f32.mrb[14].mxu0  ;;  %v1844_v13 = vpop.f32.mrb[18].mxu1  ;;  %2027 = vmatprep.subr.bf16.mxu1 %v8554_v3  ;;  %2222 = vmatprep.subr.bf16.mxu0 %v8554_v3 }
 0x301   : > { %v1925_v14 = vadd.f32 %v8535_v47, %v1761_v12  ;;  %v1935_v15 = vadd.f32 %v8548_v62, %v1844_v13  ;;  %v1763_v16 = vpop.f32.mrb[15].mxu0  ;;  %v1846_v17 = vpop.f32.mrb[19].mxu1  ;;  %2028 = vmatpush1.bf16.msra.mxu1 %v8552_v2  ;;  %2223 = vmatpush1.bf16.msra.mxu0 %v8552_v2  ;;  %v1953_v20 = vmax.f32 %v1921_v6, 0.0  ;;  %v1963_v21 = vmax.f32 %v1931_v7, 0.0 }
 0x302   : > { %v1926_v18 = vadd.f32 %v8538_v48, %v1763_v16  ;;  %v1936_v19 = vadd.f32 %v8550_v1, %v1846_v17  ;;  %v1954_v32 = vmax.f32 %v1922_v10, 0.0  ;;  %v1964_v33 = vmax.f32 %v1932_v11, 0.0 }
 0x303   : > { %v1957_v30 = vmax.f32 %v1925_v14, 0.0  ;;  %v1967_v31 = vmax.f32 %v1935_v15, 0.0 }
 0x304   : > { %v1958_v34 = vmax.f32 %v1926_v18, 0.0  ;;  %v1968_v35 = vmax.f32 %v1936_v19, 0.0 }
 0x305   : > { %v8568_v36 = vpack.c.bf16 %v1957_v30, %v1953_v20  ;;  %v8570_v37 = vpack.c.bf16 %v1967_v31, %v1963_v21 }
 0x306   : > { %v8572_v38 = vpack.c.bf16 %v1958_v34, %v1954_v32  ;;  %v8574_v39 = vpack.c.bf16 %v1968_v35, %v1964_v33  ;;  %v1767_v40 = vpop.f32.mrb[16].mxu0  ;;  %v1850_v41 = vpop.f32.mrb[20].mxu1 }
 0x307   : > { %v1929_v42 = vadd.f32 %v8535_v47, %v1767_v40  ;;  %v1939_v45 = vadd.f32 %v8548_v62, %v1850_v41  ;;  %v1769_v49 = vpop.f32.mrb[17].mxu0  ;;  %v1852_v51 = vpop.f32.mrb[21].mxu1 }
 0x308   : > { %v1930_v52 = vadd.f32 %v8538_v48, %v1769_v49  ;;  %v1940_v54 = vadd.f32 %v8550_v1, %v1852_v51  ;;  %v1771_v55 = vpop.f32.mrb[18].mxu0  ;;  %v1854_v56 = vpop.f32.mrb[22].mxu1  ;;  %2029 = vmatprep.subr.bf16.mxu1 %v8572_v38  ;;  %2224 = vmatprep.subr.bf16.mxu0 %v8572_v38 }
 0x309   : > { %v1933_v57 = vadd.f32 %v8535_v47, %v1771_v55  ;;  %v1943_v58 = vadd.f32 %v8548_v62, %v1854_v56  ;;  %v1773_v59 = vpop.f32.mrb[19].mxu0  ;;  %v1856_v60 = vpop.f32.mrb[23].mxu1  ;;  %2030 = vmatpush1.bf16.msra.mxu1 %v8568_v36  ;;  %2225 = vmatpush1.bf16.msra.mxu0 %v8568_v36  ;;  %v1961_v0 = vmax.f32 %v1929_v42, 0.0  ;;  %v1971_v4 = vmax.f32 %v1939_v45, 0.0 }
 0x30a   : > { %v1934_v61 = vadd.f32 %v8538_v48, %v1773_v59  ;;  %v1944_v63 = vadd.f32 %v8550_v1, %v1856_v60  ;;  %v1962_v7 = vmax.f32 %v1930_v52, 0.0  ;;  %v1972_v8 = vmax.f32 %v1940_v54, 0.0  ;;  %v8621_v52 = vld [vmem:[%s10187_s4 + $0x10] sm:$0xff]  }
 0x30b   : > { %v1965_v5 = vmax.f32 %v1933_v57, 0.0  ;;  %v1975_v6 = vmax.f32 %v1943_v58, 0.0  ;;  %v7402_v58 = vld [vmem:[%s10188_s5 + $0x1e0] ss:$8 sps:$4 sm:$0xff]  }
 0x30c   : > { %v1966_v9 = vmax.f32 %v1934_v61, 0.0  ;;  %v1976_v10 = vmax.f32 %v1944_v63, 0.0 }
 0x30d   : > { %v8588_v11 = vpack.c.bf16 %v1965_v5, %v1961_v0  ;;  %v8590_v12 = vpack.c.bf16 %v1975_v6, %v1971_v4  ;;  %v7405_v5 = vld [vmem:[%s10188_s5 + $0x1f0] ss:$8 sps:$4 sm:$0xff]  }
 0x30e   : > { %v8592_v13 = vpack.c.bf16 %v1966_v9, %v1962_v7  ;;  %v8594_v14 = vpack.c.bf16 %v1976_v10, %v1972_v8  ;;  %v1777_v15 = vpop.f32.mrb[20].mxu0  ;;  %v7410_v9 = vld [vmem:[%s10188_s5 + $0x204] ss:$8 sps:$4 sm:$0xff]  }
 0x30f   : > { %v1937_v16 = vadd.f32 %v8535_v47, %v1777_v15  ;;  %v1779_v17 = vpop.f32.mrb[21].mxu0 }
 0x310   : > { %v1938_v18 = vadd.f32 %v8538_v48, %v1779_v17  ;;  %v1781_v19 = vpop.f32.mrb[22].mxu0  ;;  %2031 = vmatprep.subr.bf16.mxu1 %v8592_v13  ;;  %2226 = vmatprep.subr.bf16.mxu0 %v8592_v13  ;;  %v7399_v17 = vld [vmem:[%s10187_s4 + $0x8] sm:$0xff]  }
 0x311   : > { %v1941_v20 = vadd.f32 %v8535_v47, %v1781_v19  ;;  %v1783_v21 = vpop.f32.mrb[23].mxu0  ;;  %2032 = vmatpush1.bf16.msra.mxu1 %v8588_v11  ;;  %2227 = vmatpush1.bf16.msra.mxu0 %v8588_v11  ;;  %v1969_v31 = vmax.f32 %v1937_v16, 0.0  ;;  %v7404_v47 = vld [vmem:[%s10188_s5 + $0x1e4] ss:$8 sps:$4 sm:$0xff]  }
 0x312   : > { %v1942_v30 = vadd.f32 %v8538_v48, %v1783_v21  ;;  %v1970_v33 = vmax.f32 %v1938_v18, 0.0  ;;  %v8666_v18 = vld [vmem:[%s10187_s4 + $0x18] sm:$0xff]  }
 0x313   : > { %v1973_v32 = vmax.f32 %v1941_v20, 0.0 }
 0x314   : > { %v1974_v34 = vmax.f32 %v1942_v30, 0.0  ;;  %v7408_v30 = vld [vmem:[%s10188_s5 + $0x200] ss:$8 sps:$4 sm:$0xff]  }
 0x315   : > { %v1989_v35 = vpack.c.bf16 %v1973_v32, %v1969_v31 }
 0x316   : > { %v8604_v40 = vpack.c.bf16 %v1974_v34, %v1970_v33  ;;  %v1820_v41 = vpop.f32.mrb[32].mxu0 }
 0x317   : > { %v7098_v42 = vadd.f32 %v1820_v41, %v8493_v22  ;;  %v1822_v45 = vpop.f32.mrb[33].mxu0  ;;  %v8611_v49 = vsel %vm2014_vm0, %v1989_v35, 0  ;;  %v8626_v22 = vld [vmem:[%s10187_s4] sm:$0xff]   ;;  %v7411_v35 = vld [vmem:[%s10188_s5 + $0x210] ss:$8 sps:$4 sm:$0xff]  }
 0x318   : > { %v7099_v48 = vadd.f32 %v1822_v45, %v8495_v23  ;;  %v1824_v51 = vpop.f32.mrb[34].mxu0  ;;  %6248 = vmatprep.subr.msk.bf16.mxu1 %vm2014_vm0, %v8604_v40  ;;  %6260 = vmatprep.subr.msk.bf16.mxu0 %vm2014_vm0, %v8604_v40  ;;  %v7419_v45 = vld [vmem:[%s10188_s5 + $0x234] ss:$8 sps:$4 sm:$0xff]  }
 0x319   : > { %v1915_v54 = vadd.f32 %v7098_v42, %v8548_v62  ;;  %v7100_v23 = vadd.f32 %v1824_v51, %v8497_v24  ;;  %v1826_v55 = vpop.f32.mrb[35].mxu0  ;;  %2034 = vmatpush1.bf16.msra.mxu1 %v8611_v49  ;;  %2229 = vmatpush1.bf16.msra.mxu0 %v8611_v49  ;;  %v7407_v24 = vld [vmem:[%s10188_s5 + $0x1f4] ss:$8 sps:$4 sm:$0xff]   ;;  %v7414_v42 = vld [vmem:[%s10188_s5 + $0x220] ss:$8 sps:$4 sm:$0xff]  }
 0x31a   : > { %v1916_v56 = vadd.f32 %v7099_v48, %v8550_v1  ;;  %v7101_v57 = vadd.f32 %v1826_v55, %v8499_v25  ;;  %2704 = vmatprep.subr.bf16.mxu0 %v7404_v47  ;;  %v7417_v48 = vld [vmem:[%s10188_s5 + $0x230] ss:$8 sps:$4 sm:$0xff]   ;;  %v7422_v51 = vld [vmem:[%s10188_s5 + $0x244] ss:$8 sps:$4 sm:$0xff]   ;;  %v7425_v55 = vld [vmem:[%s10188_s5 + $0x254] ss:$8 sps:$4 sm:$0xff]  }
 0x31b   : > { %v1919_v59 = vadd.f32 %v7100_v23, %v8548_v62  ;;  %v1947_v25 = vmax.f32 %v1915_v54, 0.0  ;;  %v8716_v54 = vsel %vm2014_vm0, %v8590_v12, 0  ;;  %v7420_v23 = vld [vmem:[%s10188_s5 + $0x240] ss:$8 sps:$4 sm:$0xff]   ;;  %v7423_v12 = vld [vmem:[%s10188_s5 + $0x250] ss:$8 sps:$4 sm:$0xff]  }
 0x31c   : > { %v1920_v60 = vadd.f32 %v7101_v57, %v8550_v1  ;;  %6261 = vmatmul.mubr.msk.bf16.vlgmr.msra.gmra.mrb[40].mxu0 %vm2007_vm1, %v8621_v52  ;;  %6249 = vmatmul.mubr.msk.bf16.vlgmr.msra.gmra.mrb[24].mxu1 %vm2007_vm1, %v8626_v22  ;;  %v1948_v63 = vmax.f32 %v1916_v56, 0.0  ;;  %v7428_v56 = vld [vmem:[%s10188_s5 + $0x264] ss:$8 sps:$4 sm:$0xff]   ;;  %v7431_v57 = vld [vmem:[%s10188_s5 + $0x274] ss:$8 sps:$4 sm:$0xff]  }
 0x31d   : > { %v1951_v61 = vmax.f32 %v1919_v59, 0.0  ;;  %2069 = vmatprep.mubr.bf16.mxu1 %v8008_v50  ;;  %2264 = vmatprep.mubr.bf16.mxu0 %v8008_v50  ;;  %v7434_v59 = vld [vmem:[%s10188_s5 + $0x284] ss:$8 sps:$4 sm:$0xff]  }
 0x31e   : > { %v1952_v0 = vmax.f32 %v1920_v60, 0.0  ;;  %v1830_v4 = vpop.f32.mrb[36].mxu0  ;;  %2705 = vmatpush1.bf16.msra.mxu0 %v7402_v58  ;;  %v7429_v58 = vld [vmem:[%s10188_s5 + $0x270] ss:$8 sps:$4 sm:$0xff]   ;;  %v7437_v60 = vld [vmem:[%s10188_s5 + $0x294] ss:$8 sps:$4 sm:$0xff]  }
 0x31f   : > { %v8651_v6 = vpack.c.bf16 %v1951_v61, %v1947_v25  ;;  %v7102_v7 = vadd.f32 %v1830_v4, %v8501_v26  ;;  %v1832_v8 = vpop.f32.mrb[37].mxu0  ;;  %2706 = vmatprep.subr.bf16.mxu0 %v7407_v24  ;;  %v7432_v24 = vld [vmem:[%s10188_s5 + $0x280] ss:$8 sps:$4 sm:$0xff]   ;;  %v7435_v25 = vld [vmem:[%s10188_s5 + $0x290] ss:$8 sps:$4 sm:$0xff]  }
 0x320   : > { %v7103_v10 = vadd.f32 %v1832_v8, %v8503_v27  ;;  %v1834_v15 = vpop.f32.mrb[38].mxu0  ;;  %v8658_v16 = vpack.c.bf16 %v1952_v0, %v1948_v63  ;;  %v7444_v61 = vld [vmem:[%s10188_s5 + $0x2c0] ss:$8 sps:$4 sm:$0xff]  }
 0x321   : > { %v1923_v26 = vadd.f32 %v7102_v7, %v8548_v62  ;;  %v7104_v19 = vadd.f32 %v1834_v15, %v8505_v28  ;;  %v1836_v20 = vpop.f32.mrb[39].mxu0  ;;  %v7413_v28 = vld [vmem:[%s10188_s5 + $0x214] ss:$8 sps:$4 sm:$0xff]   ;;  %v7450_v15 = vld [vmem:[%s10188_s5 + $0x2e0] ss:$8 sps:$4 sm:$0xff]  }
 0x322   : > { %v1924_v21 = vadd.f32 %v7103_v10, %v8550_v1  ;;  %v7105_v27 = vadd.f32 %v1836_v20, %v8507_v29  ;;  %2080 = vmatprep.subr.bf16.mxu1 %v8658_v16  ;;  %2707 = vmatpush1.bf16.msra.mxu0 %v7405_v5  ;;  %v7458_v20 = vld [vmem:[%s10188_s5 + $0x304] ss:$8 sps:$4 sm:$0xff]  }
 0x323   : > { %v1927_v31 = vadd.f32 %v7104_v19, %v8548_v62  ;;  %2081 = vmatpush1.bf16.msra.mxu1 %v8651_v6  ;;  %2708 = vmatprep.subr.bf16.mxu0 %v7410_v9  ;;  %v1955_v29 = vmax.f32 %v1923_v26, 0.0 }
 0x324   : > { %v1928_v32 = vadd.f32 %v7105_v27, %v8550_v1  ;;  %6250 = vmatmul.mubr.msk.bf16.gmra.mrb[28].mxu1 %vm2007_vm1, %v7399_v17  ;;  %6262 = vmatmul.mubr.msk.bf16.gmra.mrb[44].mxu0 %vm2007_vm1, %v8666_v18  ;;  %v1956_v34 = vmax.f32 %v1924_v21, 0.0  ;;  %v7416_v1 = vld [vmem:[%s10188_s5 + $0x224] ss:$8 sps:$4 sm:$0xff]  }
 0x325   : > { %v1959_v33 = vmax.f32 %v1927_v31, 0.0  ;;  %2112 = vmatprep.mubr.bf16.mxu1 %v8008_v50 }
 0x326   : > { %v1960_v62 = vmax.f32 %v1928_v32, 0.0  ;;  %2709 = vmatpush1.bf16.msra.mxu0 %v7408_v30 }
 0x327   : > { %v8689_v41 = vpack.c.bf16 %v1959_v33, %v1955_v29  ;;  %2710 = vmatprep.subr.bf16.mxu0 %v7413_v28 }
 0x328   : > { %v8694_v47 = vpack.c.bf16 %v1960_v62, %v1956_v34  ;;  %v7456_v34 = vld [vmem:[%s10188_s5 + $0x300] ss:$8 sps:$4 sm:$0xff]  }
 0x32a   : > { %2082 = vmatprep.subr.bf16.mxu1 %v8694_v47  ;;  %2711 = vmatpush1.bf16.msra.mxu0 %v7411_v35 }
 0x32b   : > { %2083 = vmatpush1.bf16.msra.mxu1 %v8689_v41  ;;  %2712 = vmatprep.subr.bf16.mxu0 %v7416_v1  ;;  %v7459_v1 = vld [vmem:[%s10188_s5 + $0x310] ss:$8 sps:$4 sm:$0xff]  }
 0x32c   : > { %2084 = vmatprep.subr.bf16.mxu1 %v8574_v39 }
 0x32e   : > { %2713 = vmatpush1.bf16.msra.mxu0 %v7414_v42  ;;  %v7462_v42 = vld [vmem:[%s10188_s5 + $0x320] ss:$8 sps:$4 sm:$0xff]  }
 0x32f   : > { %2085 = vmatpush1.bf16.msra.mxu1 %v8570_v37  ;;  %2714 = vmatprep.subr.bf16.mxu0 %v7419_v45  ;;  %v7467_v45 = vld [vmem:[%s10188_s5 + $0x334] ss:$8 sps:$4 sm:$0xff]  }
 0x330   : > { %6251 = vmatprep.subr.msk.bf16.mxu1 %vm2014_vm0, %v8594_v14 }
 0x332   : > { %2715 = vmatpush1.bf16.msra.mxu0 %v7417_v48  ;;  %v7465_v48 = vld [vmem:[%s10188_s5 + $0x330] ss:$8 sps:$4 sm:$0xff]  }
 0x333   : > { %2087 = vmatpush1.bf16.msra.mxu1 %v8716_v54  ;;  %2716 = vmatprep.subr.bf16.mxu0 %v7422_v51  ;;  %v7470_v51 = vld [vmem:[%s10188_s5 + $0x344] ss:$8 sps:$4 sm:$0xff]  }
 0x334   : > { %2275 = vmatprep.subr.bf16.mxu1 %v8658_v16 }
 0x336   : > { %6252 = vmatmul.mubr.msk.bf16.vlgmr.msra.gmra.mrb[32].mxu1 %vm2007_vm1, %v8626_v22  ;;  %2717 = vmatpush1.bf16.msra.mxu0 %v7420_v23  ;;  %v7426_v22 = vld [vmem:[%s10188_s5 + $0x260] ss:$8 sps:$4 sm:$0xff]  }
 0x337   : > { %2276 = vmatpush1.bf16.msra.mxu1 %v8651_v6  ;;  %2122 = vmatprep.mubr.bf16.mxu1 %v8008_v50 }
 0x338   : > { %2277 = vmatprep.subr.bf16.mxu1 %v8694_v47  ;;  %2718 = vmatprep.subr.bf16.mxu0 %v7425_v55  ;;  %v7468_v55 = vld [vmem:[%s10188_s5 + $0x340] ss:$8 sps:$4 sm:$0xff]  }
 0x33a   : > { %2719 = vmatpush1.bf16.msra.mxu0 %v7423_v12 }
 0x33b   : > { %2278 = vmatpush1.bf16.msra.mxu1 %v8689_v41  ;;  %2720 = vmatprep.subr.bf16.mxu0 %v7428_v56  ;;  %v7473_v56 = vld [vmem:[%s10188_s5 + $0x354] ss:$8 sps:$4 sm:$0xff]  }
 0x33c   : > { %2279 = vmatprep.subr.bf16.mxu1 %v8574_v39 }
 0x33e   : > { %6253 = vmatmul.mubr.msk.bf16.gmra.mrb[36].mxu1 %vm2007_vm1, %v7399_v17  ;;  %2721 = vmatpush1.bf16.msra.mxu0 %v7426_v22  ;;  %v7455_v17 = vld [vmem:[%s10188_s5 + $0x2f4] ss:$8 sps:$4 sm:$0xff]  }
 0x33f   : > { %2280 = vmatpush1.bf16.msra.mxu1 %v8570_v37  ;;  %2307 = vmatprep.mubr.bf16.mxu1 %v8008_v50 }
 0x340   : > { %6263 = vmatprep.subr.msk.bf16.mxu1 %vm2014_vm0, %v8594_v14  ;;  %2722 = vmatprep.subr.bf16.mxu0 %v7431_v57 }
 0x342   : > { %2723 = vmatpush1.bf16.msra.mxu0 %v7429_v58 }
 0x343   : > { %2282 = vmatpush1.bf16.msra.mxu1 %v8716_v54  ;;  %2724 = vmatprep.subr.bf16.mxu0 %v7434_v59  ;;  %v7471_v59 = vld [vmem:[%s10188_s5 + $0x350] ss:$8 sps:$4 sm:$0xff]  }
 0x344   : > { %3243 = vmatprep.subr.bf16.mxu1 %v8554_v3  ;;  %v7440_v3 = vld [vmem:[%s10188_s5 + $0x2a4] ss:$8 sps:$4 sm:$0xff]  }
 0x346   : > { %6264 = vmatmul.mubr.msk.bf16.vlgmr.msra.gmra.mrb[40].mxu1 %vm2007_vm1, %v8621_v52  ;;  %2725 = vmatpush1.bf16.msra.mxu0 %v7432_v24  ;;  %v7438_v52 = vld [vmem:[%s10188_s5 + $0x2a0] ss:$8 sps:$4 sm:$0xff]   ;;  %v7476_v24 = vld [vmem:[%s10188_s5 + $0x364] ss:$8 sps:$4 sm:$0xff]  }
 0x347   : > { %3244 = vmatpush1.bf16.msra.mxu1 %v8552_v2  ;;  %2317 = vmatprep.mubr.bf16.mxu1 %v8008_v50  ;;  %v7443_v2 = vld [vmem:[%s10188_s5 + $0x2b4] ss:$8 sps:$4 sm:$0xff]  }
 0x348   : > { %3245 = vmatprep.subr.bf16.mxu1 %v8572_v38  ;;  %2726 = vmatprep.subr.bf16.mxu0 %v7437_v60  ;;  %v7441_v38 = vld [vmem:[%s10188_s5 + $0x2b0] ss:$8 sps:$4 sm:$0xff]  }
 0x34a   : > { %2727 = vmatpush1.bf16.msra.mxu0 %v7435_v25 }
 0x34b   : > { %3246 = vmatpush1.bf16.msra.mxu1 %v8568_v36  ;;  %2728 = vmatprep.subr.bf16.mxu0 %v7440_v3  ;;  %v7446_v36 = vld [vmem:[%s10188_s5 + $0x2c4] ss:$8 sps:$4 sm:$0xff]   ;;  %v7474_v3 = vld [vmem:[%s10188_s5 + $0x360] ss:$8 sps:$4 sm:$0xff]  }
 0x34c   : > { %3247 = vmatprep.subr.bf16.mxu1 %v8592_v13  ;;  %v7401_v13 = vld [vmem:[%s10187_s4 + $0x20] sm:$0xff]  }
 0x34e   : > { %6265 = vmatmul.mubr.msk.bf16.gmra.mrb[44].mxu1 %vm2007_vm1, %v8666_v18  ;;  %2729 = vmatpush1.bf16.msra.mxu0 %v7438_v52  ;;  %v7453_v18 = vld [vmem:[%s10188_s5 + $0x2f0] ss:$8 sps:$4 sm:$0xff]  }
 0x34f   : > { %3248 = vmatpush1.bf16.msra.mxu1 %v8588_v11  ;;  %3275 = vmatprep.mubr.bf16.mxu1 %v8008_v50  ;;  %v7449_v11 = vld [vmem:[%s10188_s5 + $0x2d4] ss:$8 sps:$4 sm:$0xff]  }
 0x350   : > { %6456 = vmatprep.subr.msk.bf16.mxu1 %vm2014_vm0, %v8604_v40  ;;  %2730 = vmatprep.subr.bf16.mxu0 %v7443_v2  ;;  %v7447_v40 = vld [vmem:[%s10188_s5 + $0x2d0] ss:$8 sps:$4 sm:$0xff]   ;;  %v7479_v2 = vld [vmem:[%s10188_s5 + $0x374] ss:$8 sps:$4 sm:$0xff]  }
 0x352   : > { %2731 = vmatpush1.bf16.msra.mxu0 %v7441_v38 }
 0x353   : > { %3250 = vmatpush1.bf16.msra.mxu1 %v8611_v49  ;;  %2732 = vmatprep.subr.bf16.mxu0 %v7446_v36 }
 0x354   : > { %3296 = vmatprep.subr.bf16.mxu1 %v8658_v16 }
 0x356   : > { %6457 = vmatmul.mubr.msk.bf16.vlgmr.msra.gmra.mrb[48].mxu1 %vm2007_vm1, %v7401_v13  ;;  %2733 = vmatpush1.bf16.msra.mxu0 %v7444_v61  ;;  %v7477_v61 = vld [vmem:[%s10188_s5 + $0x370] ss:$8 sps:$4 sm:$0xff]  }
 0x357   : > { %3297 = vmatpush1.bf16.msra.mxu1 %v8651_v6  ;;  %3285 = vmatprep.mubr.bf16.mxu1 %v8008_v50 }
 0x358   : > { %3298 = vmatprep.subr.bf16.mxu1 %v8694_v47  ;;  %2734 = vmatprep.subr.bf16.mxu0 %v7449_v11  ;;  %v7464_v47 = vld [vmem:[%s10188_s5 + $0x324] ss:$8 sps:$4 sm:$0xff]  }
 0x359   : > { %v7482_v11 = vld [vmem:[%s10188_s5 + $0x384] ss:$8 sps:$4 sm:$0xff]  }
 0x35a   : > { %2735 = vmatpush1.bf16.msra.mxu0 %v7447_v40 }
 0x35b   : > { %3299 = vmatpush1.bf16.msra.mxu1 %v8689_v41  ;;  %v7461_v41 = vld [vmem:[%s10188_s5 + $0x314] ss:$8 sps:$4 sm:$0xff]  }
 0x35c   : > { %3300 = vmatprep.subr.bf16.mxu1 %v8574_v39  ;;  %v7452_v39 = vld [vmem:[%s10188_s5 + $0x2e4] ss:$8 sps:$4 sm:$0xff]  }
 0x35d   : > { %2757 = vmatprep.subr.bf16.mxu0 %v7452_v39 }
 0x35f   : > { %3301 = vmatpush1.bf16.msra.mxu1 %v8570_v37  ;;  %v7501_v37 = vld [vmem:[%s10187_s4 + $0x28] sm:$0xff]  }
 0x360   : > { %6459 = vmatprep.subr.msk.bf16.mxu1 %vm2014_vm0, %v8594_v14  ;;  %6458 = vmatmul.mubr.msk.bf16.gmra.mrb[52].mxu1 %vm2007_vm1, %v7501_v37 }
 0x361   : > { %3328 = vmatprep.mubr.bf16.mxu1 %v8008_v50 }
 0x363   : > { %3303 = vmatpush1.bf16.msra.mxu1 %v8716_v54 }
 0x368   : > { %6460 = vmatmul.mubr.msk.bf16.vlgmr.msra.gmra.mrb[56].mxu1 %vm2007_vm1, %v7401_v13 }
 0x369   : > { %3338 = vmatprep.mubr.bf16.mxu1 %v8008_v50 }
 0x370   : > { %6461 = vmatmul.mubr.msk.bf16.gmra.mrb[60].mxu1 %vm2007_vm1, %v7501_v37  ;;  %v7480_v37 = vld [vmem:[%s10188_s5 + $0x380] ss:$8 sps:$4 sm:$0xff]  }
 0x3ef   : > { %v2256_v14 = vpop.f32.mrb[40].mxu0  ;;  %v8830_v49 = vpop.f32.mrb[24].mxu1 }
 0x3f0   : > { %v2258_v63 = vpop.f32.mrb[41].mxu0  ;;  %v8832_v0 = vpop.f32.mrb[25].mxu1 }
 0x3f1   : > { %v2260_v4 = vpop.f32.mrb[42].mxu0  ;;  %v8834_v5 = vpop.f32.mrb[26].mxu1 }
 0x3f2   : > { %v2328_v6 = vpack.c.bf16 %v2260_v4, %v2256_v14  ;;  %v2262_v7 = vpop.f32.mrb[43].mxu0  ;;  %v2133_v8 = vpack.c.bf16 %v8834_v5, %v8830_v49  ;;  %v8838_v9 = vpop.f32.mrb[27].mxu1  ;;  %v7547_v49 = vld [vmem:[%s10188_s5 + $0x120] ss:$8 sps:$4 sm:$0xff]   ;;  %v7552_v5 = vld [vmem:[%s10188_s5 + $0x134] ss:$8 sps:$4 sm:$0xff]  }
 0x3f3   : > { %v2329_v10 = vpack.c.bf16 %v2262_v7, %v2258_v63  ;;  %v2134_v16 = vpack.c.bf16 %v8838_v9, %v8832_v0  ;;  %v7485_v63 = vld [vmem:[%s10188_s5 + $0x394] ss:$8 sps:$4 sm:$0xff]   ;;  %v7508_v9 = vld [vmem:[%s10188_s5 + $0x50] ss:$8 sps:$4 sm:$0xff]  }
 0x3f4   : > { %v7510_v0 = vld [vmem:[%s10188_s5 + $0x54] ss:$8 sps:$4 sm:$0xff]  }
 0x3f5   : > { %2736 = vmatprep.mubr.bf16.mxu0 %v2329_v10  ;;  %v7483_v10 = vld [vmem:[%s10188_s5 + $0x390] ss:$8 sps:$4 sm:$0xff]  }
 0x3f6   : > { %2737 = vmatmul.mubr.bf16.vlgmr.msra.gmra.mrb[48].mxu0 %v2328_v6 }
 0x3f7   : > { %2758 = vmatpush1.bf16.msra.mxu0 %v7450_v15  ;;  %v8851_v26 = vpop.f32.mrb[28].mxu1  ;;  %v2266_v19 = vpop.f32.mrb[44].mxu0  ;;  %v7488_v15 = vld [vmem:[%s10188_s5 + $0x3a4] ss:$8 sps:$4 sm:$0xff]  }
 0x3f8   : > { %2759 = vmatprep.subr.bf16.mxu0 %v7455_v17  ;;  %v8856_v21 = vpop.f32.mrb[29].mxu1  ;;  %v2268_v27 = vpop.f32.mrb[45].mxu0 }
 0x3f9   : > { %v8858_v30 = vpop.f32.mrb[30].mxu1  ;;  %v2270_v31 = vpop.f32.mrb[46].mxu0 }
 0x3fa   : > { %v2137_v28 = vpack.c.bf16 %v8858_v30, %v8851_v26  ;;  %v8862_v32 = vpop.f32.mrb[31].mxu1  ;;  %v2332_v29 = vpack.c.bf16 %v2270_v31, %v2266_v19  ;;  %v2272_v33 = vpop.f32.mrb[47].mxu0  ;;  %v7486_v19 = vld [vmem:[%s10188_s5 + $0x3a0] ss:$8 sps:$4 sm:$0xff]   ;;  %v7558_v30 = vld [vmem:[%s10188_s5 + $0x154] ss:$8 sps:$4 sm:$0xff]  }
 0x3fb   : > { %2760 = vmatpush1.bf16.msra.mxu0 %v7453_v18  ;;  %v2138_v62 = vpack.c.bf16 %v8862_v32, %v8856_v21  ;;  %v2333_v35 = vpack.c.bf16 %v2272_v33, %v2268_v27  ;;  %v7491_v27 = vld [vmem:[%s10188_s5 + $0x3b4] ss:$8 sps:$4 sm:$0xff]   ;;  %v7555_v21 = vld [vmem:[%s10188_s5 + $0x144] ss:$8 sps:$4 sm:$0xff]   ;;  %v7553_v26 = vld [vmem:[%s10188_s5 + $0x140] ss:$8 sps:$4 sm:$0xff]  }
 0x3fc   : > { %2761 = vmatprep.subr.bf16.mxu0 %v7458_v20  ;;  %v7561_v32 = vld [vmem:[%s10188_s5 + $0x164] ss:$8 sps:$4 sm:$0xff]  }
 0x3fd   : > { %2746 = vmatprep.mubr.bf16.mxu0 %v2333_v35  ;;  %v7494_v35 = vld [vmem:[%s10188_s5 + $0x4] ss:$8 sps:$4 sm:$0xff]  }
 0x3fe   : > { %2747 = vmatmul.mubr.bf16.gmra.mrb[52].mxu0 %v2332_v29 }
 0x3ff   : > { %2762 = vmatpush1.bf16.msra.mxu0 %v7456_v34  ;;  %v7489_v34 = vld [vmem:[%s10188_s5 + $0x3b0] ss:$8 sps:$4 sm:$0xff]  }
 0x400   : > { %2763 = vmatprep.subr.bf16.mxu0 %v7461_v41  ;;  %v7492_v41 = vld [vmem:[%s10188_s5] ss:$8 sps:$4 sm:$0xff]  }
 0x403   : > { %2764 = vmatpush1.bf16.msra.mxu0 %v7459_v1  ;;  %v7497_v1 = vld [vmem:[%s10188_s5 + $0x14] ss:$8 sps:$4 sm:$0xff]  }
 0x404   : > { %2765 = vmatprep.subr.bf16.mxu0 %v7464_v47  ;;  %v7495_v47 = vld [vmem:[%s10188_s5 + $0x10] ss:$8 sps:$4 sm:$0xff]  }
 0x407   : > { %2766 = vmatpush1.bf16.msra.mxu0 %v7462_v42  ;;  %v7500_v42 = vld [vmem:[%s10188_s5 + $0x24] ss:$8 sps:$4 sm:$0xff]  }
 0x408   : > { %2767 = vmatprep.subr.bf16.mxu0 %v7467_v45  ;;  %v7498_v45 = vld [vmem:[%s10188_s5 + $0x20] ss:$8 sps:$4 sm:$0xff]  }
 0x409   : > { %v8890_v54 = vpop.f32.mrb[32].mxu1 }
 0x40a   : > { %v8892_v23 = vpop.f32.mrb[33].mxu1 }
 0x40b   : > { %2768 = vmatpush1.bf16.msra.mxu0 %v7465_v48  ;;  %v8897_v12 = vpop.f32.mrb[34].mxu1  ;;  %v7504_v48 = vld [vmem:[%s10188_s5 + $0x34] ss:$8 sps:$4 sm:$0xff]  }
 0x40c   : > { %2769 = vmatprep.subr.bf16.mxu0 %v7470_v51  ;;  %v2135_v22 = vpack.c.bf16 %v8897_v12, %v8890_v54  ;;  %v8904_v57 = vpop.f32.mrb[35].mxu1  ;;  %v7502_v51 = vld [vmem:[%s10188_s5 + $0x30] ss:$8 sps:$4 sm:$0xff]   ;;  %v7678_v54 = vld [vmem:[%s10190_s7 + $0x1c] ss:$12 sps:$4 sm:$0xff]  }
 0x40d   : > { %v2136_v58 = vpack.c.bf16 %v8904_v57, %v8892_v23  ;;  %v7564_v23 = vld [vmem:[%s10188_s5 + $0x174] ss:$8 sps:$4 sm:$0xff]   ;;  %v7562_v57 = vld [vmem:[%s10188_s5 + $0x170] ss:$8 sps:$4 sm:$0xff]   ;;  %v7591_v12 = vld [vmem:[%s10188_s5 + $0x3e4] ss:$8 sps:$4 sm:$0xff]  }
 0x40f   : > { %2770 = vmatpush1.bf16.msra.mxu0 %v7468_v55  ;;  %v7507_v55 = vld [vmem:[%s10188_s5 + $0x44] ss:$8 sps:$4 sm:$0xff]  }
 0x410   : > { %2771 = vmatprep.subr.bf16.mxu0 %v7473_v56  ;;  %v7505_v56 = vld [vmem:[%s10188_s5 + $0x40] ss:$8 sps:$4 sm:$0xff]  }
 0x411   : > { %v8914_v60 = vpop.f32.mrb[36].mxu1 }
 0x412   : > { %v8916_v25 = vpop.f32.mrb[37].mxu1 }
 0x413   : > { %2772 = vmatpush1.bf16.msra.mxu0 %v7471_v59  ;;  %v8921_v52 = vpop.f32.mrb[38].mxu1  ;;  %v7511_v59 = vld [vmem:[%s10188_s5 + $0x60] ss:$8 sps:$4 sm:$0xff]  }
 0x414   : > { %2773 = vmatprep.subr.bf16.mxu0 %v7476_v24  ;;  %v2139_v38 = vpack.c.bf16 %v8921_v52, %v8914_v60  ;;  %v8928_v36 = vpop.f32.mrb[39].mxu1  ;;  %v7516_v24 = vld [vmem:[%s10188_s5 + $0x74] ss:$8 sps:$4 sm:$0xff]   ;;  %v7597_v60 = vld [vmem:[%s10188_s5 + $0x404] ss:$8 sps:$4 sm:$0xff]  }
 0x415   : > { %v2140_v13 = vpack.c.bf16 %v8928_v36, %v8916_v25  ;;  %v7681_v25 = vld [vmem:[%s10190_s7 + $0x34] ss:$12 sps:$4 sm:$0xff]  }
 0x416   : > { %v7589_v36 = vld [vmem:[%s10188_s5 + $0x3e0] ss:$8 sps:$4 sm:$0xff]  }
 0x417   : > { %2774 = vmatpush1.bf16.msra.mxu0 %v7474_v3  ;;  %v7514_v3 = vld [vmem:[%s10188_s5 + $0x70] ss:$8 sps:$4 sm:$0xff]   ;;  %v7682_v52 = vld [vmem:[%s10190_s7 + $0x48] ss:$12 sps:$4 sm:$0xff]  }
 0x418   : > { %2775 = vmatprep.subr.bf16.mxu0 %v7479_v2  ;;  %v7519_v2 = vld [vmem:[%s10188_s5 + $0x84] ss:$8 sps:$4 sm:$0xff]  }
 0x419   : > { %v2309_v40 = vpop.f32.mrb[40].mxu1 }
 0x41a   : > { %v2311_v39 = vpop.f32.mrb[41].mxu1 }
 0x41b   : > { %2776 = vmatpush1.bf16.msra.mxu0 %v7477_v61  ;;  %v2313_v14 = vpop.f32.mrb[42].mxu1  ;;  %v7517_v61 = vld [vmem:[%s10188_s5 + $0x80] ss:$8 sps:$4 sm:$0xff]  }
 0x41c   : > { %2777 = vmatprep.subr.bf16.mxu0 %v7482_v11  ;;  %v2330_v4 = vpack.c.bf16 %v2313_v14, %v2309_v40  ;;  %v2315_v6 = vpop.f32.mrb[43].mxu1  ;;  %v7522_v11 = vld [vmem:[%s10188_s5 + $0x94] ss:$8 sps:$4 sm:$0xff]   ;;  %v7520_v40 = vld [vmem:[%s10188_s5 + $0x90] ss:$8 sps:$4 sm:$0xff]  }
 0x41d   : > { %v2331_v7 = vpack.c.bf16 %v2315_v6, %v2311_v39  ;;  %v7525_v39 = vld [vmem:[%s10188_s5 + $0xa4] ss:$8 sps:$4 sm:$0xff]   ;;  %v7528_v14 = vld [vmem:[%s10188_s5 + $0xb4] ss:$8 sps:$4 sm:$0xff]   ;;  %v7529_v6 = vld [vmem:[%s10188_s5 + $0xc0] ss:$8 sps:$4 sm:$0xff]  }
 0x41f   : > { %2778 = vmatpush1.bf16.msra.mxu0 %v7480_v37  ;;  %6386 = vmatprep.mubr.msk.bf16.mxu0 %vm2697_vm2, %v2331_v7  ;;  %v7523_v37 = vld [vmem:[%s10188_s5 + $0xa0] ss:$8 sps:$4 sm:$0xff]  }
 0x420   : > { %2779 = vmatprep.subr.bf16.mxu0 %v7485_v63  ;;  %v7526_v63 = vld [vmem:[%s10188_s5 + $0xb0] ss:$8 sps:$4 sm:$0xff]  }
 0x421   : > { %v2319_v17 = vpop.f32.mrb[44].mxu1 }
 0x422   : > { %v2321_v18 = vpop.f32.mrb[45].mxu1 }
 0x423   : > { %2780 = vmatpush1.bf16.msra.mxu0 %v7483_v10  ;;  %v2323_v20 = vpop.f32.mrb[46].mxu1  ;;  %v7534_v10 = vld [vmem:[%s10188_s5 + $0xd4] ss:$8 sps:$4 sm:$0xff]  }
 0x424   : > { %2781 = vmatprep.subr.bf16.mxu0 %v7488_v15  ;;  %v2334_v31 = vpack.c.bf16 %v2323_v20, %v2319_v17  ;;  %v2325_v29 = vpop.f32.mrb[47].mxu1 }
 0x425   : > { %v2335_v33 = vpack.c.bf16 %v2325_v29, %v2321_v18  ;;  %v7535_v29 = vld [vmem:[%s10188_s5 + $0xe0] ss:$8 sps:$4 sm:$0xff]  }
 0x427   : > { %2782 = vmatpush1.bf16.msra.mxu0 %v7486_v19  ;;  %v7532_v19 = vld [vmem:[%s10188_s5 + $0xd0] ss:$8 sps:$4 sm:$0xff]  }
 0x428   : > { %2783 = vmatprep.subr.bf16.mxu0 %v7491_v27  ;;  %v7537_v27 = vld [vmem:[%s10188_s5 + $0xe4] ss:$8 sps:$4 sm:$0xff]  }
 0x429   : > { %v9042_v7 = vpop.f32.mrb[48].mxu1 }
 0x42a   : > { %v9047_v15 = vpop.f32.mrb[49].mxu1 }
 0x42b   : > { %2784 = vmatpush1.bf16.msra.mxu0 %v7489_v34  ;;  %v9049_v17 = vpop.f32.mrb[50].mxu1  ;;  %v7538_v34 = vld [vmem:[%s10188_s5 + $0xf0] ss:$8 sps:$4 sm:$0xff]  }
 0x42c   : > { %3116 = vmatprep.subr.bf16.mxu0 %v7494_v35  ;;  %v3349_v18 = vpack.c.bf16 %v9049_v17, %v9042_v7  ;;  %v9056_v20 = vpop.f32.mrb[51].mxu1  ;;  %v7543_v35 = vld [vmem:[%s10188_s5 + $0x104] ss:$8 sps:$4 sm:$0xff]   ;;  %v7637_v7 = vld [vmem:[%s10188_s5 + $0x4e0] ss:$8 sps:$4 sm:$0xff]  }
 0x42d   : > { %v7642_v17 = vld [vmem:[%s10188_s5 + $0x4f4] ss:$8 sps:$4 sm:$0xff]  }
 0x42e   : > { %2790 = vmatmul.mubr.bf16.vlgmr.msra.gmra.mrb[48].mxu0 %v2330_v4  ;;  %v7531_v4 = vld [vmem:[%s10188_s5 + $0xc4] ss:$8 sps:$4 sm:$0xff]  }
 0x42f   : > { %3117 = vmatpush1.bf16.msra.mxu0 %v7492_v41  ;;  %6387 = vmatprep.mubr.msk.bf16.mxu0 %vm2697_vm2, %v2335_v33  ;;  %v7540_v33 = vld [vmem:[%s10188_s5 + $0xf4] ss:$8 sps:$4 sm:$0xff]   ;;  %v7541_v41 = vld [vmem:[%s10188_s5 + $0x100] ss:$8 sps:$4 sm:$0xff]  }
 0x430   : > { %3118 = vmatprep.subr.bf16.mxu0 %v7497_v1  ;;  %v7546_v1 = vld [vmem:[%s10188_s5 + $0x114] ss:$8 sps:$4 sm:$0xff]  }
 0x433   : > { %3119 = vmatpush1.bf16.msra.mxu0 %v7495_v47  ;;  %v7544_v47 = vld [vmem:[%s10188_s5 + $0x110] ss:$8 sps:$4 sm:$0xff]  }
 0x434   : > { %3120 = vmatprep.subr.bf16.mxu0 %v7500_v42  ;;  %v7549_v42 = vld [vmem:[%s10188_s5 + $0x124] ss:$8 sps:$4 sm:$0xff]  }
 0x436   : > { %2800 = vmatmul.mubr.bf16.gmra.mrb[52].mxu0 %v2334_v31  ;;  %v3350_v31 = vpack.c.bf16 %v9056_v20, %v9047_v15  ;;  %v7595_v15 = vld [vmem:[%s10188_s5 + $0x400] ss:$8 sps:$4 sm:$0xff]   ;;  %v7600_v20 = vld [vmem:[%s10188_s5 + $0x414] ss:$8 sps:$4 sm:$0xff]  }
 0x437   : > { %3121 = vmatpush1.bf16.msra.mxu0 %v7498_v45  ;;  %3148 = vmatprep.mubr.bf16.mxu0 %v2134_v16  ;;  %v7513_v16 = vld [vmem:[%s10188_s5 + $0x64] ss:$8 sps:$4 sm:$0xff]   ;;  %v7565_v45 = vld [vmem:[%s10188_s5 + $0x180] ss:$8 sps:$4 sm:$0xff]  }
 0x438   : > { %3122 = vmatprep.subr.bf16.mxu0 %v7504_v48  ;;  %v9139_v48 = vpop.f32.mrb[52].mxu1 }
 0x43b   : > { %3123 = vmatpush1.bf16.msra.mxu0 %v7502_v51  ;;  %v7570_v51 = vld [vmem:[%s10188_s5 + $0x194] ss:$8 sps:$4 sm:$0xff]  }
 0x43c   : > { %3124 = vmatprep.subr.bf16.mxu0 %v7507_v55  ;;  %v9144_v55 = vpop.f32.mrb[53].mxu1 }
 0x43f   : > { %3125 = vmatpush1.bf16.msra.mxu0 %v7505_v56  ;;  %v9146_v56 = vpop.f32.mrb[54].mxu1 }
 0x440   : > { %3126 = vmatprep.subr.bf16.mxu0 %v7510_v0  ;;  %v3353_v0 = vpack.c.bf16 %v9146_v56, %v9139_v48  ;;  %v7643_v48 = vld [vmem:[%s10188_s5 + $0x500] ss:$8 sps:$4 sm:$0xff]   ;;  %v7648_v56 = vld [vmem:[%s10188_s5 + $0x514] ss:$8 sps:$4 sm:$0xff]  }
 0x443   : > { %3127 = vmatpush1.bf16.msra.mxu0 %v7508_v9  ;;  %v9150_v9 = vpop.f32.mrb[55].mxu1 }
 0x444   : > { %3128 = vmatprep.subr.bf16.mxu0 %v7513_v16  ;;  %v7568_v16 = vld [vmem:[%s10188_s5 + $0x190] ss:$8 sps:$4 sm:$0xff]  }
 0x447   : > { %3129 = vmatpush1.bf16.msra.mxu0 %v7511_v59  ;;  %v3354_v59 = vpack.c.bf16 %v9150_v9, %v9144_v55  ;;  %v7645_v55 = vld [vmem:[%s10188_s5 + $0x504] ss:$8 sps:$4 sm:$0xff]  }
 0x448   : > { %3130 = vmatprep.subr.bf16.mxu0 %v7516_v24  ;;  %v7573_v24 = vld [vmem:[%s10188_s5 + $0x1a4] ss:$8 sps:$4 sm:$0xff]  }
 0x449   : > { %v7651_v9 = vld [vmem:[%s10188_s5 + $0x524] ss:$8 sps:$4 sm:$0xff]  }
 0x44b   : > { %3131 = vmatpush1.bf16.msra.mxu0 %v7514_v3  ;;  %v7571_v3 = vld [vmem:[%s10188_s5 + $0x1a0] ss:$8 sps:$4 sm:$0xff]  }
 0x44c   : > { %3132 = vmatprep.subr.bf16.mxu0 %v7519_v2  ;;  %v9163_v2 = vpop.f32.mrb[56].mxu1 }
 0x44f   : > { %3133 = vmatpush1.bf16.msra.mxu0 %v7517_v61  ;;  %v7576_v61 = vld [vmem:[%s10188_s5 + $0x1b4] ss:$8 sps:$4 sm:$0xff]  }
 0x450   : > { %3134 = vmatprep.subr.bf16.mxu0 %v7522_v11  ;;  %v9168_v11 = vpop.f32.mrb[57].mxu1 }
 0x453   : > { %3135 = vmatpush1.bf16.msra.mxu0 %v7520_v40  ;;  %v9170_v40 = vpop.f32.mrb[58].mxu1 }
 0x454   : > { %3136 = vmatprep.subr.bf16.mxu0 %v7525_v39  ;;  %v3351_v39 = vpack.c.bf16 %v9170_v40, %v9163_v2  ;;  %v7720_v2 = vld [vmem:[%s10190_s7 + $0x16c] ss:$12 sps:$4 sm:$0xff]   ;;  %v7718_v40 = vld [vmem:[%s10190_s7 + $0x168] ss:$12 sps:$4 sm:$0xff]  }
 0x457   : > { %3137 = vmatpush1.bf16.msra.mxu0 %v7523_v37  ;;  %v9174_v37 = vpop.f32.mrb[59].mxu1 }
 0x458   : > { %3138 = vmatprep.subr.bf16.mxu0 %v7528_v14  ;;  %v7574_v14 = vld [vmem:[%s10188_s5 + $0x1b0] ss:$8 sps:$4 sm:$0xff]  }
 0x45b   : > { %3139 = vmatpush1.bf16.msra.mxu0 %v7526_v63  ;;  %v3352_v63 = vpack.c.bf16 %v9174_v37, %v9168_v11  ;;  %v7654_v11 = vld [vmem:[%s10188_s5 + $0x534] ss:$8 sps:$4 sm:$0xff]   ;;  %v7652_v37 = vld [vmem:[%s10188_s5 + $0x530] ss:$8 sps:$4 sm:$0xff]  }
 0x45c   : > { %3140 = vmatprep.subr.bf16.mxu0 %v7531_v4  ;;  %v7579_v4 = vld [vmem:[%s10188_s5 + $0x1c4] ss:$8 sps:$4 sm:$0xff]  }
 0x45f   : > { %3141 = vmatpush1.bf16.msra.mxu0 %v7529_v6  ;;  %v7577_v6 = vld [vmem:[%s10188_s5 + $0x1c0] ss:$8 sps:$4 sm:$0xff]  }
 0x460   : > { %3142 = vmatprep.subr.bf16.mxu0 %v7534_v10  ;;  %v7582_v10 = vld [vmem:[%s10188_s5 + $0x1d4] ss:$8 sps:$4 sm:$0xff]  }
 0x463   : > { %3143 = vmatpush1.bf16.msra.mxu0 %v7532_v19  ;;  %v9190_v19 = vpop.f32.mrb[60].mxu1 }
 0x464   : > { %3144 = vmatprep.subr.bf16.mxu0 %v7537_v27  ;;  %v7580_v27 = vld [vmem:[%s10188_s5 + $0x1d0] ss:$8 sps:$4 sm:$0xff]  }
 0x467   : > { %3145 = vmatpush1.bf16.msra.mxu0 %v7535_v29  ;;  %v9195_v29 = vpop.f32.mrb[61].mxu1 }
 0x468   : > { %3146 = vmatprep.subr.bf16.mxu0 %v7540_v33  ;;  %v7585_v33 = vld [vmem:[%s10188_s5 + $0x3c4] ss:$8 sps:$4 sm:$0xff]  }
 0x46b   : > { %3147 = vmatpush1.bf16.msra.mxu0 %v7538_v34  ;;  %v9200_v34 = vpop.f32.mrb[62].mxu1 }
 0x46c   : > { %3169 = vmatprep.subr.bf16.mxu0 %v7543_v35  ;;  %v3355_v35 = vpack.c.bf16 %v9200_v34, %v9190_v19  ;;  %v3838_v19 = vld [vmem:[%s10189_s6] sm:$0x3] }
 0x46d   : > { %v3847_v34 = vrot.slane %v3838_v19, %v8532_v46 }
 0x46e   : > { %3149 = vmatmul.mubr.bf16.vlgmr.msra.gmra.mrb[48].mxu0 %v2133_v8  ;;  %v7550_v8 = vld [vmem:[%s10188_s5 + $0x130] ss:$8 sps:$4 sm:$0xff]  }
 0x46f   : > { %3158 = vmatprep.mubr.bf16.mxu0 %v2138_v62  ;;  %3170 = vmatpush1.bf16.msra.mxu0 %v7541_v41  ;;  %v7559_v62 = vld [vmem:[%s10188_s5 + $0x160] ss:$8 sps:$4 sm:$0xff]   ;;  %v9204_v41 = vpop.f32.mrb[63].mxu1 }
 0x470   : > { %3171 = vmatprep.subr.bf16.mxu0 %v7546_v1  ;;  %v3356_v1 = vpack.c.bf16 %v9204_v41, %v9195_v29  ;;  %v3843_v29 = vrot.slane %v3838_v19, %v8526_v44 }
 0x473   : > { %3172 = vmatpush1.bf16.msra.mxu0 %v7544_v47  ;;  %v7583_v47 = vld [vmem:[%s10188_s5 + $0x3c0] ss:$8 sps:$4 sm:$0xff]  }
 0x474   : > { %3173 = vmatprep.subr.bf16.mxu0 %v7549_v42  ;;  %v7588_v42 = vld [vmem:[%s10188_s5 + $0x3d4] ss:$8 sps:$4 sm:$0xff]  }
 0x476   : > { %3159 = vmatmul.mubr.bf16.gmra.mrb[52].mxu0 %v2137_v28  ;;  %v7556_v28 = vld [vmem:[%s10188_s5 + $0x150] ss:$8 sps:$4 sm:$0xff]  }
 0x477   : > { %3174 = vmatpush1.bf16.msra.mxu0 %v7547_v49  ;;  %6448 = vmatprep.mubr.msk.bf16.mxu0 %vm2697_vm2, %v2136_v58  ;;  %v7567_v58 = vld [vmem:[%s10188_s5 + $0x184] ss:$8 sps:$4 sm:$0xff]  }
 0x478   : > { %3175 = vmatprep.subr.bf16.mxu0 %v7552_v5  ;;  %v7673_v49 = vld [vmem:[%s10190_s7] ss:$12 sps:$4 sm:$0xff]   ;;  %v7675_v5 = vld [vmem:[%s10190_s7 + $0x4] ss:$12 sps:$4 sm:$0xff]  }
 0x479   : > { %4207 = vmatprep.subr.bf16.mxu1 %v7675_v5  ;;  %v7613_v5 = vld [vmem:[%s10188_s5 + $0x460] ss:$8 sps:$4 sm:$0xff]  }
 0x47a   : > { %4208 = vmatpush1.bf16.msra.mxu1 %v7673_v49  ;;  %v7705_v49 = vld [vmem:[%s10190_s7 + $0xf4] ss:$12 sps:$4 sm:$0xff]  }
 0x47b   : > { %3176 = vmatpush1.bf16.msra.mxu0 %v7550_v8  ;;  %v7586_v8 = vld [vmem:[%s10188_s5 + $0x3d0] ss:$8 sps:$4 sm:$0xff]   ;;  %4209 = vmatprep.subr.bf16.mxu1 %v7678_v54 }
 0x47c   : > { %3177 = vmatprep.subr.bf16.mxu0 %v7555_v21  ;;  %v7679_v21 = vld [vmem:[%s10190_s7 + $0x30] ss:$12 sps:$4 sm:$0xff]  }
 0x47d   : > { %v7703_v54 = vld [vmem:[%s10190_s7 + $0xf0] ss:$12 sps:$4 sm:$0xff]  }
 0x47f   : > { %3178 = vmatpush1.bf16.msra.mxu0 %v7553_v26  ;;  %v7684_v26 = vld [vmem:[%s10190_s7 + $0x4c] ss:$12 sps:$4 sm:$0xff]  }
 0x480   : > { %3179 = vmatprep.subr.bf16.mxu0 %v7558_v30  ;;  %v7592_v30 = vld [vmem:[%s10188_s5 + $0x3f0] ss:$8 sps:$4 sm:$0xff]  }
 0x483   : > { %3180 = vmatpush1.bf16.msra.mxu0 %v7556_v28  ;;  %v7690_v28 = vld [vmem:[%s10190_s7 + $0x7c] ss:$12 sps:$4 sm:$0xff]  }
 0x484   : > { %3181 = vmatprep.subr.bf16.mxu0 %v7561_v32  ;;  %v7598_v32 = vld [vmem:[%s10188_s5 + $0x410] ss:$8 sps:$4 sm:$0xff]  }
 0x487   : > { %3182 = vmatpush1.bf16.msra.mxu0 %v7559_v62  ;;  %v7603_v62 = vld [vmem:[%s10188_s5 + $0x424] ss:$8 sps:$4 sm:$0xff]  }
 0x488   : > { %3183 = vmatprep.subr.bf16.mxu0 %v7564_v23  ;;  %v7688_v23 = vld [vmem:[%s10190_s7 + $0x78] ss:$12 sps:$4 sm:$0xff]  }
 0x48b   : > { %3184 = vmatpush1.bf16.msra.mxu0 %v7562_v57  ;;  %v7693_v57 = vld [vmem:[%s10190_s7 + $0x94] ss:$12 sps:$4 sm:$0xff]  }
 0x48c   : > { %3185 = vmatprep.subr.bf16.mxu0 %v7567_v58  ;;  %v7601_v58 = vld [vmem:[%s10188_s5 + $0x420] ss:$8 sps:$4 sm:$0xff]  }
 0x48f   : > { %3186 = vmatpush1.bf16.msra.mxu0 %v7565_v45  ;;  %v7606_v45 = vld [vmem:[%s10188_s5 + $0x434] ss:$8 sps:$4 sm:$0xff]  }
 0x490   : > { %3187 = vmatprep.subr.bf16.mxu0 %v7570_v51  ;;  %v7691_v51 = vld [vmem:[%s10190_s7 + $0x90] ss:$12 sps:$4 sm:$0xff]  }
 0x493   : > { %3188 = vmatpush1.bf16.msra.mxu0 %v7568_v16  ;;  %v7696_v16 = vld [vmem:[%s10190_s7 + $0xac] ss:$12 sps:$4 sm:$0xff]  }
 0x494   : > { %3189 = vmatprep.subr.bf16.mxu0 %v7573_v24  ;;  %v7604_v24 = vld [vmem:[%s10188_s5 + $0x430] ss:$8 sps:$4 sm:$0xff]  }
 0x497   : > { %3190 = vmatpush1.bf16.msra.mxu0 %v7571_v3  ;;  %v7609_v3 = vld [vmem:[%s10188_s5 + $0x444] ss:$8 sps:$4 sm:$0xff]  }
 0x498   : > { %3191 = vmatprep.subr.bf16.mxu0 %v7576_v61  ;;  %v7694_v61 = vld [vmem:[%s10190_s7 + $0xa8] ss:$12 sps:$4 sm:$0xff]  }
 0x49b   : > { %3192 = vmatpush1.bf16.msra.mxu0 %v7574_v14  ;;  %v7699_v14 = vld [vmem:[%s10190_s7 + $0xc4] ss:$12 sps:$4 sm:$0xff]  }
 0x49c   : > { %3193 = vmatprep.subr.bf16.mxu0 %v7579_v4  ;;  %v7607_v4 = vld [vmem:[%s10188_s5 + $0x440] ss:$8 sps:$4 sm:$0xff]  }
 0x49f   : > { %3194 = vmatpush1.bf16.msra.mxu0 %v7577_v6  ;;  %v7612_v6 = vld [vmem:[%s10188_s5 + $0x454] ss:$8 sps:$4 sm:$0xff]  }
 0x4a0   : > { %3195 = vmatprep.subr.bf16.mxu0 %v7582_v10  ;;  %v7697_v10 = vld [vmem:[%s10190_s7 + $0xc0] ss:$12 sps:$4 sm:$0xff]  }
 0x4a3   : > { %3196 = vmatpush1.bf16.msra.mxu0 %v7580_v27  ;;  %v7702_v27 = vld [vmem:[%s10190_s7 + $0xdc] ss:$12 sps:$4 sm:$0xff]  }
 0x4a4   : > { %3724 = vmatprep.subr.bf16.mxu0 %v7585_v33  ;;  %v7610_v33 = vld [vmem:[%s10188_s5 + $0x450] ss:$8 sps:$4 sm:$0xff]  }
 0x4a6   : > { %3202 = vmatmul.mubr.bf16.vlgmr.msra.gmra.mrb[48].mxu0 %v2135_v22  ;;  %v7676_v22 = vld [vmem:[%s10190_s7 + $0x18] ss:$12 sps:$4 sm:$0xff]  }
 0x4a7   : > { %6449 = vmatprep.mubr.msk.bf16.mxu0 %vm2697_vm2, %v2140_v13  ;;  %3725 = vmatpush1.bf16.msra.mxu0 %v7583_v47  ;;  %v7594_v13 = vld [vmem:[%s10188_s5 + $0x3f4] ss:$8 sps:$4 sm:$0xff]   ;;  %v7615_v47 = vld [vmem:[%s10188_s5 + $0x464] ss:$8 sps:$4 sm:$0xff]  }
 0x4a8   : > { %3726 = vmatprep.subr.bf16.mxu0 %v7588_v42  ;;  %4210 = vmatpush1.bf16.msra.mxu1 %v7676_v22  ;;  %v7700_v42 = vld [vmem:[%s10190_s7 + $0xd8] ss:$12 sps:$4 sm:$0xff]  }
 0x4a9   : > { %4211 = vmatprep.subr.bf16.mxu1 %v7681_v25  ;;  %v7616_v22 = vld [vmem:[%s10188_s5 + $0x470] ss:$8 sps:$4 sm:$0xff]   ;;  %v7621_v25 = vld [vmem:[%s10188_s5 + $0x484] ss:$8 sps:$4 sm:$0xff]  }
 0x4ab   : > { %3727 = vmatpush1.bf16.msra.mxu0 %v7586_v8  ;;  %v7618_v8 = vld [vmem:[%s10188_s5 + $0x474] ss:$8 sps:$4 sm:$0xff]  }
 0x4ac   : > { %3728 = vmatprep.subr.bf16.mxu0 %v7591_v12  ;;  %4212 = vmatpush1.bf16.msra.mxu1 %v7679_v21  ;;  %v7708_v12 = vld [vmem:[%s10190_s7 + $0x10c] ss:$12 sps:$4 sm:$0xff]   ;;  %v7619_v21 = vld [vmem:[%s10188_s5 + $0x480] ss:$8 sps:$4 sm:$0xff]  }
 0x4ad   : > { %4213 = vmatprep.subr.bf16.mxu1 %v7684_v26  ;;  %v7624_v26 = vld [vmem:[%s10188_s5 + $0x494] ss:$8 sps:$4 sm:$0xff]  }
 0x4ae   : > { %3212 = vmatmul.mubr.bf16.gmra.mrb[52].mxu0 %v2139_v38  ;;  %v7687_v38 = vld [vmem:[%s10190_s7 + $0x64] ss:$12 sps:$4 sm:$0xff]  }
 0x4af   : > { %3729 = vmatpush1.bf16.msra.mxu0 %v7589_v36  ;;  %3756 = vmatprep.mubr.bf16.mxu0 %v3350_v31  ;;  %v7685_v31 = vld [vmem:[%s10190_s7 + $0x60] ss:$12 sps:$4 sm:$0xff]   ;;  %v7706_v36 = vld [vmem:[%s10190_s7 + $0x108] ss:$12 sps:$4 sm:$0xff]  }
 0x4b0   : > { %3730 = vmatprep.subr.bf16.mxu0 %v7594_v13  ;;  %4214 = vmatpush1.bf16.msra.mxu1 %v7682_v52  ;;  %v7711_v13 = vld [vmem:[%s10190_s7 + $0x124] ss:$12 sps:$4 sm:$0xff]  }
 0x4b1   : > { %4215 = vmatprep.subr.bf16.mxu1 %v7687_v38  ;;  %v7622_v52 = vld [vmem:[%s10188_s5 + $0x490] ss:$8 sps:$4 sm:$0xff]   ;;  %v7627_v38 = vld [vmem:[%s10188_s5 + $0x4a4] ss:$8 sps:$4 sm:$0xff]  }
 0x4b3   : > { %3731 = vmatpush1.bf16.msra.mxu0 %v7592_v30  ;;  %v7709_v30 = vld [vmem:[%s10190_s7 + $0x120] ss:$12 sps:$4 sm:$0xff]  }
 0x4b4   : > { %3732 = vmatprep.subr.bf16.mxu0 %v7597_v60  ;;  %4216 = vmatpush1.bf16.msra.mxu1 %v7685_v31  ;;  %v7714_v60 = vld [vmem:[%s10190_s7 + $0x13c] ss:$12 sps:$4 sm:$0xff]  }
 0x4b5   : > { %4217 = vmatprep.subr.bf16.mxu1 %v7690_v28  ;;  %v7630_v31 = vld [vmem:[%s10188_s5 + $0x4b4] ss:$8 sps:$4 sm:$0xff]   ;;  %v7628_v28 = vld [vmem:[%s10188_s5 + $0x4b0] ss:$8 sps:$4 sm:$0xff]  }
 0x4b7   : > { %3733 = vmatpush1.bf16.msra.mxu0 %v7595_v15  ;;  %v7712_v15 = vld [vmem:[%s10190_s7 + $0x138] ss:$12 sps:$4 sm:$0xff]  }
 0x4b8   : > { %3734 = vmatprep.subr.bf16.mxu0 %v7600_v20  ;;  %4218 = vmatpush1.bf16.msra.mxu1 %v7688_v23  ;;  %v7625_v20 = vld [vmem:[%s10188_s5 + $0x4a0] ss:$8 sps:$4 sm:$0xff]   ;;  %v7636_v23 = vld [vmem:[%s10188_s5 + $0x4d4] ss:$8 sps:$4 sm:$0xff]  }
 0x4b9   : > { %4219 = vmatprep.subr.bf16.mxu1 %v7693_v57  ;;  %v7634_v57 = vld [vmem:[%s10188_s5 + $0x4d0] ss:$8 sps:$4 sm:$0xff]  }
 0x4bb   : > { %3735 = vmatpush1.bf16.msra.mxu0 %v7598_v32  ;;  %v7633_v32 = vld [vmem:[%s10188_s5 + $0x4c4] ss:$8 sps:$4 sm:$0xff]  }
 0x4bc   : > { %3736 = vmatprep.subr.bf16.mxu0 %v7603_v62  ;;  %4220 = vmatpush1.bf16.msra.mxu1 %v7691_v51  ;;  %v7631_v62 = vld [vmem:[%s10188_s5 + $0x4c0] ss:$8 sps:$4 sm:$0xff]   ;;  %v7660_v51 = vld [vmem:[%s10188_s5 + $0x554] ss:$8 sps:$4 sm:$0xff]  }
 0x4bd   : > { %4221 = vmatprep.subr.bf16.mxu1 %v7696_v16  ;;  %v7658_v16 = vld [vmem:[%s10188_s5 + $0x550] ss:$8 sps:$4 sm:$0xff]  }
 0x4bf   : > { %3737 = vmatpush1.bf16.msra.mxu0 %v7601_v58  ;;  %v7639_v58 = vld [vmem:[%s10188_s5 + $0x4e4] ss:$8 sps:$4 sm:$0xff]  }
 0x4c0   : > { %3738 = vmatprep.subr.bf16.mxu0 %v7606_v45  ;;  %4222 = vmatpush1.bf16.msra.mxu1 %v7694_v61  ;;  %v7655_v45 = vld [vmem:[%s10188_s5 + $0x540] ss:$8 sps:$4 sm:$0xff]   ;;  %v7666_v61 = vld [vmem:[%s10188_s5 + $0x574] ss:$8 sps:$4 sm:$0xff]  }
 0x4c1   : > { %4223 = vmatprep.subr.bf16.mxu1 %v7699_v14  ;;  %v7664_v14 = vld [vmem:[%s10188_s5 + $0x570] ss:$8 sps:$4 sm:$0xff]  }
 0x4c3   : > { %3739 = vmatpush1.bf16.msra.mxu0 %v7604_v24  ;;  %v7663_v24 = vld [vmem:[%s10188_s5 + $0x564] ss:$8 sps:$4 sm:$0xff]  }
 0x4c4   : > { %3740 = vmatprep.subr.bf16.mxu0 %v7609_v3  ;;  %4224 = vmatpush1.bf16.msra.mxu1 %v7697_v10  ;;  %v7661_v3 = vld [vmem:[%s10188_s5 + $0x560] ss:$8 sps:$4 sm:$0xff]   ;;  %v7672_v10 = vld [vmem:[%s10188_s5 + $0x594] ss:$8 sps:$4 sm:$0xff]  }
 0x4c5   : > { %4225 = vmatprep.subr.bf16.mxu1 %v7702_v27  ;;  %v7670_v27 = vld [vmem:[%s10188_s5 + $0x590] ss:$8 sps:$4 sm:$0xff]  }
 0x4c7   : > { %3741 = vmatpush1.bf16.msra.mxu0 %v7607_v4  ;;  %v7669_v4 = vld [vmem:[%s10188_s5 + $0x584] ss:$8 sps:$4 sm:$0xff]  }
 0x4c8   : > { %3742 = vmatprep.subr.bf16.mxu0 %v7612_v6  ;;  %4226 = vmatpush1.bf16.msra.mxu1 %v7700_v42  ;;  %v7667_v6 = vld [vmem:[%s10188_s5 + $0x580] ss:$8 sps:$4 sm:$0xff]  }
 0x4c9   : > { %4227 = vmatprep.subr.bf16.mxu1 %v7705_v49 }
 0x4cb   : > { %3743 = vmatpush1.bf16.msra.mxu0 %v7610_v33  ;;  %v7717_v33 = vld [vmem:[%s10190_s7 + $0x154] ss:$12 sps:$4 sm:$0xff]  }
 0x4cc   : > { %3744 = vmatprep.subr.bf16.mxu0 %v7615_v47  ;;  %4228 = vmatpush1.bf16.msra.mxu1 %v7703_v54  ;;  %v7715_v47 = vld [vmem:[%s10190_s7 + $0x150] ss:$12 sps:$4 sm:$0xff]  }
 0x4cd   : > { %4229 = vmatprep.subr.bf16.mxu1 %v7708_v12 }
 0x4cf   : > { %3745 = vmatpush1.bf16.msra.mxu0 %v7613_v5 }
 0x4d0   : > { %3746 = vmatprep.subr.bf16.mxu0 %v7618_v8  ;;  %4230 = vmatpush1.bf16.msra.mxu1 %v7706_v36 }
 0x4d1   : > { %4231 = vmatprep.subr.bf16.mxu1 %v7711_v13 }
 0x4d3   : > { %3747 = vmatpush1.bf16.msra.mxu0 %v7616_v22 }
 0x4d4   : > { %3748 = vmatprep.subr.bf16.mxu0 %v7621_v25  ;;  %4232 = vmatpush1.bf16.msra.mxu1 %v7709_v30  ;;  %v7722_v30 = vld [vmem:[%s10190_s7 + $0x8] ss:$12 sps:$4 sm:$0xff]  }
 0x4d5   : > { %4233 = vmatprep.subr.bf16.mxu1 %v7714_v60 }
 0x4d7   : > { %3749 = vmatpush1.bf16.msra.mxu0 %v7619_v21 }
 0x4d8   : > { %3750 = vmatprep.subr.bf16.mxu0 %v7624_v26  ;;  %4234 = vmatpush1.bf16.msra.mxu1 %v7712_v15 }
 0x4d9   : > { %4235 = vmatprep.subr.bf16.mxu1 %v7717_v33 }
 0x4db   : > { %3751 = vmatpush1.bf16.msra.mxu0 %v7622_v52 }
 0x4dc   : > { %3752 = vmatprep.subr.bf16.mxu0 %v7627_v38  ;;  %4236 = vmatpush1.bf16.msra.mxu1 %v7715_v47  ;;  %v7723_v38 = vld [vmem:[%s10190_s7 + $0xe0] ss:$12 sps:$4 sm:$0xff]  }
 0x4dd   : > { %4237 = vmatprep.subr.bf16.mxu1 %v7720_v2 }
 0x4df   : > { %3753 = vmatpush1.bf16.msra.mxu0 %v7625_v20 }
 0x4e0   : > { %3754 = vmatprep.subr.bf16.mxu0 %v7630_v31  ;;  %4238 = vmatpush1.bf16.msra.mxu1 %v7718_v40 }
 0x4e3   : > { %3755 = vmatpush1.bf16.msra.mxu0 %v7628_v28 }
 0x4e4   : > { %3777 = vmatprep.subr.bf16.mxu0 %v7633_v32 }
 0x4e6   : > { %3757 = vmatmul.mubr.bf16.vlgmr.msra.gmra.mrb[48].mxu0 %v3349_v18  ;;  %v7640_v18 = vld [vmem:[%s10188_s5 + $0x4f0] ss:$8 sps:$4 sm:$0xff]  }
 0x4e7   : > { %3778 = vmatpush1.bf16.msra.mxu0 %v7631_v62  ;;  %3766 = vmatprep.mubr.bf16.mxu0 %v3354_v59  ;;  %v7649_v59 = vld [vmem:[%s10188_s5 + $0x520] ss:$8 sps:$4 sm:$0xff]  }
 0x4e8   : > { %3779 = vmatprep.subr.bf16.mxu0 %v7636_v23  ;;  %v7724_v62 = vld [vmem:[%s10190_s7 + $0x20] ss:$12 sps:$4 sm:$0xff]  }
 0x4eb   : > { %3780 = vmatpush1.bf16.msra.mxu0 %v7634_v57 }
 0x4ec   : > { %3781 = vmatprep.subr.bf16.mxu0 %v7639_v58  ;;  %v7725_v58 = vld [vmem:[%s10190_s7 + $0xf8] ss:$12 sps:$4 sm:$0xff]  }
 0x4ee   : > { %3767 = vmatmul.mubr.bf16.gmra.mrb[52].mxu0 %v3353_v0  ;;  %v7646_v0 = vld [vmem:[%s10188_s5 + $0x510] ss:$8 sps:$4 sm:$0xff]  }
 0x4ef   : > { %3782 = vmatpush1.bf16.msra.mxu0 %v7637_v7  ;;  %6582 = vmatprep.mubr.msk.bf16.mxu0 %vm2697_vm2, %v3352_v63  ;;  %v7657_v63 = vld [vmem:[%s10188_s5 + $0x544] ss:$8 sps:$4 sm:$0xff]  }
 0x4f0   : > { %3783 = vmatprep.subr.bf16.mxu0 %v7642_v17 }
 0x4f3   : > { %3784 = vmatpush1.bf16.msra.mxu0 %v7640_v18 }
 0x4f4   : > { %3785 = vmatprep.subr.bf16.mxu0 %v7645_v55 }
 0x4f7   : > { %3786 = vmatpush1.bf16.msra.mxu0 %v7643_v48  ;;  %v7726_v48 = vld [vmem:[%s10190_s7 + $0x38] ss:$12 sps:$4 sm:$0xff]  }
 0x4f8   : > { %3787 = vmatprep.subr.bf16.mxu0 %v7648_v56  ;;  %v7727_v56 = vld [vmem:[%s10190_s7 + $0x110] ss:$12 sps:$4 sm:$0xff]  }
 0x4fb   : > { %3788 = vmatpush1.bf16.msra.mxu0 %v7646_v0  ;;  %v7728_v0 = vld [vmem:[%s10190_s7 + $0x50] ss:$12 sps:$4 sm:$0xff]  }
 0x4fc   : > { %3789 = vmatprep.subr.bf16.mxu0 %v7651_v9  ;;  %v7729_v9 = vld [vmem:[%s10190_s7 + $0x128] ss:$12 sps:$4 sm:$0xff]  }
 0x4ff   : > { %3790 = vmatpush1.bf16.msra.mxu0 %v7649_v59  ;;  %v7730_v59 = vld [vmem:[%s10190_s7 + $0x68] ss:$12 sps:$4 sm:$0xff]  }
 0x500   : > { %3791 = vmatprep.subr.bf16.mxu0 %v7654_v11  ;;  %v7731_v11 = vld [vmem:[%s10190_s7 + $0x140] ss:$12 sps:$4 sm:$0xff]  }
 0x503   : > { %3792 = vmatpush1.bf16.msra.mxu0 %v7652_v37  ;;  %v7732_v37 = vld [vmem:[%s10190_s7 + $0x80] ss:$12 sps:$4 sm:$0xff]  }
 0x504   : > { %3793 = vmatprep.subr.bf16.mxu0 %v7657_v63  ;;  %v7733_v63 = vld [vmem:[%s10190_s7 + $0x158] ss:$12 sps:$4 sm:$0xff]  }
 0x507   : > { %3794 = vmatpush1.bf16.msra.mxu0 %v7655_v45  ;;  %v7734_v45 = vld [vmem:[%s10190_s7 + $0x98] ss:$12 sps:$4 sm:$0xff]  }
 0x508   : > { %3795 = vmatprep.subr.bf16.mxu0 %v7660_v51  ;;  %v7735_v51 = vld [vmem:[%s10190_s7 + $0x170] ss:$12 sps:$4 sm:$0xff]  }
 0x50b   : > { %3796 = vmatpush1.bf16.msra.mxu0 %v7658_v16  ;;  %v7736_v16 = vld [vmem:[%s10190_s7 + $0xb0] ss:$12 sps:$4 sm:$0xff]  }
 0x50c   : > { %3797 = vmatprep.subr.bf16.mxu0 %v7663_v24  ;;  %v8009_v24 = vmov 0.0  }
 0x50f   : > { %3798 = vmatpush1.bf16.msra.mxu0 %v7661_v3  ;;  %v3934_v3 = vld [vmem:[%s10191_s8] sm:$0x7] }
 0x510   : > { %3799 = vmatprep.subr.bf16.mxu0 %v7666_v61  ;;  %v3939_v61 = vrot.slane %v3934_v3, %v8526_v44 }
 0x513   : > { %3800 = vmatpush1.bf16.msra.mxu0 %v7664_v14  ;;  %v3943_v14 = vrot.slane %v3934_v3, %v8532_v46 }
 0x514   : > { %3801 = vmatprep.subr.bf16.mxu0 %v7669_v4 }
 0x517   : > { %3802 = vmatpush1.bf16.msra.mxu0 %v7667_v6 }
 0x518   : > { %3803 = vmatprep.subr.bf16.mxu0 %v7672_v10 }
 0x51b   : > { %3804 = vmatpush1.bf16.msra.mxu0 %v7670_v27 }
 0x51c   : > { %7074 = vmatprep.subr.bf16.mxu0 %v8009_v24 }
 0x51e   : > { %3810 = vmatmul.mubr.bf16.vlgmr.msra.gmra.mrb[48].mxu0 %v3351_v39  ;;  %v7721_v39 = vld [vmem:[%s10190_s7 + $0xc8] ss:$12 sps:$4 sm:$0xff]  }
 0x51f   : > { %6583 = vmatprep.mubr.msk.bf16.mxu0 %vm2697_vm2, %v3356_v1  ;;  %6949 = vmatprep.subr.bf16.mxu1 %v7721_v39 }
 0x526   : > { %3820 = vmatmul.mubr.bf16.gmra.mrb[52].mxu0 %v3355_v35 }
 0x527   : > { %7078 = vmatprep.mubr.msk.bf16.mxu0 %vm8010_vm3, %v8009_v24 }
 0x5f1   : > { %v3811_v35 = vpop.f32.mrb[48].mxu0 }
 0x5f2   : > { %v3850_v41 = vadd.f32 %v3843_v29, %v3811_v35  ;;  %v3813_v1 = vpop.f32.mrb[49].mxu0 }
 0x5f3   : > { %v3851_v42 = vadd.f32 %v3847_v34, %v3813_v1  ;;  %v3815_v49 = vpop.f32.mrb[50].mxu0 }
 0x5f4   : > { %v3852_v5 = vadd.f32 %v3843_v29, %v3815_v49  ;;  %v3817_v8 = vpop.f32.mrb[51].mxu0  ;;  %v3858_v12 = vmax.f32 %v3850_v41, 0.0 }
 0x5f5   : > { %v3853_v54 = vadd.f32 %v3847_v34, %v3817_v8  ;;  %v3859_v25 = vmax.f32 %v3851_v42, 0.0 }
 0x5f6   : > { %v3860_v22 = vmax.f32 %v3852_v5, 0.0 }
 0x5f7   : > { %v3861_v36 = vmax.f32 %v3853_v54, 0.0 }
 0x5f8   : > { %v3866_v13 = vpack.c.bf16 %v3860_v22, %v3858_v12 }
 0x5f9   : > { %v3867_v21 = vpack.c.bf16 %v3861_v36, %v3859_v25  ;;  %v3821_v26 = vpop.f32.mrb[52].mxu0 }
 0x5fa   : > { %v3854_v60 = vadd.f32 %v3843_v29, %v3821_v26  ;;  %v3823_v52 = vpop.f32.mrb[53].mxu0 }
 0x5fb   : > { %v3855_v15 = vadd.f32 %v3847_v34, %v3823_v52  ;;  %v3825_v20 = vpop.f32.mrb[54].mxu0  ;;  %4239 = vmatprep.mubr.bf16.mxu1 %v3867_v21 }
 0x5fc   : > { %v3856_v31 = vadd.f32 %v3843_v29, %v3825_v20  ;;  %v3827_v28 = vpop.f32.mrb[55].mxu0  ;;  %4240 = vmatmul.mubr.bf16.vlgmr.msra.gmra.mrb[64].mxu1 %v3866_v13  ;;  %v3862_v23 = vmax.f32 %v3854_v60, 0.0  ;;  %v7737_v60 = vld [vmem:[%s10192_s9] sm:$0xff]  }
 0x5fd   : > { %v3857_v32 = vadd.f32 %v3847_v34, %v3827_v28  ;;  %6950 = vmatpush3.bf16.msra.mxu1 %v7722_v30  ;;  %v3863_v7 = vmax.f32 %v3855_v15, 0.0 }
 0x5fe   : > { %v3864_v57 = vmax.f32 %v3856_v31, 0.0  ;;  %6951 = vmatprep.subr.bf16.mxu1 %v7723_v38  ;;  %v3947_v38 = vrot.slane %v3934_v3, %v1903_v53  ;;  %v7745_v3 = vld [vmem:[%s10193_s10 + $0x1a0] ss:$8 sps:$4 sm:$0xff]  }
 0x5ff   : > { %v3865_v17 = vmax.f32 %v3857_v32, 0.0 }
 0x600   : > { %v3868_v18 = vpack.c.bf16 %v3864_v57, %v3862_v23 }
 0x601   : > { %v3869_v55 = vpack.c.bf16 %v3865_v17, %v3863_v7  ;;  %6952 = vmatpush3.bf16.msra.mxu1 %v7724_v62 }
 0x602   : > { %6953 = vmatprep.subr.bf16.mxu1 %v7725_v58 }
 0x603   : > { %4249 = vmatprep.mubr.bf16.mxu1 %v3869_v55 }
 0x604   : > { %4250 = vmatmul.mubr.bf16.gmra.mrb[68].mxu1 %v3868_v18 }
 0x605   : > { %6954 = vmatpush3.bf16.msra.mxu1 %v7726_v48  ;;  %4292 = vmatprep.mubr.bf16.mxu1 %v3867_v21 }
 0x606   : > { %6955 = vmatprep.subr.bf16.mxu1 %v7727_v56 }
 0x609   : > { %6956 = vmatpush3.bf16.msra.mxu1 %v7728_v0 }
 0x60a   : > { %6957 = vmatprep.subr.bf16.mxu1 %v7729_v9 }
 0x60d   : > { %6958 = vmatpush3.bf16.msra.mxu1 %v7730_v59 }
 0x60e   : > { %6959 = vmatprep.subr.bf16.mxu1 %v7731_v11 }
 0x611   : > { %6960 = vmatpush3.bf16.msra.mxu1 %v7732_v37  ;;  %v7738_v37 = vld [vmem:[%s10192_s9 + $0x8] sm:$0xff]  }
 0x612   : > { %6961 = vmatprep.subr.bf16.mxu1 %v7733_v63  ;;  %v7741_v63 = vld [vmem:[%s10193_s10 + $0x184] ss:$8 sps:$4 sm:$0xff]  }
 0x615   : > { %6962 = vmatpush3.bf16.msra.mxu1 %v7734_v45  ;;  %v7739_v45 = vld [vmem:[%s10193_s10 + $0x180] ss:$8 sps:$4 sm:$0xff]  }
 0x616   : > { %6963 = vmatprep.subr.bf16.mxu1 %v7735_v51  ;;  %v7744_v51 = vld [vmem:[%s10193_s10 + $0x194] ss:$8 sps:$4 sm:$0xff]  }
 0x619   : > { %6964 = vmatpush3.bf16.msra.mxu1 %v7736_v16  ;;  %v7742_v16 = vld [vmem:[%s10193_s10 + $0x190] ss:$8 sps:$4 sm:$0xff]  }
 0x61c   : > { %4293 = vmatmul.mubr.bf16.vlgmr.msra.gmra.mrb[72].mxu1 %v3866_v13 }
 0x61d   : > { %4300 = vmatprep.mubr.bf16.mxu1 %v3869_v55 }
 0x624   : > { %4301 = vmatmul.mubr.bf16.gmra.mrb[76].mxu1 %v3868_v18 }
 0x625   : > { %4370 = vmatprep.mubr.bf16.mxu1 %v8008_v50 }
 0x6cf   : > { %v4241_v4 = vpop.f32.mrb[64].mxu1 }
 0x6d0   : > { %v4242_v6 = vadd.f32 %v4241_v4, %v3939_v61  ;;  %v4243_v10 = vpop.f32.mrb[65].mxu1  ;;  %v7753_v4 = vld [vmem:[%s10193_s10 + $0x1c4] ss:$8 sps:$4 sm:$0xff]  }
 0x6d1   : > { %v4244_v27 = vadd.f32 %v4243_v10, %v3943_v14  ;;  %v4245_v33 = vpop.f32.mrb[66].mxu1  ;;  %v7756_v10 = vld [vmem:[%s10193_s10 + $0x1d4] ss:$8 sps:$4 sm:$0xff]  }
 0x6d2   : > { %v4246_v47 = vadd.f32 %v4245_v33, %v3939_v61  ;;  %v4247_v2 = vpop.f32.mrb[67].mxu1  ;;  %v4309_v39 = vmax.f32 %v4242_v6, 0.0  ;;  %v7751_v6 = vld [vmem:[%s10193_s10 + $0x1c0] ss:$8 sps:$4 sm:$0xff]   ;;  %v7759_v33 = vld [vmem:[%s10193_s10 + $0x1e4] ss:$8 sps:$4 sm:$0xff]  }
 0x6d3   : > { %v4248_v40 = vadd.f32 %v4247_v2, %v3943_v14  ;;  %v4310_v29 = vmax.f32 %v4244_v27, 0.0  ;;  %v7754_v27 = vld [vmem:[%s10193_s10 + $0x1d0] ss:$8 sps:$4 sm:$0xff]   ;;  %v7762_v2 = vld [vmem:[%s10193_s10 + $0x1f4] ss:$8 sps:$4 sm:$0xff]  }
 0x6d4   : > { %v4312_v19 = vmax.f32 %v4246_v47, 0.0  ;;  %v7757_v47 = vld [vmem:[%s10193_s10 + $0x1e0] ss:$8 sps:$4 sm:$0xff]  }
 0x6d5   : > { %v4313_v34 = vmax.f32 %v4248_v40, 0.0  ;;  %v7760_v40 = vld [vmem:[%s10193_s10 + $0x1f0] ss:$8 sps:$4 sm:$0xff]  }
 0x6d6   : > { %v9579_v35 = vpack.c.bf16 %v4312_v19, %v4309_v39  ;;  %v7765_v39 = vld [vmem:[%s10193_s10 + $0x204] ss:$8 sps:$4 sm:$0xff]   ;;  %v7763_v19 = vld [vmem:[%s10193_s10 + $0x200] ss:$8 sps:$4 sm:$0xff]  }
 0x6d7   : > { %v9581_v41 = vpack.c.bf16 %v4313_v34, %v4310_v29  ;;  %v4251_v1 = vpop.f32.mrb[68].mxu1  ;;  %v7768_v29 = vld [vmem:[%s10193_s10 + $0x214] ss:$8 sps:$4 sm:$0xff]   ;;  %v7766_v34 = vld [vmem:[%s10193_s10 + $0x210] ss:$8 sps:$4 sm:$0xff]  }
 0x6d8   : > { %v4252_v42 = vadd.f32 %v4251_v1, %v3939_v61  ;;  %v4253_v49 = vpop.f32.mrb[69].mxu1  ;;  %v7771_v1 = vld [vmem:[%s10193_s10 + $0x224] ss:$8 sps:$4 sm:$0xff]  }
 0x6d9   : > { %v4254_v5 = vadd.f32 %v4253_v49, %v3943_v14  ;;  %v4255_v8 = vpop.f32.mrb[70].mxu1  ;;  %4338 = vmatprep.subr.bf16.mxu1 %v9581_v41  ;;  %v7774_v49 = vld [vmem:[%s10193_s10 + $0x234] ss:$8 sps:$4 sm:$0xff]  }
 0x6da   : > { %v4256_v54 = vadd.f32 %v4255_v8, %v3939_v61  ;;  %v4257_v12 = vpop.f32.mrb[71].mxu1  ;;  %4339 = vmatpush1.bf16.msra.mxu1 %v9579_v35  ;;  %v4315_v25 = vmax.f32 %v4252_v42, 0.0  ;;  %v7750_v61 = vld [vmem:[%s10193_s10 + $0x1b4] ss:$8 sps:$4 sm:$0xff]   ;;  %v7769_v42 = vld [vmem:[%s10193_s10 + $0x220] ss:$8 sps:$4 sm:$0xff]  }
 0x6db   : > { %v4258_v22 = vadd.f32 %v4257_v12, %v3943_v14  ;;  %v4316_v13 = vmax.f32 %v4254_v5, 0.0  ;;  %v7748_v14 = vld [vmem:[%s10193_s10 + $0x1b0] ss:$8 sps:$4 sm:$0xff]   ;;  %v7777_v8 = vld [vmem:[%s10193_s10 + $0x244] ss:$8 sps:$4 sm:$0xff]  }
 0x6dc   : > { %v4318_v36 = vmax.f32 %v4256_v54, 0.0  ;;  %v7772_v5 = vld [vmem:[%s10193_s10 + $0x230] ss:$8 sps:$4 sm:$0xff]   ;;  %v7775_v54 = vld [vmem:[%s10193_s10 + $0x240] ss:$8 sps:$4 sm:$0xff]  }
 0x6dd   : > { %v4319_v21 = vmax.f32 %v4258_v22, 0.0  ;;  %v7780_v12 = vld [vmem:[%s10193_s10 + $0x254] ss:$8 sps:$4 sm:$0xff]   ;;  %v7778_v22 = vld [vmem:[%s10193_s10 + $0x250] ss:$8 sps:$4 sm:$0xff]  }
 0x6de   : > { %v9585_v26 = vpack.c.bf16 %v4318_v36, %v4315_v25  ;;  %v7781_v25 = vld [vmem:[%s10193_s10 + $0x260] ss:$8 sps:$4 sm:$0xff]   ;;  %v7783_v36 = vld [vmem:[%s10193_s10 + $0x264] ss:$8 sps:$4 sm:$0xff]  }
 0x6df   : > { %v9587_v30 = vpack.c.bf16 %v4319_v21, %v4316_v13  ;;  %v7786_v13 = vld [vmem:[%s10193_s10 + $0x274] ss:$8 sps:$4 sm:$0xff]   ;;  %v7784_v21 = vld [vmem:[%s10193_s10 + $0x270] ss:$8 sps:$4 sm:$0xff]  }
 0x6e1   : > { %4340 = vmatprep.subr.bf16.mxu1 %v9587_v30 }
 0x6e2   : > { %4341 = vmatpush1.bf16.msra.mxu1 %v9585_v26 }
 0x6e3   : > { %7058 = vmatprep.subr.bf16.mxu1 %v8009_v24 }
 0x6e5   : > { %6633 = vmatmul.mubr.msk.bf16.vlgmr.msra.gmra.mrb[80].mxu1 %vm4334_vm4, %v7737_v60 }
 0x6e6   : > { %7062 = vmatprep.mubr.msk.bf16.mxu1 %vm8010_vm3, %v8009_v24 }
 0x6ef   : > { %v6965_v52 = vpop.f32.mrb[72].mxu1 }
 0x6f0   : > { %v6966_v15 = vpop.f32.mrb[73].mxu1 }
 0x6f1   : > { %v6967_v20 = vadd.f32 %v6966_v15, %v6965_v52  ;;  %v6968_v31 = vpop.f32.mrb[74].mxu1 }
 0x6f2   : > { %v6969_v28 = vpop.f32.mrb[75].mxu1 }
 0x6f3   : > { %v4295_v32 = vadd.f32 %v6967_v20, %v3947_v38  ;;  %v6970_v62 = vadd.f32 %v6969_v28, %v6968_v31 }
 0x6f5   : > { %v4298_v23 = vadd.f32 %v6970_v62, %v3947_v38  ;;  %v4311_v57 = vmax.f32 %v4295_v32, 0.0 }
 0x6f7   : > { %v4314_v58 = vmax.f32 %v4298_v23, 0.0  ;;  %v6971_v7 = vpop.f32.mrb[76].mxu1 }
 0x6f8   : > { %v6972_v17 = vpop.f32.mrb[77].mxu1 }
 0x6f9   : > { %v4323_v18 = vpack.c.bf16 %v4314_v58, %v4311_v57  ;;  %v6973_v55 = vadd.f32 %v6972_v17, %v6971_v7  ;;  %v6974_v48 = vpop.f32.mrb[78].mxu1 }
 0x6fa   : > { %v6975_v56 = vpop.f32.mrb[79].mxu1 }
 0x6fb   : > { %v4303_v0 = vadd.f32 %v6973_v55, %v3947_v38  ;;  %v6976_v9 = vadd.f32 %v6975_v56, %v6974_v48  ;;  %7059 = vmatpush3.bf16.msra.mxu1 %v4323_v18  ;;  %7075 = vmatpush3.bf16.msra.mxu0 %v4323_v18 }
 0x6fc   : > { %7060 = vmatprep.subr.bf16.mxu1 %v8009_v24  ;;  %7076 = vmatprep.subr.bf16.mxu0 %v8009_v24 }
 0x6fd   : > { %v4306_v43 = vadd.f32 %v6976_v9, %v3947_v38  ;;  %v4317_v53 = vmax.f32 %v4303_v0, 0.0  ;;  %v7787_v0 = vld [vmem:[%s10193_s10 + $0x280] ss:$8 sps:$4 sm:$0xff]   ;;  %v7792_v9 = vld [vmem:[%s10193_s10 + $0x294] ss:$8 sps:$4 sm:$0xff]  }
 0x6ff   : > { %v4320_v59 = vmax.f32 %v4306_v43, 0.0  ;;  %v7790_v43 = vld [vmem:[%s10193_s10 + $0x290] ss:$8 sps:$4 sm:$0xff]  }
 0x701   : > { %v4326_v11 = vpack.c.bf16 %v4320_v59, %v4317_v53  ;;  %v7795_v59 = vld [vmem:[%s10193_s10 + $0x2a4] ss:$8 sps:$4 sm:$0xff]  }
 0x703   : > { %7061 = vmatpush3.bf16.msra.mxu1 %v4326_v11  ;;  %7077 = vmatpush3.bf16.msra.mxu0 %v4326_v11 }
 0x704   : > { %4484 = vmatprep.subr.bf16.mxu1 %v9581_v41 }
 0x706   : > { %7063 = vmatmul.mubr.msk.bf16.vlgmr.msra.gmra.mrb[84].mxu1 %vm4334_vm4, %v7737_v60  ;;  %v7789_v60 = vld [vmem:[%s10193_s10 + $0x284] ss:$8 sps:$4 sm:$0xff]  }
 0x707   : > { %4485 = vmatpush1.bf16.msra.mxu1 %v9579_v35  ;;  %4516 = vmatprep.mubr.bf16.mxu1 %v8008_v50 }
 0x708   : > { %4486 = vmatprep.subr.bf16.mxu1 %v9587_v30 }
 0x70b   : > { %4487 = vmatpush1.bf16.msra.mxu1 %v9585_v26 }
 0x70c   : > { %7066 = vmatprep.subr.bf16.mxu1 %v8009_v24 }
 0x70e   : > { %6638 = vmatmul.mubr.msk.bf16.vlgmr.msra.gmra.mrb[88].mxu1 %vm4334_vm4, %v7738_v37 }
 0x70f   : > { %7067 = vmatpush3.bf16.msra.mxu1 %v4323_v18  ;;  %7070 = vmatprep.mubr.msk.bf16.mxu1 %vm8010_vm3, %v8009_v24 }
 0x710   : > { %7068 = vmatprep.subr.bf16.mxu1 %v8009_v24  ;;  %v7747_v24 = vld [vmem:[%s10193_s10 + $0x1a4] ss:$8 sps:$4 sm:$0xff]  }
 0x713   : > { %7069 = vmatpush3.bf16.msra.mxu1 %v4326_v11 }
 0x714   : > { %4860 = vmatprep.subr.bf16.mxu1 %v7741_v63 }
 0x716   : > { %7071 = vmatmul.mubr.msk.bf16.vlgmr.msra.gmra.mrb[92].mxu1 %vm4334_vm4, %v7738_v37 }
 0x717   : > { %4861 = vmatpush1.bf16.msra.mxu1 %v7739_v45 }
 0x718   : > { %4862 = vmatprep.subr.bf16.mxu1 %v7744_v51  ;;  %v7793_v51 = vld [vmem:[%s10193_s10 + $0x2a0] ss:$8 sps:$4 sm:$0xff]  }
 0x71b   : > { %4863 = vmatpush1.bf16.msra.mxu1 %v7742_v16  ;;  %v9747_v16 = vld [vmem:[%s10192_s9 + $0x10] sm:$0xff]  }
 0x71c   : > { %4864 = vmatprep.subr.bf16.mxu1 %v7747_v24  ;;  %v7798_v24 = vld [vmem:[%s10193_s10 + $0x2b4] ss:$8 sps:$4 sm:$0xff]   ;;  %7079 = vmatmul.mubr.msk.bf16.vlgmr.msra.gmra.mrb[56].mxu0 %vm4334_vm4, %v9747_v16 }
 0x71f   : > { %4865 = vmatpush1.bf16.msra.mxu1 %v7745_v3  ;;  %v7796_v3 = vld [vmem:[%s10193_s10 + $0x2b0] ss:$8 sps:$4 sm:$0xff]  }
 0x720   : > { %4866 = vmatprep.subr.bf16.mxu1 %v7750_v61  ;;  %v7801_v61 = vld [vmem:[%s10193_s10 + $0x2c4] ss:$8 sps:$4 sm:$0xff]  }
 0x723   : > { %4867 = vmatpush1.bf16.msra.mxu1 %v7748_v14  ;;  %v7799_v14 = vld [vmem:[%s10193_s10 + $0x2c0] ss:$8 sps:$4 sm:$0xff]  }
 0x724   : > { %4868 = vmatprep.subr.bf16.mxu1 %v7753_v4  ;;  %v7804_v4 = vld [vmem:[%s10193_s10 + $0x2d4] ss:$8 sps:$4 sm:$0xff]  }
 0x727   : > { %4869 = vmatpush1.bf16.msra.mxu1 %v7751_v6  ;;  %v7802_v6 = vld [vmem:[%s10193_s10 + $0x2d0] ss:$8 sps:$4 sm:$0xff]  }
 0x728   : > { %4870 = vmatprep.subr.bf16.mxu1 %v7756_v10  ;;  %v7807_v10 = vld [vmem:[%s10193_s10 + $0x2e4] ss:$8 sps:$4 sm:$0xff]  }
 0x72b   : > { %4871 = vmatpush1.bf16.msra.mxu1 %v7754_v27  ;;  %v7805_v27 = vld [vmem:[%s10193_s10 + $0x2e0] ss:$8 sps:$4 sm:$0xff]  }
 0x72c   : > { %4872 = vmatprep.subr.bf16.mxu1 %v7759_v33  ;;  %v7810_v33 = vld [vmem:[%s10193_s10 + $0x2f4] ss:$8 sps:$4 sm:$0xff]  }
 0x72f   : > { %4873 = vmatpush1.bf16.msra.mxu1 %v7757_v47  ;;  %v7808_v47 = vld [vmem:[%s10193_s10 + $0x2f0] ss:$8 sps:$4 sm:$0xff]  }
 0x730   : > { %4874 = vmatprep.subr.bf16.mxu1 %v7762_v2  ;;  %v7813_v2 = vld [vmem:[%s10193_s10 + $0x4] ss:$8 sps:$4 sm:$0xff]  }
 0x733   : > { %4875 = vmatpush1.bf16.msra.mxu1 %v7760_v40  ;;  %v7811_v40 = vld [vmem:[%s10193_s10] ss:$8 sps:$4 sm:$0xff]  }
 0x734   : > { %4876 = vmatprep.subr.bf16.mxu1 %v7765_v39  ;;  %v7816_v39 = vld [vmem:[%s10193_s10 + $0x14] ss:$8 sps:$4 sm:$0xff]  }
 0x737   : > { %4877 = vmatpush1.bf16.msra.mxu1 %v7763_v19  ;;  %v7814_v19 = vld [vmem:[%s10193_s10 + $0x10] ss:$8 sps:$4 sm:$0xff]  }
 0x738   : > { %4878 = vmatprep.subr.bf16.mxu1 %v7768_v29  ;;  %v7819_v29 = vld [vmem:[%s10193_s10 + $0x24] ss:$8 sps:$4 sm:$0xff]  }
 0x73b   : > { %4879 = vmatpush1.bf16.msra.mxu1 %v7766_v34  ;;  %v7817_v34 = vld [vmem:[%s10193_s10 + $0x20] ss:$8 sps:$4 sm:$0xff]  }
 0x73c   : > { %4880 = vmatprep.subr.bf16.mxu1 %v7771_v1  ;;  %v7822_v1 = vld [vmem:[%s10193_s10 + $0x34] ss:$8 sps:$4 sm:$0xff]  }
 0x73f   : > { %4881 = vmatpush1.bf16.msra.mxu1 %v7769_v42  ;;  %v7820_v42 = vld [vmem:[%s10193_s10 + $0x30] ss:$8 sps:$4 sm:$0xff]  }
 0x740   : > { %4882 = vmatprep.subr.bf16.mxu1 %v7774_v49  ;;  %v7825_v49 = vld [vmem:[%s10193_s10 + $0x44] ss:$8 sps:$4 sm:$0xff]  }
 0x743   : > { %4883 = vmatpush1.bf16.msra.mxu1 %v7772_v5  ;;  %v7823_v5 = vld [vmem:[%s10193_s10 + $0x40] ss:$8 sps:$4 sm:$0xff]  }
 0x744   : > { %4884 = vmatprep.subr.bf16.mxu1 %v7777_v8  ;;  %v7828_v8 = vld [vmem:[%s10193_s10 + $0x54] ss:$8 sps:$4 sm:$0xff]  }
 0x747   : > { %4885 = vmatpush1.bf16.msra.mxu1 %v7775_v54  ;;  %v7826_v54 = vld [vmem:[%s10193_s10 + $0x50] ss:$8 sps:$4 sm:$0xff]  }
 0x748   : > { %4886 = vmatprep.subr.bf16.mxu1 %v7780_v12  ;;  %v7831_v12 = vld [vmem:[%s10193_s10 + $0x64] ss:$8 sps:$4 sm:$0xff]  }
 0x74b   : > { %4887 = vmatpush1.bf16.msra.mxu1 %v7778_v22  ;;  %v7829_v22 = vld [vmem:[%s10193_s10 + $0x60] ss:$8 sps:$4 sm:$0xff]  }
 0x74c   : > { %4888 = vmatprep.subr.bf16.mxu1 %v7783_v36  ;;  %v7832_v36 = vld [vmem:[%s10193_s10 + $0x70] ss:$8 sps:$4 sm:$0xff]  }
 0x74f   : > { %4889 = vmatpush1.bf16.msra.mxu1 %v7781_v25  ;;  %v7834_v25 = vld [vmem:[%s10193_s10 + $0x74] ss:$8 sps:$4 sm:$0xff]  }
 0x750   : > { %4890 = vmatprep.subr.bf16.mxu1 %v7786_v13  ;;  %v7837_v13 = vld [vmem:[%s10193_s10 + $0x84] ss:$8 sps:$4 sm:$0xff]  }
 0x753   : > { %4891 = vmatpush1.bf16.msra.mxu1 %v7784_v21  ;;  %v7835_v21 = vld [vmem:[%s10193_s10 + $0x80] ss:$8 sps:$4 sm:$0xff]  }
 0x754   : > { %4903 = vmatprep.subr.bf16.mxu1 %v7789_v60  ;;  %v7840_v60 = vld [vmem:[%s10193_s10 + $0x94] ss:$8 sps:$4 sm:$0xff]  }
 0x7b8   : > { %v9716_v52 = vpop.f32.mrb[80].mxu1 }
 0x7b9   : > { %v4374_v38 = vpop.f32.mrb[81].mxu1 }
 0x7ba   : > { %v9718_v15 = vpop.f32.mrb[82].mxu1 }
 0x7bb   : > { %v4422_v20 = vpack.c.bf16 %v9718_v15, %v9716_v52  ;;  %v4378_v31 = vpop.f32.mrb[83].mxu1  ;;  %v7870_v52 = vld [vmem:[%s10193_s10 + $0x134] ss:$8 sps:$4 sm:$0xff]   ;;  %v7868_v15 = vld [vmem:[%s10193_s10 + $0x130] ss:$8 sps:$4 sm:$0xff]  }
 0x7bc   : > { %v4423_v28 = vpack.c.bf16 %v4378_v31, %v4374_v38  ;;  %v7838_v38 = vld [vmem:[%s10193_s10 + $0x90] ss:$8 sps:$4 sm:$0xff]   ;;  %v7843_v31 = vld [vmem:[%s10193_s10 + $0xa4] ss:$8 sps:$4 sm:$0xff]  }
 0x7d9   : > { %v9722_v32 = vpop.f32.mrb[84].mxu1 }
 0x7da   : > { %v7064_v62 = vpop.f32.mrb[85].mxu1 }
 0x7db   : > { %v9724_v23 = vpop.f32.mrb[86].mxu1  ;;  %v7846_v62 = vld [vmem:[%s10193_s10 + $0xb4] ss:$8 sps:$4 sm:$0xff]  }
 0x7dc   : > { %v4424_v57 = vpack.c.bf16 %v9724_v23, %v9722_v32  ;;  %v7065_v58 = vpop.f32.mrb[87].mxu1  ;;  %v7889_v32 = vld [vmem:[%s10193_s10 + $0x314] ss:$8 sps:$4 sm:$0xff]  }
 0x7dd   : > { %v7844_v58 = vld [vmem:[%s10193_s10 + $0xb0] ss:$8 sps:$4 sm:$0xff]   ;;  %v7895_v23 = vld [vmem:[%s10193_s10 + $0x334] ss:$8 sps:$4 sm:$0xff]  }
 0x7e1   : > { %v4518_v7 = vpop.f32.mrb[88].mxu1 }
 0x7e2   : > { %v4520_v17 = vpop.f32.mrb[89].mxu1 }
 0x7e3   : > { %v4522_v18 = vpop.f32.mrb[90].mxu1 }
 0x7e4   : > { %v4568_v55 = vpack.c.bf16 %v4522_v18, %v4518_v7  ;;  %v4524_v48 = vpop.f32.mrb[91].mxu1  ;;  %v7849_v7 = vld [vmem:[%s10193_s10 + $0xc4] ss:$8 sps:$4 sm:$0xff]   ;;  %v7852_v18 = vld [vmem:[%s10193_s10 + $0xd4] ss:$8 sps:$4 sm:$0xff]  }
 0x7e5   : > { %v4569_v56 = vpack.c.bf16 %v4524_v48, %v4520_v17  ;;  %v7847_v17 = vld [vmem:[%s10193_s10 + $0xc0] ss:$8 sps:$4 sm:$0xff]   ;;  %v7855_v48 = vld [vmem:[%s10193_s10 + $0xe4] ss:$8 sps:$4 sm:$0xff]  }
 0x7e7   : > { %4892 = vmatprep.mubr.bf16.mxu1 %v4569_v56  ;;  %v7853_v56 = vld [vmem:[%s10193_s10 + $0xe0] ss:$8 sps:$4 sm:$0xff]  }
 0x7e8   : > { %4893 = vmatmul.mubr.bf16.vlgmr.msra.gmra.mrb[96].mxu1 %v4568_v55  ;;  %v7850_v55 = vld [vmem:[%s10193_s10 + $0xd0] ss:$8 sps:$4 sm:$0xff]  }
 0x7e9   : > { %4904 = vmatpush1.bf16.msra.mxu1 %v7787_v0  ;;  %v4561_v53 = vpop.f32.mrb[92].mxu1  ;;  %4935 = vmatprep.mubr.bf16.mxu1 %v8008_v50  ;;  %v7858_v0 = vld [vmem:[%s10193_s10 + $0xf4] ss:$8 sps:$4 sm:$0xff]  }
 0x7ea   : > { %4905 = vmatprep.subr.bf16.mxu1 %v7792_v9  ;;  %v7072_v11 = vpop.f32.mrb[93].mxu1  ;;  %v7856_v9 = vld [vmem:[%s10193_s10 + $0xf0] ss:$8 sps:$4 sm:$0xff]  }
 0x7eb   : > { %v4564_v37 = vpop.f32.mrb[94].mxu1  ;;  %v7862_v11 = vld [vmem:[%s10193_s10 + $0x110] ss:$8 sps:$4 sm:$0xff]  }
 0x7ec   : > { %v4570_v63 = vpack.c.bf16 %v4564_v37, %v4561_v53  ;;  %v7073_v45 = vpop.f32.mrb[95].mxu1  ;;  %v7859_v53 = vld [vmem:[%s10193_s10 + $0x100] ss:$8 sps:$4 sm:$0xff]   ;;  %v7867_v37 = vld [vmem:[%s10193_s10 + $0x124] ss:$8 sps:$4 sm:$0xff]  }
 0x7ed   : > { %4906 = vmatpush1.bf16.msra.mxu1 %v7790_v43  ;;  %v7861_v43 = vld [vmem:[%s10193_s10 + $0x104] ss:$8 sps:$4 sm:$0xff]   ;;  %v7871_v45 = vld [vmem:[%s10193_s10 + $0x140] ss:$8 sps:$4 sm:$0xff]  }
 0x7ee   : > { %4907 = vmatprep.subr.bf16.mxu1 %v7795_v59  ;;  %v7864_v59 = vld [vmem:[%s10193_s10 + $0x114] ss:$8 sps:$4 sm:$0xff]  }
 0x7f1   : > { %4908 = vmatpush1.bf16.msra.mxu1 %v7793_v51  ;;  %v7876_v51 = vld [vmem:[%s10193_s10 + $0x154] ss:$8 sps:$4 sm:$0xff]  }
 0x7f2   : > { %4909 = vmatprep.subr.bf16.mxu1 %v7798_v24  ;;  %v7874_v24 = vld [vmem:[%s10193_s10 + $0x150] ss:$8 sps:$4 sm:$0xff]  }
 0x7f5   : > { %4910 = vmatpush1.bf16.msra.mxu1 %v7796_v3  ;;  %v7879_v3 = vld [vmem:[%s10193_s10 + $0x164] ss:$8 sps:$4 sm:$0xff]  }
 0x7f6   : > { %4911 = vmatprep.subr.bf16.mxu1 %v7801_v61  ;;  %v7877_v61 = vld [vmem:[%s10193_s10 + $0x160] ss:$8 sps:$4 sm:$0xff]  }
 0x7f9   : > { %4912 = vmatpush1.bf16.msra.mxu1 %v7799_v14  ;;  %v7882_v14 = vld [vmem:[%s10193_s10 + $0x174] ss:$8 sps:$4 sm:$0xff]  }
 0x7fa   : > { %4913 = vmatprep.subr.bf16.mxu1 %v7804_v4  ;;  %v7880_v4 = vld [vmem:[%s10193_s10 + $0x170] ss:$8 sps:$4 sm:$0xff]  }
 0x7fd   : > { %4914 = vmatpush1.bf16.msra.mxu1 %v7802_v6  ;;  %v7886_v6 = vld [vmem:[%s10193_s10 + $0x304] ss:$8 sps:$4 sm:$0xff]  }
 0x7fe   : > { %4915 = vmatprep.subr.bf16.mxu1 %v7807_v10  ;;  %v7896_v10 = vld [vmem:[%s10193_s10 + $0x340] ss:$8 sps:$4 sm:$0xff]  }
 0x801   : > { %4916 = vmatpush1.bf16.msra.mxu1 %v7805_v27  ;;  %v7901_v27 = vld [vmem:[%s10193_s10 + $0x354] ss:$8 sps:$4 sm:$0xff]  }
 0x802   : > { %4917 = vmatprep.subr.bf16.mxu1 %v7810_v33  ;;  %v7899_v33 = vld [vmem:[%s10193_s10 + $0x350] ss:$8 sps:$4 sm:$0xff]  }
 0x805   : > { %4918 = vmatpush1.bf16.msra.mxu1 %v7808_v47  ;;  %v7904_v47 = vld [vmem:[%s10193_s10 + $0x364] ss:$8 sps:$4 sm:$0xff]  }
 0x806   : > { %5186 = vmatprep.subr.bf16.mxu1 %v7813_v2  ;;  %v7902_v2 = vld [vmem:[%s10193_s10 + $0x360] ss:$8 sps:$4 sm:$0xff]  }
 0x808   : > { %4936 = vmatmul.mubr.bf16.vlgmr.msra.gmra.mrb[96].mxu1 %v4570_v63  ;;  %v7865_v63 = vld [vmem:[%s10193_s10 + $0x120] ss:$8 sps:$4 sm:$0xff]  }
 0x809   : > { %5187 = vmatpush1.bf16.msra.mxu1 %v7811_v40  ;;  %5218 = vmatprep.mubr.bf16.mxu1 %v4423_v28  ;;  %v7841_v28 = vld [vmem:[%s10193_s10 + $0xa0] ss:$8 sps:$4 sm:$0xff]   ;;  %v7907_v40 = vld [vmem:[%s10193_s10 + $0x374] ss:$8 sps:$4 sm:$0xff]  }
 0x80a   : > { %5188 = vmatprep.subr.bf16.mxu1 %v7816_v39  ;;  %v7905_v39 = vld [vmem:[%s10193_s10 + $0x370] ss:$8 sps:$4 sm:$0xff]  }
 0x80d   : > { %5189 = vmatpush1.bf16.msra.mxu1 %v7814_v19  ;;  %v7910_v19 = vld [vmem:[%s10193_s10 + $0x384] ss:$8 sps:$4 sm:$0xff]  }
 0x80e   : > { %5190 = vmatprep.subr.bf16.mxu1 %v7819_v29  ;;  %v7908_v29 = vld [vmem:[%s10193_s10 + $0x380] ss:$8 sps:$4 sm:$0xff]  }
 0x811   : > { %5191 = vmatpush1.bf16.msra.mxu1 %v7817_v34  ;;  %v7913_v34 = vld [vmem:[%s10193_s10 + $0x394] ss:$8 sps:$4 sm:$0xff]  }
 0x812   : > { %5192 = vmatprep.subr.bf16.mxu1 %v7822_v1  ;;  %v7911_v1 = vld [vmem:[%s10193_s10 + $0x390] ss:$8 sps:$4 sm:$0xff]  }
 0x815   : > { %5193 = vmatpush1.bf16.msra.mxu1 %v7820_v42  ;;  %v7916_v42 = vld [vmem:[%s10193_s10 + $0x3a4] ss:$8 sps:$4 sm:$0xff]  }
 0x816   : > { %5194 = vmatprep.subr.bf16.mxu1 %v7825_v49  ;;  %v7914_v49 = vld [vmem:[%s10193_s10 + $0x3a0] ss:$8 sps:$4 sm:$0xff]  }
 0x819   : > { %5195 = vmatpush1.bf16.msra.mxu1 %v7823_v5  ;;  %v7919_v5 = vld [vmem:[%s10193_s10 + $0x3b4] ss:$8 sps:$4 sm:$0xff]  }
 0x81a   : > { %5196 = vmatprep.subr.bf16.mxu1 %v7828_v8  ;;  %v7917_v8 = vld [vmem:[%s10193_s10 + $0x3b0] ss:$8 sps:$4 sm:$0xff]  }
 0x81d   : > { %5197 = vmatpush1.bf16.msra.mxu1 %v7826_v54  ;;  %v7922_v54 = vld [vmem:[%s10193_s10 + $0x3c4] ss:$8 sps:$4 sm:$0xff]  }
 0x81e   : > { %5198 = vmatprep.subr.bf16.mxu1 %v7831_v12  ;;  %v7920_v12 = vld [vmem:[%s10193_s10 + $0x3c0] ss:$8 sps:$4 sm:$0xff]  }
 0x821   : > { %5199 = vmatpush1.bf16.msra.mxu1 %v7829_v22  ;;  %v7925_v22 = vld [vmem:[%s10193_s10 + $0x3d4] ss:$8 sps:$4 sm:$0xff]  }
 0x822   : > { %5200 = vmatprep.subr.bf16.mxu1 %v7834_v25  ;;  %v7923_v25 = vld [vmem:[%s10193_s10 + $0x3d0] ss:$8 sps:$4 sm:$0xff]  }
 0x825   : > { %5201 = vmatpush1.bf16.msra.mxu1 %v7832_v36  ;;  %v7928_v36 = vld [vmem:[%s10193_s10 + $0x3e4] ss:$8 sps:$4 sm:$0xff]  }
 0x826   : > { %5202 = vmatprep.subr.bf16.mxu1 %v7837_v13  ;;  %v7926_v13 = vld [vmem:[%s10193_s10 + $0x3e0] ss:$8 sps:$4 sm:$0xff]  }
 0x829   : > { %5203 = vmatpush1.bf16.msra.mxu1 %v7835_v21  ;;  %v7931_v21 = vld [vmem:[%s10193_s10 + $0x3f4] ss:$8 sps:$4 sm:$0xff]  }
 0x82a   : > { %5204 = vmatprep.subr.bf16.mxu1 %v7840_v60  ;;  %v7929_v60 = vld [vmem:[%s10193_s10 + $0x3f0] ss:$8 sps:$4 sm:$0xff]  }
 0x82d   : > { %5205 = vmatpush1.bf16.msra.mxu1 %v7838_v38  ;;  %v7934_v38 = vld [vmem:[%s10193_s10 + $0x404] ss:$8 sps:$4 sm:$0xff]  }
 0x82e   : > { %5206 = vmatprep.subr.bf16.mxu1 %v7843_v31  ;;  %v10038_v31 = vpop.f32.mrb[56].mxu0 }
 0x831   : > { %5207 = vmatpush1.bf16.msra.mxu1 %v7841_v28  ;;  %v7080_v28 = vpop.f32.mrb[57].mxu0 }
 0x832   : > { %5208 = vmatprep.subr.bf16.mxu1 %v7846_v62  ;;  %v10040_v62 = vpop.f32.mrb[58].mxu0 }
 0x835   : > { %5209 = vmatpush1.bf16.msra.mxu1 %v7844_v58  ;;  %v5369_v58 = vpack.c.bf16 %v10040_v62, %v10038_v31 }
 0x836   : > { %5210 = vmatprep.subr.bf16.mxu1 %v7849_v7  ;;  %v7081_v7 = vpop.f32.mrb[59].mxu0 }
 0x839   : > { %5211 = vmatpush1.bf16.msra.mxu1 %v7847_v17  ;;  %v7956_v17 = vld [vmem:[%s10195_s12] ss:$8 sps:$4 sm:$0xff]  }
 0x83a   : > { %5212 = vmatprep.subr.bf16.mxu1 %v7852_v18  ;;  %v7958_v18 = vld [vmem:[%s10195_s12 + $0x4] ss:$8 sps:$4 sm:$0xff]  }
 0x83b   : > { %5931 = vmatprep.subr.bf16.mxu0 %v7958_v18 }
 0x83c   : > { %5932 = vmatpush1.bf16.msra.mxu0 %v7956_v17  ;;  %v5795_v17 = vld [vmem:[%s10196_s13] sm:$0x3] }
 0x83d   : > { %5213 = vmatpush1.bf16.msra.mxu1 %v7850_v55  ;;  %v7961_v55 = vld [vmem:[%s10195_s12 + $0x14] ss:$8 sps:$4 sm:$0xff]   ;;  %v5800_v18 = vrot.slane %v5795_v17, %v8526_v44 }
 0x83e   : > { %5214 = vmatprep.subr.bf16.mxu1 %v7855_v48  ;;  %v7959_v48 = vld [vmem:[%s10195_s12 + $0x10] ss:$8 sps:$4 sm:$0xff]   ;;  %5933 = vmatprep.subr.bf16.mxu0 %v7961_v55  ;;  %v5804_v55 = vrot.slane %v5795_v17, %v8532_v46 }
 0x840   : > { %5934 = vmatpush1.bf16.msra.mxu0 %v7959_v48 }
 0x841   : > { %5215 = vmatpush1.bf16.msra.mxu1 %v7853_v56  ;;  %v7964_v56 = vld [vmem:[%s10195_s12 + $0x24] ss:$8 sps:$4 sm:$0xff]  }
 0x842   : > { %5216 = vmatprep.subr.bf16.mxu1 %v7858_v0  ;;  %v7962_v0 = vld [vmem:[%s10195_s12 + $0x20] ss:$8 sps:$4 sm:$0xff]   ;;  %5935 = vmatprep.subr.bf16.mxu0 %v7964_v56 }
 0x844   : > { %5936 = vmatpush1.bf16.msra.mxu0 %v7962_v0 }
 0x845   : > { %5217 = vmatpush1.bf16.msra.mxu1 %v7856_v9  ;;  %v7967_v9 = vld [vmem:[%s10195_s12 + $0x34] ss:$8 sps:$4 sm:$0xff]  }
 0x846   : > { %5229 = vmatprep.subr.bf16.mxu1 %v7861_v43  ;;  %v7965_v43 = vld [vmem:[%s10195_s12 + $0x30] ss:$8 sps:$4 sm:$0xff]   ;;  %5937 = vmatprep.subr.bf16.mxu0 %v7967_v9 }
 0x848   : > { %5219 = vmatmul.mubr.bf16.vlgmr.msra.gmra.mrb[96].mxu1 %v4422_v20  ;;  %v7873_v20 = vld [vmem:[%s10193_s10 + $0x144] ss:$8 sps:$4 sm:$0xff]   ;;  %5938 = vmatpush1.bf16.msra.mxu0 %v7965_v43 }
 0x849   : > { %5230 = vmatpush1.bf16.msra.mxu1 %v7859_v53  ;;  %5261 = vmatprep.mubr.bf16.mxu1 %v8008_v50  ;;  %v7970_v53 = vld [vmem:[%s10195_s12 + $0x44] ss:$8 sps:$4 sm:$0xff]  }
 0x84a   : > { %5231 = vmatprep.subr.bf16.mxu1 %v7864_v59  ;;  %v7968_v59 = vld [vmem:[%s10195_s12 + $0x40] ss:$8 sps:$4 sm:$0xff]   ;;  %5939 = vmatprep.subr.bf16.mxu0 %v7970_v53 }
 0x84c   : > { %5940 = vmatpush1.bf16.msra.mxu0 %v7968_v59 }
 0x84d   : > { %5232 = vmatpush1.bf16.msra.mxu1 %v7862_v11  ;;  %v7973_v11 = vld [vmem:[%s10195_s12 + $0x54] ss:$8 sps:$4 sm:$0xff]  }
 0x84e   : > { %5233 = vmatprep.subr.bf16.mxu1 %v7867_v37  ;;  %v7971_v37 = vld [vmem:[%s10195_s12 + $0x50] ss:$8 sps:$4 sm:$0xff]   ;;  %5941 = vmatprep.subr.bf16.mxu0 %v7973_v11 }
 0x850   : > { %5942 = vmatpush1.bf16.msra.mxu0 %v7971_v37 }
 0x851   : > { %5234 = vmatpush1.bf16.msra.mxu1 %v7865_v63  ;;  %v7976_v63 = vld [vmem:[%s10195_s12 + $0x64] ss:$8 sps:$4 sm:$0xff]  }
 0x852   : > { %5235 = vmatprep.subr.bf16.mxu1 %v7870_v52  ;;  %v7974_v52 = vld [vmem:[%s10195_s12 + $0x60] ss:$8 sps:$4 sm:$0xff]   ;;  %5943 = vmatprep.subr.bf16.mxu0 %v7976_v63 }
 0x854   : > { %5944 = vmatpush1.bf16.msra.mxu0 %v7974_v52 }
 0x855   : > { %5236 = vmatpush1.bf16.msra.mxu1 %v7868_v15  ;;  %v7979_v15 = vld [vmem:[%s10195_s12 + $0x74] ss:$8 sps:$4 sm:$0xff]  }
 0x856   : > { %5237 = vmatprep.subr.bf16.mxu1 %v7873_v20  ;;  %v7977_v20 = vld [vmem:[%s10195_s12 + $0x70] ss:$8 sps:$4 sm:$0xff]   ;;  %5945 = vmatprep.subr.bf16.mxu0 %v7979_v15 }
 0x858   : > { %5946 = vmatpush1.bf16.msra.mxu0 %v7977_v20 }
 0x859   : > { %5238 = vmatpush1.bf16.msra.mxu1 %v7871_v45  ;;  %v7982_v45 = vld [vmem:[%s10195_s12 + $0x84] ss:$8 sps:$4 sm:$0xff]  }
 0x85a   : > { %5239 = vmatprep.subr.bf16.mxu1 %v7876_v51  ;;  %v7980_v51 = vld [vmem:[%s10195_s12 + $0x80] ss:$8 sps:$4 sm:$0xff]   ;;  %5947 = vmatprep.subr.bf16.mxu0 %v7982_v45 }
 0x85c   : > { %5948 = vmatpush1.bf16.msra.mxu0 %v7980_v51 }
 0x85d   : > { %5240 = vmatpush1.bf16.msra.mxu1 %v7874_v24  ;;  %v7985_v24 = vld [vmem:[%s10195_s12 + $0x94] ss:$8 sps:$4 sm:$0xff]  }
 0x85e   : > { %5241 = vmatprep.subr.bf16.mxu1 %v7879_v3  ;;  %v7983_v3 = vld [vmem:[%s10195_s12 + $0x90] ss:$8 sps:$4 sm:$0xff]   ;;  %5949 = vmatprep.subr.bf16.mxu0 %v7985_v24 }
 0x860   : > { %5950 = vmatpush1.bf16.msra.mxu0 %v7983_v3 }
 0x861   : > { %5242 = vmatpush1.bf16.msra.mxu1 %v7877_v61 }
 0x862   : > { %5243 = vmatprep.subr.bf16.mxu1 %v7882_v14 }
 0x865   : > { %5244 = vmatpush1.bf16.msra.mxu1 %v7880_v4 }
 0x866   : > { %5283 = vmatprep.subr.bf16.mxu1 %v9581_v41  ;;  %v7884_v41 = vld [vmem:[%s10193_s10 + $0x300] ss:$8 sps:$4 sm:$0xff]  }
 0x868   : > { %5262 = vmatmul.mubr.bf16.vlgmr.msra.gmra.mrb[96].mxu1 %v4424_v57  ;;  %v7893_v57 = vld [vmem:[%s10193_s10 + $0x330] ss:$8 sps:$4 sm:$0xff]  }
 0x869   : > { %5284 = vmatpush1.bf16.msra.mxu1 %v9579_v35  ;;  %5315 = vmatprep.mubr.bf16.mxu1 %v8008_v50  ;;  %v7887_v35 = vld [vmem:[%s10193_s10 + $0x310] ss:$8 sps:$4 sm:$0xff]  }
 0x86a   : > { %5285 = vmatprep.subr.bf16.mxu1 %v9587_v30  ;;  %v7890_v30 = vld [vmem:[%s10193_s10 + $0x320] ss:$8 sps:$4 sm:$0xff]  }
 0x86d   : > { %5286 = vmatpush1.bf16.msra.mxu1 %v9585_v26  ;;  %v7892_v26 = vld [vmem:[%s10193_s10 + $0x324] ss:$8 sps:$4 sm:$0xff]  }
 0x86e   : > { %5659 = vmatprep.subr.bf16.mxu1 %v7886_v6 }
 0x870   : > { %6787 = vmatmul.mubr.msk.bf16.vlgmr.msra.gmra.mrb[100].mxu1 %vm4334_vm4, %v9747_v16  ;;  %v7898_v16 = vld [vmem:[%s10193_s10 + $0x344] ss:$8 sps:$4 sm:$0xff]  }
 0x871   : > { %5660 = vmatpush1.bf16.msra.mxu1 %v7884_v41 }
 0x872   : > { %5661 = vmatprep.subr.bf16.mxu1 %v7889_v32 }
 0x875   : > { %5662 = vmatpush1.bf16.msra.mxu1 %v7887_v35  ;;  %v7932_v35 = vld [vmem:[%s10193_s10 + $0x400] ss:$8 sps:$4 sm:$0xff]  }
 0x876   : > { %5663 = vmatprep.subr.bf16.mxu1 %v7892_v26  ;;  %v7937_v26 = vld [vmem:[%s10193_s10 + $0x414] ss:$8 sps:$4 sm:$0xff]  }
 0x879   : > { %5664 = vmatpush1.bf16.msra.mxu1 %v7890_v30  ;;  %v7935_v30 = vld [vmem:[%s10193_s10 + $0x410] ss:$8 sps:$4 sm:$0xff]  }
 0x87a   : > { %5665 = vmatprep.subr.bf16.mxu1 %v7895_v23  ;;  %v7940_v23 = vld [vmem:[%s10193_s10 + $0x424] ss:$8 sps:$4 sm:$0xff]  }
 0x87d   : > { %5666 = vmatpush1.bf16.msra.mxu1 %v7893_v57  ;;  %v7938_v57 = vld [vmem:[%s10193_s10 + $0x420] ss:$8 sps:$4 sm:$0xff]  }
 0x87e   : > { %5667 = vmatprep.subr.bf16.mxu1 %v7898_v16  ;;  %v7943_v16 = vld [vmem:[%s10193_s10 + $0x434] ss:$8 sps:$4 sm:$0xff]  }
 0x881   : > { %5668 = vmatpush1.bf16.msra.mxu1 %v7896_v10  ;;  %v7946_v10 = vld [vmem:[%s10193_s10 + $0x444] ss:$8 sps:$4 sm:$0xff]  }
 0x882   : > { %5669 = vmatprep.subr.bf16.mxu1 %v7901_v27  ;;  %v7944_v27 = vld [vmem:[%s10193_s10 + $0x440] ss:$8 sps:$4 sm:$0xff]  }
 0x885   : > { %5670 = vmatpush1.bf16.msra.mxu1 %v7899_v33  ;;  %v7949_v33 = vld [vmem:[%s10193_s10 + $0x454] ss:$8 sps:$4 sm:$0xff]  }
 0x886   : > { %5671 = vmatprep.subr.bf16.mxu1 %v7904_v47  ;;  %v7947_v47 = vld [vmem:[%s10193_s10 + $0x450] ss:$8 sps:$4 sm:$0xff]  }
 0x889   : > { %5672 = vmatpush1.bf16.msra.mxu1 %v7902_v2  ;;  %v7952_v2 = vld [vmem:[%s10193_s10 + $0x464] ss:$8 sps:$4 sm:$0xff]  }
 0x88a   : > { %5673 = vmatprep.subr.bf16.mxu1 %v7907_v40  ;;  %v7950_v40 = vld [vmem:[%s10193_s10 + $0x460] ss:$8 sps:$4 sm:$0xff]  }
 0x88d   : > { %5674 = vmatpush1.bf16.msra.mxu1 %v7905_v39  ;;  %v7955_v39 = vld [vmem:[%s10193_s10 + $0x474] ss:$8 sps:$4 sm:$0xff]  }
 0x88e   : > { %5675 = vmatprep.subr.bf16.mxu1 %v7910_v19  ;;  %v7953_v19 = vld [vmem:[%s10193_s10 + $0x470] ss:$8 sps:$4 sm:$0xff]  }
 0x891   : > { %5676 = vmatpush1.bf16.msra.mxu1 %v7908_v29  ;;  %v7988_v29 = vld [vmem:[%s10195_s12 + $0xa4] ss:$8 sps:$4 sm:$0xff]  }
 0x892   : > { %5677 = vmatprep.subr.bf16.mxu1 %v7913_v34  ;;  %v7986_v34 = vld [vmem:[%s10195_s12 + $0xa0] ss:$8 sps:$4 sm:$0xff]   ;;  %5951 = vmatprep.subr.bf16.mxu0 %v7988_v29 }
 0x893   : > { %5952 = vmatpush1.bf16.msra.mxu0 %v7986_v34 }
 0x895   : > { %5678 = vmatpush1.bf16.msra.mxu1 %v7911_v1  ;;  %v7991_v1 = vld [vmem:[%s10195_s12 + $0xb4] ss:$8 sps:$4 sm:$0xff]  }
 0x896   : > { %5679 = vmatprep.subr.bf16.mxu1 %v7916_v42  ;;  %v7989_v42 = vld [vmem:[%s10195_s12 + $0xb0] ss:$8 sps:$4 sm:$0xff]   ;;  %5953 = vmatprep.subr.bf16.mxu0 %v7991_v1 }
 0x897   : > { %5954 = vmatpush1.bf16.msra.mxu0 %v7989_v42 }
 0x899   : > { %5680 = vmatpush1.bf16.msra.mxu1 %v7914_v49  ;;  %v5749_v49 = vld [vmem:[%s10194_s11] sm:$0x3] }
 0x89a   : > { %5681 = vmatprep.subr.bf16.mxu1 %v7919_v5  ;;  %v5754_v5 = vrot.slane %v5749_v49, %v8526_v44 }
 0x89d   : > { %5682 = vmatpush1.bf16.msra.mxu1 %v7917_v8  ;;  %v5758_v8 = vrot.slane %v5749_v49, %v8532_v46 }
 0x89e   : > { %5683 = vmatprep.subr.bf16.mxu1 %v7922_v54 }
 0x8a1   : > { %5684 = vmatpush1.bf16.msra.mxu1 %v7920_v12 }
 0x8a2   : > { %5685 = vmatprep.subr.bf16.mxu1 %v7925_v22 }
 0x8a5   : > { %5686 = vmatpush1.bf16.msra.mxu1 %v7923_v25 }
 0x8a6   : > { %5687 = vmatprep.subr.bf16.mxu1 %v7928_v36 }
 0x8a9   : > { %5688 = vmatpush1.bf16.msra.mxu1 %v7926_v13 }
 0x8aa   : > { %5689 = vmatprep.subr.bf16.mxu1 %v7931_v21 }
 0x8ad   : > { %5690 = vmatpush1.bf16.msra.mxu1 %v7929_v60 }
 0x8ae   : > { %5702 = vmatprep.subr.bf16.mxu1 %v7934_v38 }
 0x943   : > { %v5317_v61 = vpop.f32.mrb[100].mxu1 }
 0x944   : > { %v5319_v14 = vpop.f32.mrb[101].mxu1 }
 0x945   : > { %v5321_v4 = vpop.f32.mrb[102].mxu1 }
 0x946   : > { %v5367_v6 = vpack.c.bf16 %v5321_v4, %v5317_v61  ;;  %v5323_v41 = vpop.f32.mrb[103].mxu1 }
 0x947   : > { %v5368_v32 = vpack.c.bf16 %v5323_v41, %v5319_v14 }
 0x949   : > { %5691 = vmatprep.mubr.bf16.mxu1 %v5368_v32 }
 0x94a   : > { %5692 = vmatmul.mubr.bf16.vlgmr.msra.gmra.mrb[96].mxu1 %v5367_v6 }
 0x94b   : > { %5703 = vmatpush1.bf16.msra.mxu1 %v7932_v35  ;;  %5734 = vmatprep.mubr.bf16.mxu1 %v8008_v50  ;;  %v7941_v50 = vld [vmem:[%s10193_s10 + $0x430] ss:$8 sps:$4 sm:$0xff]  }
 0x94c   : > { %5704 = vmatprep.subr.bf16.mxu1 %v7937_v26 }
 0x94f   : > { %5705 = vmatpush1.bf16.msra.mxu1 %v7935_v30 }
 0x950   : > { %5706 = vmatprep.subr.bf16.mxu1 %v7940_v23 }
 0x953   : > { %5707 = vmatpush1.bf16.msra.mxu1 %v7938_v57 }
 0x954   : > { %5708 = vmatprep.subr.bf16.mxu1 %v7943_v16 }
 0x957   : > { %5709 = vmatpush1.bf16.msra.mxu1 %v7941_v50 }
 0x958   : > { %5710 = vmatprep.subr.bf16.mxu1 %v7946_v10 }
 0x95b   : > { %5711 = vmatpush1.bf16.msra.mxu1 %v7944_v27 }
 0x95c   : > { %5712 = vmatprep.subr.bf16.mxu1 %v7949_v33 }
 0x95f   : > { %5713 = vmatpush1.bf16.msra.mxu1 %v7947_v47 }
 0x960   : > { %5714 = vmatprep.subr.bf16.mxu1 %v7952_v2 }
 0x963   : > { %5715 = vmatpush1.bf16.msra.mxu1 %v7950_v40 }
 0x964   : > { %5716 = vmatprep.subr.bf16.mxu1 %v7955_v39 }
 0x967   : > { %5717 = vmatpush1.bf16.msra.mxu1 %v7953_v19 }
 0x96a   : > { %5735 = vmatmul.mubr.bf16.vlgmr.msra.gmra.mrb[96].mxu1 %v5369_v58 }
 0xa3d   : > { %v5736_v54 = vpop.f32.mrb[96].mxu1 }
 0xa3e   : > { %v5761_v12 = vadd.f32 %v5754_v5, %v5736_v54  ;;  %v5738_v22 = vpop.f32.mrb[97].mxu1 }
 0xa3f   : > { %v5762_v25 = vadd.f32 %v5758_v8, %v5738_v22  ;;  %v5740_v36 = vpop.f32.mrb[98].mxu1 }
 0xa40   : > { %v5763_v13 = vadd.f32 %v5754_v5, %v5740_v36  ;;  %v5742_v21 = vpop.f32.mrb[99].mxu1  ;;  %v5765_v38 = vmax.f32 %v5761_v12, 0.0 }
 0xa41   : > { %v5764_v60 = vadd.f32 %v5758_v8, %v5742_v21  ;;  %v5766_v28 = vmax.f32 %v5762_v25, 0.0 }
 0xa42   : > { %v5767_v31 = vmax.f32 %v5763_v13, 0.0 }
 0xa43   : > { %v5768_v62 = vmax.f32 %v5764_v60, 0.0 }
 0xa44   : > { %v5769_v58 = vpack.c.bf16 %v5767_v31, %v5765_v38 }
 0xa45   : > { %v5770_v7 = vpack.c.bf16 %v5768_v62, %v5766_v28 }
 0xa47   : > { %6909 = vmatprep.mubr.msk.bf16.mxu0 %vm5927_vm5, %v5770_v7 }
 0xa48   : > { %5964 = vmatmul.mubr.bf16.vlgmr.msra.gmra.mrb[60].mxu0 %v5769_v58 }
 0xb1b   : > { %v5965_v48 = vpop.f32.mrb[60].mxu0 }
 0xb1c   : > { %v5966_v56 = vadd.f32 %v5965_v48, %v5800_v18  ;;  %v5967_v0 = vpop.f32.mrb[61].mxu0 }
 0xb1d   : > { %v5968_v9 = vadd.f32 %v5967_v0, %v5804_v55  ;;  %v5969_v43 = vpop.f32.mrb[62].mxu0 }
 0xb1e   : > { %v5974_v53 = vmax.f32 %v5966_v56, 0.0  ;;  %v5970_v59 = vadd.f32 %v5969_v43, %v5800_v18  ;;  %v5971_v11 = vpop.f32.mrb[63].mxu0 }
 0xb1f   : > { %v5975_v37 = vmax.f32 %v5968_v9, 0.0  ;;  %v5972_v63 = vadd.f32 %v5971_v11, %v5804_v55 }
 0xb20   : > { %5978 = vst [vmem:[%s471_s20] sm:$0xff] %v5974_v53  ;;  %v5976_v52 = vmax.f32 %v5970_v59, 0.0 }
 0xb21   : > { %5979 = vst [vmem:[%s471_s20 + $0x8] sm:$0xff] %v5975_v37  ;;  %v5977_v44 = vmax.f32 %v5972_v63, 0.0 }
 0xb22   : > { %5980 = vst [vmem:[%s471_s20 + $0x10] sm:$0xff] %v5976_v52 }
 0xb23   : > { %5981 = vst [vmem:[%s471_s20 + $0x18] sm:$0xff] %v5977_v44 }
 0xb24 PF: > { %s24_s29 = sadd.s32 1, %s8006_s29  }
 0xb25   : > { %p21_p5 = scmp.ge.s32.totalorder %s24_s29, 4  }
 0xb27   :  { %23 = sbr.rel (!%p21_p5) target bundleno = 1 (0x1), region = 118 }

</bundles_post_ra>
